<compile_context>
chip_gen: v6e
topology: v6e:2x2x1
jax: 0.10.0
libtpu: 0.0.40
codegen_flags: <defaults>
</compile_context>

<pallas_src>
import functools

import jax
import jax.numpy as jnp
from jax.experimental import pallas as pl
from jax.experimental.pallas import tpu as pltpu


_LN_EPS = 1e-5        # nn.LayerNorm default
_PROJ_TILE = 512      # row tile for projection kernels (multiple of 8)
_ATTN_TILE = 256      # query-row tile for the attention kernel (multiple of 8)


def _row_tile(m, max_rows):
    """Full-array block if it fits, else a fixed multiple-of-8 row tile."""
    return m if m <= max_rows else max_rows


# ----------------------------- Pallas kernels ------------------------------ #

def _q_proj_kernel(x_ref, enc_ref, w_ref, b_ref, o_ref, *, scale):
    # q = ((x + pos_enc) @ Wq + bq) * scale   (attention scale folded in here)
    x = x_ref[0].astype(jnp.float32) + enc_ref[...]
    acc = jnp.dot(x.astype(jnp.bfloat16), w_ref[...].astype(jnp.bfloat16),
                  preferred_element_type=jnp.float32)
    o_ref[0] = ((acc + b_ref[...]) * scale).astype(o_ref.dtype)


def q_projection(x, enc, w, b, scale):
    """x: (B, L, C), enc: (L, C) shared over batch -> (B, L, C) bf16."""
    B, L, C = x.shape
    tl = _row_tile(L, _PROJ_TILE)
    return pl.pallas_call(
        functools.partial(_q_proj_kernel, scale=scale),
        out_shape=jax.ShapeDtypeStruct((B, L, C), jnp.bfloat16),
        grid=(B, pl.cdiv(L, tl)),
        in_specs=[pl.BlockSpec((1, tl, C), lambda b, i: (b, i, 0)),
                  pl.BlockSpec((tl, C), lambda b, i: (i, 0)),
                  pl.BlockSpec((C, C), lambda b, i: (0, 0)),
                  pl.BlockSpec((1, C), lambda b, i: (0, 0))],
        out_specs=pl.BlockSpec((1, tl, C), lambda b, i: (b, i, 0)),
        compiler_params=pltpu.CompilerParams(
            dimension_semantics=("parallel", "parallel")),
    )(x, enc, w, b.reshape(1, C))


def _kv_proj_kernel(x_ref, enc_ref, kw_ref, kb_ref, vw_ref, vb_ref,
                    k_out, v_out):
    # Single read of x_sub produces both k = Wk(x + pos_enc) and v = Wv(x).
    x = x_ref[0].astype(jnp.float32)
    xk = (x + enc_ref[...]).astype(jnp.bfloat16)
    xv = x.astype(jnp.bfloat16)
    k = jnp.dot(xk, kw_ref[...].astype(jnp.bfloat16),
                preferred_element_type=jnp.float32) + kb_ref[...]
    v = jnp.dot(xv, vw_ref[...].astype(jnp.bfloat16),
                preferred_element_type=jnp.float32) + vb_ref[...]
    k_out[0] = k.astype(k_out.dtype)
    v_out[0] = v.astype(v_out.dtype)


def kv_projection(x, enc, kw, kb, vw, vb):
    """x: (B, L, C), enc: (L, C) -> (k, v) each (B, L, C) bf16."""
    B, L, C = x.shape
    tl = _row_tile(L, _PROJ_TILE)
    tok_spec = pl.BlockSpec((1, tl, C), lambda b, i: (b, i, 0))
    out_sds = jax.ShapeDtypeStruct((B, L, C), jnp.bfloat16)
    return pl.pallas_call(
        _kv_proj_kernel,
        out_shape=(out_sds, out_sds),
        grid=(B, pl.cdiv(L, tl)),
        in_specs=[tok_spec,
                  pl.BlockSpec((tl, C), lambda b, i: (i, 0)),
                  pl.BlockSpec((C, C), lambda b, i: (0, 0)),
                  pl.BlockSpec((1, C), lambda b, i: (0, 0)),
                  pl.BlockSpec((C, C), lambda b, i: (0, 0)),
                  pl.BlockSpec((1, C), lambda b, i: (0, 0))],
        out_specs=(tok_spec, tok_spec),
        compiler_params=pltpu.CompilerParams(
            dimension_semantics=("parallel", "parallel")),
    )(x, enc, kw, kb.reshape(1, C), vw, vb.reshape(1, C))


def _sr_conv_ln_kernel(xp_ref, w_ref, b_ref, g_ref, beta_ref, o_ref, *, eps):
    # Strided conv (as im2col matmul) fused with the shared LayerNorm epilogue.
    acc = jnp.dot(xp_ref[...].astype(jnp.bfloat16),
                  w_ref[...].astype(jnp.bfloat16),
                  preferred_element_type=jnp.float32) + b_ref[...]
    mean = jnp.mean(acc, axis=-1, keepdims=True)
    var = jnp.mean(jnp.square(acc - mean), axis=-1, keepdims=True)
    xn = (acc - mean) * jax.lax.rsqrt(var + eps)
    o_ref[...] = (xn * g_ref[...] + beta_ref[...]).astype(o_ref.dtype)


def sr_conv_layernorm(xp, w, b, g, beta):
    """xp: (M, sr*sr*C) patches -> LayerNorm(conv(xp)): (M, C) bf16."""
    M, Kp = xp.shape
    C = w.shape[1]
    tm = _row_tile(M, _PROJ_TILE)
    return pl.pallas_call(
        functools.partial(_sr_conv_ln_kernel, eps=_LN_EPS),
        out_shape=jax.ShapeDtypeStruct((M, C), jnp.bfloat16),
        grid=(pl.cdiv(M, tm),),
        in_specs=[pl.BlockSpec((tm, Kp), lambda i: (i, 0)),
                  pl.BlockSpec((Kp, C), lambda i: (0, 0)),
                  pl.BlockSpec((1, C), lambda i: (0, 0)),
                  pl.BlockSpec((1, C), lambda i: (0, 0)),
                  pl.BlockSpec((1, C), lambda i: (0, 0))],
        out_specs=pl.BlockSpec((tm, C), lambda i: (i, 0)),
        compiler_params=pltpu.CompilerParams(dimension_semantics=("parallel",)),
    )(xp, w, b.reshape(1, C), g.reshape(1, C), beta.reshape(1, C))


def _attn_proj_kernel(q_ref, k_ref, v_ref, pw_ref, pb_ref, o_ref,
                      *, num_heads, head_dim):
    # All heads of one (batch, q-tile) per grid step; q/k/v are lane-dense
    # (rows, C) with heads concatenated along the channel axis.  The output
    # projection is fused by accumulating per-head slices of proj_w, so the
    # store is one lane-dense (TQ, C) slab per tile.
    q = q_ref[0]                      # (TQ, C) bf16, attention scale pre-folded
    k = k_ref[0]                      # (Nk, C) bf16
    v = v_ref[0]                      # (Nk, C) bf16
    acc = jnp.zeros((q.shape[0], q.shape[1]), jnp.float32)
    for h in range(num_heads):        # static unroll over heads
        lo = h * head_dim
        qh = q[:, lo:lo + head_dim]
        kh = k[:, lo:lo + head_dim]
        vh = v[:, lo:lo + head_dim]
        # scores: contract on head_dim, no materialized k transpose.
        s = jax.lax.dot_general(qh, kh, (((1,), (1,)), ((), ())),
                                preferred_element_type=jnp.float32)  # (TQ, Nk)
        m = jnp.max(s, axis=-1, keepdims=True)
        p = jnp.exp(s - m)                                           # f32
        r = jnp.sum(p, axis=-1, keepdims=True)
        oh = jnp.dot(p.astype(jnp.bfloat16), vh,
                     preferred_element_type=jnp.float32)             # (TQ, D)
        oh = oh * pl.reciprocal(r, approx=True)   # normalize after PV (EUP)
        acc = acc + jnp.dot(oh.astype(jnp.bfloat16),
                            pw_ref[lo:lo + head_dim, :].astype(jnp.bfloat16),
                            preferred_element_type=jnp.float32)
    o_ref[0] = (acc + pb_ref[...]).astype(o_ref.dtype)


def attention_with_proj(q, k, v, pw, pb, *, num_heads):
    """q: (B, L, C), k/v: (B, Nk, C) -> proj(softmax(qk^T)v): (B, L, C) f32."""
    B, L, C = q.shape
    _, Nk, _ = k.shape
    head_dim = C // num_heads
    tq = _row_tile(L, _ATTN_TILE)
    return pl.pallas_call(
        functools.partial(_attn_proj_kernel,
                          num_heads=num_heads, head_dim=head_dim),
        out_shape=jax.ShapeDtypeStruct((B, L, C), jnp.float32),
        grid=(B, pl.cdiv(L, tq)),
        in_specs=[pl.BlockSpec((1, tq, C), lambda b, i: (b, i, 0)),
                  pl.BlockSpec((1, Nk, C), lambda b, i: (b, 0, 0)),
                  pl.BlockSpec((1, Nk, C), lambda b, i: (b, 0, 0)),
                  pl.BlockSpec((C, C), lambda b, i: (0, 0)),
                  pl.BlockSpec((1, C), lambda b, i: (0, 0))],
        out_specs=pl.BlockSpec((1, tq, C), lambda b, i: (b, i, 0)),
        compiler_params=pltpu.CompilerParams(
            dimension_semantics=("parallel", "parallel")),
    )(q, k, v, pw, pb.reshape(1, C))


# ------------------------------ JAX glue ----------------------------------- #

def _coords_pos_enc(h, w, dim, coord_scale=1.0):
    # coords_grid + LinearPositionEmbeddingSine, computed once (shared over
    # batch; broadcasting happens via the BlockSpec index_map, not in HBM).
    ys, xs = jnp.meshgrid(jnp.arange(h, dtype=jnp.float32),
                          jnp.arange(w, dtype=jnp.float32), indexing="ij")
    x = xs.reshape(-1, 1) * coord_scale            # [x, y] ordering as in ref
    y = ys.reshape(-1, 1) * coord_scale
    freq = jnp.arange(dim // 4, dtype=jnp.float32)
    norm = 1.0 / 200.0
    return jnp.concatenate([jnp.sin(3.14 * x * freq * norm),
                            jnp.cos(3.14 * x * freq * norm),
                            jnp.sin(3.14 * y * freq * norm),
                            jnp.cos(3.14 * y * freq * norm)], axis=-1)


def _patchify(x, sr):
    # (B, Hp, Wp, C) -> (B*Hs*Ws, sr*sr*C), patch flattened as (kh, kw, c_in).
    # TODO(synk): the im2col transpose stays in XLA; a gather-DMA kernel could
    # avoid this extra HBM pass for large sr_ratio.
    B, Hp, Wp, C = x.shape
    Hs, Ws = Hp // sr, Wp // sr
    x = x.reshape(B, Hs, sr, Ws, sr, C).transpose(0, 1, 3, 2, 4, 5)
    return x.reshape(B * Hs * Ws, sr * sr * C)


def init_params(key, dim, sr_ratio):
    ks = jax.random.split(key, 10)
    w = lambda k, shape: (0.02 * jax.random.normal(k, shape)).astype(jnp.float32)
    p = {
        "q_w": w(ks[0], (dim, dim)), "q_b": w(ks[1], (dim,)),
        "k_w": w(ks[2], (dim, dim)), "k_b": w(ks[3], (dim,)),
        "v_w": w(ks[4], (dim, dim)), "v_b": w(ks[5], (dim,)),
        "proj_w": w(ks[6], (dim, dim)), "proj_b": w(ks[7], (dim,)),
    }
    if sr_ratio > 1:
        # Conv2d(dim, dim, k=sr, s=sr) weight flattened as (kh, kw, c_in) x c_out.
        p["sr_w"] = w(ks[8], (sr_ratio * sr_ratio * dim, dim))
        p["sr_b"] = w(ks[9], (dim,))
        p["norm_g"] = jnp.ones((dim,), jnp.float32)
        p["norm_b"] = jnp.zeros((dim,), jnp.float32)
    return p


def gsa_rpe_forward(params, x, size, context=None, *, num_heads, sr_ratio):
    del context  # the reference forward never uses it
    B, N, C = x.shape
    H, W = size
    head_dim = C // num_heads
    scale = head_dim ** (-0.5)

    xhw = x.reshape(B, H, W, C)
    pad_r = (sr_ratio - W % sr_ratio) % sr_ratio
    pad_b = (sr_ratio - H % sr_ratio) % sr_ratio
    if pad_r or pad_b:
        xhw = jnp.pad(xhw, ((0, 0), (0, pad_b), (0, pad_r), (0, 0)))
    Hp, Wp = H + pad_b, W + pad_r
    Npad = Hp * Wp
    x_pad = xhw.reshape(B, Npad, C)

    # q = Wq(x + posenc), attention scale folded into the projection kernel.
    enc_q = _coords_pos_enc(Hp, Wp, C)
    q = q_projection(x_pad, enc_q, params["q_w"], params["q_b"], scale)

    # Spatial sub-sampling conv (k=stride=sr) fused with the shared LayerNorm.
    if sr_ratio > 1:
        Hs, Ws = Hp // sr_ratio, Wp // sr_ratio
        Ns = Hs * Ws
        x_sub = sr_conv_layernorm(_patchify(xhw, sr_ratio),
                                  params["sr_w"], params["sr_b"],
                                  params["norm_g"], params["norm_b"])
        x_sub = x_sub.reshape(B, Ns, C)
    else:
        Hs, Ws, Ns = Hp, Wp, Npad
        x_sub = x_pad

    enc_kv = _coords_pos_enc(Hs, Ws, C, coord_scale=float(sr_ratio))
    k, v = kv_projection(x_sub, enc_kv, params["k_w"], params["k_b"],
                         params["v_w"], params["v_b"])

    # Attention (heads grouped, lane-dense) with the output projection fused.
    # proj is token-wise, so applying it before the pad-crop is equivalent to
    # the reference's crop-then-proj order.
    out = attention_with_proj(q, k, v, params["proj_w"], params["proj_b"],
                              num_heads=num_heads)       # (B, Npad, C) f32

    out = out.reshape(B, Hp, Wp, C)
    if pad_r or pad_b:
        out = out[:, :H, :W, :]
    return out.reshape(B, N, C)


# --------------------------------- main ------------------------------------ #

if __name__ == "__main__":
    B, H, W = 2, 16, 16
    dim, num_heads, sr_ratio = 64, 2, 2
    N = H * W

    key = jax.random.PRNGKey(0)
    kx, kp = jax.random.split(key)
    x = jax.random.normal(kx, (B, N, dim), dtype=jnp.float32)
    params = init_params(kp, dim, sr_ratio)

    @jax.jit
    def fwd(params, x):
        return gsa_rpe_forward(params, x, (H, W),
                               num_heads=num_heads, sr_ratio=sr_ratio)

    out = fwd(params, x)
    jax.block_until_ready(out)
    assert out.shape == (B, N, dim)
    assert bool(jnp.all(jnp.isfinite(out)))
    print("KERNEL_OK")
</pallas_src>

<mosaic_0001>
module attributes {stable_mosaic.version = 11 : i64} {
  func.func @_q_proj_kernel(%arg0: i32, %arg1: i32, %arg2: memref<1x256x64xf32, #tpu.memory_space<vmem>>, %arg3: memref<256x64xf32, #tpu.memory_space<vmem>>, %arg4: memref<64x64xf32, #tpu.memory_space<vmem>>, %arg5: memref<1x64xf32, #tpu.memory_space<vmem>>, %arg6: memref<1x256x64xbf16, #tpu.memory_space<vmem>>) attributes {dimension_semantics = [#tpu.dimension_semantics<parallel>, #tpu.dimension_semantics<parallel>], iteration_bounds = array<i64: 2, 1>, scalar_prefetch = 0 : i64, scratch_operands = 0 : i64, tpu.core_type = #tpu.core_type<tc>, window_params = [{transform_indices = @transform_0, window_bounds = array<i64: 1, 256, 64>}, {transform_indices = @transform_1, window_bounds = array<i64: 256, 64>}, {pipeline_mode = #tpu.pipeline_mode<synchronous>, transform_indices = @transform_2, window_bounds = array<i64: 64, 64>}, {pipeline_mode = #tpu.pipeline_mode<synchronous>, transform_indices = @transform_3, window_bounds = array<i64: 1, 64>}, {transform_indices = @transform_4, window_bounds = array<i64: 1, 256, 64>}]} {
    %c0 = arith.constant 0 : index
    %c0_0 = arith.constant 0 : index
    %c0_1 = arith.constant 0 : index
    %0 = vector.load %arg2[%c0, %c0_0, %c0_1] : memref<1x256x64xf32, #tpu.memory_space<vmem>>, vector<1x256x64xf32>
    %1 = vector.shape_cast %0 : vector<1x256x64xf32> to vector<256x64xf32>
    %c0_2 = arith.constant 0 : index
    %c0_3 = arith.constant 0 : index
    %2 = vector.load %arg3[%c0_2, %c0_3] : memref<256x64xf32, #tpu.memory_space<vmem>>, vector<256x64xf32>
    %3 = arith.addf %1, %2 : vector<256x64xf32>
    %4 = arith.truncf %3 : vector<256x64xf32> to vector<256x64xbf16>
    %c0_4 = arith.constant 0 : index
    %c0_5 = arith.constant 0 : index
    %5 = vector.load %arg4[%c0_4, %c0_5] : memref<64x64xf32, #tpu.memory_space<vmem>>, vector<64x64xf32>
    %6 = arith.truncf %5 : vector<64x64xf32> to vector<64x64xbf16>
    %cst = arith.constant dense<0.000000e+00> : vector<256x64xf32>
    %7 = tpu.matmul %4, %6, %cst {dimension_numbers = #tpu.dot_dimension_numbers<[1], [0], [0], [1], [0, 0, 1, 1], [], []>} : vector<256x64xbf16>, vector<64x64xbf16>, vector<256x64xf32> -> vector<256x64xf32>
    %c0_6 = arith.constant 0 : index
    %c0_7 = arith.constant 0 : index
    %8 = vector.load %arg5[%c0_6, %c0_7] : memref<1x64xf32, #tpu.memory_space<vmem>>, vector<1x64xf32>
    %9 = vector.broadcast %8 : vector<1x64xf32> to vector<256x64xf32>
    %10 = arith.addf %7, %9 : vector<256x64xf32>
    %cst_8 = arith.constant 0.176776692 : f32
    %11 = vector.broadcast %cst_8 : f32 to vector<256x64xf32>
    %12 = arith.mulf %10, %11 : vector<256x64xf32>
    %13 = arith.truncf %12 : vector<256x64xf32> to vector<256x64xbf16>
    %c0_9 = arith.constant 0 : index
    %c0_10 = arith.constant 0 : index
    %c0_11 = arith.constant 0 : index
    %14 = vector.load %arg6[%c0_9, %c0_10, %c0_11] : memref<1x256x64xbf16, #tpu.memory_space<vmem>>, vector<1x256x64xbf16>
    %15 = vector.shape_cast %14 : vector<1x256x64xbf16> to vector<256x64xbf16>
    %16 = vector.shape_cast %13 : vector<256x64xbf16> to vector<1x256x64xbf16>
    tpu.vector_store %arg6[%c0_9, %c0_10, %c0_11], %16 {strides = array<i32>} : memref<1x256x64xbf16, #tpu.memory_space<vmem>>, vector<1x256x64xbf16>,
    return
  }
  func.func @transform_0(%arg0: i32, %arg1: i32) -> (i32, i32, i32) {
    %c0_i32 = arith.constant 0 : i32
    %c0_i32_0 = arith.constant 0 : i32
    return %arg0, %arg1, %c0_i32 : i32, i32, i32
  }
  func.func @transform_1(%arg0: i32, %arg1: i32) -> (i32, i32) {
    %c0_i32 = arith.constant 0 : i32
    %c0_i32_0 = arith.constant 0 : i32
    return %arg1, %c0_i32 : i32, i32
  }
  func.func @transform_2(%arg0: i32, %arg1: i32) -> (i32, i32) {
    %c0_i32 = arith.constant 0 : i32
    %c0_i32_0 = arith.constant 0 : i32
    %c0_i32_1 = arith.constant 0 : i32
    return %c0_i32, %c0_i32_0 : i32, i32
  }
  func.func @transform_3(%arg0: i32, %arg1: i32) -> (i32, i32) {
    %c0_i32 = arith.constant 0 : i32
    %c0_i32_0 = arith.constant 0 : i32
    %c0_i32_1 = arith.constant 0 : i32
    return %c0_i32, %c0_i32_0 : i32, i32
  }
  func.func @transform_4(%arg0: i32, %arg1: i32) -> (i32, i32, i32) {
    %c0_i32 = arith.constant 0 : i32
    %c0_i32_0 = arith.constant 0 : i32
    return %arg0, %arg1, %c0_i32 : i32, i32, i32
  }
}

module attributes {stable_mosaic.version = 11 : i64} {
  func.func @_sr_conv_ln_kernel(%arg0: i32, %arg1: memref<128x256xf32, #tpu.memory_space<vmem>>, %arg2: memref<256x64xf32, #tpu.memory_space<vmem>>, %arg3: memref<1x64xf32, #tpu.memory_space<vmem>>, %arg4: memref<1x64xf32, #tpu.memory_space<vmem>>, %arg5: memref<1x64xf32, #tpu.memory_space<vmem>>, %arg6: memref<128x64xbf16, #tpu.memory_space<vmem>>) attributes {dimension_semantics = [#tpu.dimension_semantics<parallel>], iteration_bounds = array<i64: 1>, scalar_prefetch = 0 : i64, scratch_operands = 0 : i64, tpu.core_type = #tpu.core_type<tc>, window_params = [{transform_indices = @transform_0, window_bounds = array<i64: 128, 256>}, {pipeline_mode = #tpu.pipeline_mode<synchronous>, transform_indices = @transform_1, window_bounds = array<i64: 256, 64>}, {pipeline_mode = #tpu.pipeline_mode<synchronous>, transform_indices = @transform_2, window_bounds = array<i64: 1, 64>}, {pipeline_mode = #tpu.pipeline_mode<synchronous>, transform_indices = @transform_3, window_bounds = array<i64: 1, 64>}, {pipeline_mode = #tpu.pipeline_mode<synchronous>, transform_indices = @transform_4, window_bounds = array<i64: 1, 64>}, {transform_indices = @transform_5, window_bounds = array<i64: 128, 64>}]} {
    %c0 = arith.constant 0 : index
    %c0_0 = arith.constant 0 : index
    %0 = vector.load %arg1[%c0, %c0_0] : memref<128x256xf32, #tpu.memory_space<vmem>>, vector<128x256xf32>
    %1 = arith.truncf %0 : vector<128x256xf32> to vector<128x256xbf16>
    %c0_1 = arith.constant 0 : index
    %c0_2 = arith.constant 0 : index
    %2 = vector.load %arg2[%c0_1, %c0_2] : memref<256x64xf32, #tpu.memory_space<vmem>>, vector<256x64xf32>
    %3 = arith.truncf %2 : vector<256x64xf32> to vector<256x64xbf16>
    %cst = arith.constant dense<0.000000e+00> : vector<128x64xf32>
    %4 = tpu.matmul %1, %3, %cst {dimension_numbers = #tpu.dot_dimension_numbers<[1], [0], [0], [1], [0, 0, 1, 1], [], []>} : vector<128x256xbf16>, vector<256x64xbf16>, vector<128x64xf32> -> vector<128x64xf32>
    %c0_3 = arith.constant 0 : index
    %c0_4 = arith.constant 0 : index
    %5 = vector.load %arg3[%c0_3, %c0_4] : memref<1x64xf32, #tpu.memory_space<vmem>>, vector<1x64xf32>
    %6 = vector.broadcast %5 : vector<1x64xf32> to vector<128x64xf32>
    %7 = arith.addf %4, %6 : vector<128x64xf32>
    %cst_5 = arith.constant dense<0.000000e+00> : vector<128xf32>
    %8 = vector.multi_reduction <add>, %7, %cst_5 [1] : vector<128x64xf32> to vector<128xf32>
    %9 = vector.shape_cast %8 : vector<128xf32> to vector<128x1xf32>
    %cst_6 = arith.constant 6.400000e+01 : f32
    %10 = vector.broadcast %cst_6 : f32 to vector<128x1xf32>
    %11 = arith.divf %9, %10 : vector<128x1xf32>
    %12 = vector.broadcast %11 : vector<128x1xf32> to vector<128x64xf32>
    %13 = arith.subf %7, %12 : vector<128x64xf32>
    %14 = arith.mulf %13, %13 : vector<128x64xf32>
    %cst_7 = arith.constant dense<0.000000e+00> : vector<128xf32>
    %15 = vector.multi_reduction <add>, %14, %cst_7 [1] : vector<128x64xf32> to vector<128xf32>
    %16 = vector.shape_cast %15 : vector<128xf32> to vector<128x1xf32>
    %cst_8 = arith.constant 6.400000e+01 : f32
    %17 = vector.broadcast %cst_8 : f32 to vector<128x1xf32>
    %18 = arith.divf %16, %17 : vector<128x1xf32>
    %19 = vector.broadcast %11 : vector<128x1xf32> to vector<128x64xf32>
    %20 = arith.subf %7, %19 : vector<128x64xf32>
    %cst_9 = arith.constant 9.99999974E-6 : f32
    %21 = vector.broadcast %cst_9 : f32 to vector<128x1xf32>
    %22 = arith.addf %18, %21 : vector<128x1xf32>
    %23 = math.rsqrt %22 : vector<128x1xf32>
    %24 = vector.broadcast %23 : vector<128x1xf32> to vector<128x64xf32>
    %25 = arith.mulf %20, %24 : vector<128x64xf32>
    %c0_10 = arith.constant 0 : index
    %c0_11 = arith.constant 0 : index
    %26 = vector.load %arg4[%c0_10, %c0_11] : memref<1x64xf32, #tpu.memory_space<vmem>>, vector<1x64xf32>
    %27 = vector.broadcast %26 : vector<1x64xf32> to vector<128x64xf32>
    %28 = arith.mulf %25, %27 : vector<128x64xf32>
    %c0_12 = arith.constant 0 : index
    %c0_13 = arith.constant 0 : index
    %29 = vector.load %arg5[%c0_12, %c0_13] : memref<1x64xf32, #tpu.memory_space<vmem>>, vector<1x64xf32>
    %30 = vector.broadcast %29 : vector<1x64xf32> to vector<128x64xf32>
    %31 = arith.addf %28, %30 : vector<128x64xf32>
    %32 = arith.truncf %31 : vector<128x64xf32> to vector<128x64xbf16>
    %c0_14 = arith.constant 0 : index
    %c0_15 = arith.constant 0 : index
    %33 = vector.load %arg6[%c0_14, %c0_15] : memref<128x64xbf16, #tpu.memory_space<vmem>>, vector<128x64xbf16>
    tpu.vector_store %arg6[%c0_14, %c0_15], %32 {strides = array<i32>} : memref<128x64xbf16, #tpu.memory_space<vmem>>, vector<128x64xbf16>,
    return
  }
  func.func @transform_0(%arg0: i32) -> (i32, i32) {
    %c0_i32 = arith.constant 0 : i32
    %c0_i32_0 = arith.constant 0 : i32
    return %arg0, %c0_i32 : i32, i32
  }
  func.func @transform_1(%arg0: i32) -> (i32, i32) {
    %c0_i32 = arith.constant 0 : i32
    %c0_i32_0 = arith.constant 0 : i32
    %c0_i32_1 = arith.constant 0 : i32
    return %c0_i32, %c0_i32_0 : i32, i32
  }
  func.func @transform_2(%arg0: i32) -> (i32, i32) {
    %c0_i32 = arith.constant 0 : i32
    %c0_i32_0 = arith.constant 0 : i32
    %c0_i32_1 = arith.constant 0 : i32
    return %c0_i32, %c0_i32_0 : i32, i32
  }
  func.func @transform_3(%arg0: i32) -> (i32, i32) {
    %c0_i32 = arith.constant 0 : i32
    %c0_i32_0 = arith.constant 0 : i32
    %c0_i32_1 = arith.constant 0 : i32
    return %c0_i32, %c0_i32_0 : i32, i32
  }
  func.func @transform_4(%arg0: i32) -> (i32, i32) {
    %c0_i32 = arith.constant 0 : i32
    %c0_i32_0 = arith.constant 0 : i32
    %c0_i32_1 = arith.constant 0 : i32
    return %c0_i32, %c0_i32_0 : i32, i32
  }
  func.func @transform_5(%arg0: i32) -> (i32, i32) {
    %c0_i32 = arith.constant 0 : i32
    %c0_i32_0 = arith.constant 0 : i32
    return %arg0, %c0_i32 : i32, i32
  }
}

module attributes {stable_mosaic.version = 11 : i64} {
  func.func @_kv_proj_kernel(%arg0: i32, %arg1: i32, %arg2: memref<1x64x64xbf16, #tpu.memory_space<vmem>>, %arg3: memref<64x64xf32, #tpu.memory_space<vmem>>, %arg4: memref<64x64xf32, #tpu.memory_space<vmem>>, %arg5: memref<1x64xf32, #tpu.memory_space<vmem>>, %arg6: memref<64x64xf32, #tpu.memory_space<vmem>>, %arg7: memref<1x64xf32, #tpu.memory_space<vmem>>, %arg8: memref<1x64x64xbf16, #tpu.memory_space<vmem>>, %arg9: memref<1x64x64xbf16, #tpu.memory_space<vmem>>) attributes {dimension_semantics = [#tpu.dimension_semantics<parallel>, #tpu.dimension_semantics<parallel>], iteration_bounds = array<i64: 2, 1>, scalar_prefetch = 0 : i64, scratch_operands = 0 : i64, tpu.core_type = #tpu.core_type<tc>, window_params = [{transform_indices = @transform_0, window_bounds = array<i64: 1, 64, 64>}, {transform_indices = @transform_1, window_bounds = array<i64: 64, 64>}, {pipeline_mode = #tpu.pipeline_mode<synchronous>, transform_indices = @transform_2, window_bounds = array<i64: 64, 64>}, {pipeline_mode = #tpu.pipeline_mode<synchronous>, transform_indices = @transform_3, window_bounds = array<i64: 1, 64>}, {pipeline_mode = #tpu.pipeline_mode<synchronous>, transform_indices = @transform_4, window_bounds = array<i64: 64, 64>}, {pipeline_mode = #tpu.pipeline_mode<synchronous>, transform_indices = @transform_5, window_bounds = array<i64: 1, 64>}, {transform_indices = @transform_6, window_bounds = array<i64: 1, 64, 64>}, {transform_indices = @transform_7, window_bounds = array<i64: 1, 64, 64>}]} {
    %c0 = arith.constant 0 : index
    %c0_0 = arith.constant 0 : index
    %c0_1 = arith.constant 0 : index
    %0 = vector.load %arg2[%c0, %c0_0, %c0_1] : memref<1x64x64xbf16, #tpu.memory_space<vmem>>, vector<1x64x64xbf16>
    %1 = vector.shape_cast %0 : vector<1x64x64xbf16> to vector<64x64xbf16>
    %2 = arith.extf %1 : vector<64x64xbf16> to vector<64x64xf32>
    %c0_2 = arith.constant 0 : index
    %c0_3 = arith.constant 0 : index
    %3 = vector.load %arg3[%c0_2, %c0_3] : memref<64x64xf32, #tpu.memory_space<vmem>>, vector<64x64xf32>
    %4 = arith.addf %2, %3 : vector<64x64xf32>
    %5 = arith.truncf %4 : vector<64x64xf32> to vector<64x64xbf16>
    %6 = arith.truncf %2 : vector<64x64xf32> to vector<64x64xbf16>
    %c0_4 = arith.constant 0 : index
    %c0_5 = arith.constant 0 : index
    %7 = vector.load %arg4[%c0_4, %c0_5] : memref<64x64xf32, #tpu.memory_space<vmem>>, vector<64x64xf32>
    %8 = arith.truncf %7 : vector<64x64xf32> to vector<64x64xbf16>
    %cst = arith.constant dense<0.000000e+00> : vector<64x64xf32>
    %9 = tpu.matmul %5, %8, %cst {dimension_numbers = #tpu.dot_dimension_numbers<[1], [0], [0], [1], [0, 0, 1, 1], [], []>} : vector<64x64xbf16>, vector<64x64xbf16>, vector<64x64xf32> -> vector<64x64xf32>
    %c0_6 = arith.constant 0 : index
    %c0_7 = arith.constant 0 : index
    %10 = vector.load %arg5[%c0_6, %c0_7] : memref<1x64xf32, #tpu.memory_space<vmem>>, vector<1x64xf32>
    %11 = vector.broadcast %10 : vector<1x64xf32> to vector<64x64xf32>
    %12 = arith.addf %9, %11 : vector<64x64xf32>
    %c0_8 = arith.constant 0 : index
    %c0_9 = arith.constant 0 : index
    %13 = vector.load %arg6[%c0_8, %c0_9] : memref<64x64xf32, #tpu.memory_space<vmem>>, vector<64x64xf32>
    %14 = arith.truncf %13 : vector<64x64xf32> to vector<64x64xbf16>
    %cst_10 = arith.constant dense<0.000000e+00> : vector<64x64xf32>
    %15 = tpu.matmul %6, %14, %cst_10 {dimension_numbers = #tpu.dot_dimension_numbers<[1], [0], [0], [1], [0, 0, 1, 1], [], []>} : vector<64x64xbf16>, vector<64x64xbf16>, vector<64x64xf32> -> vector<64x64xf32>
    %c0_11 = arith.constant 0 : index
    %c0_12 = arith.constant 0 : index
    %16 = vector.load %arg7[%c0_11, %c0_12] : memref<1x64xf32, #tpu.memory_space<vmem>>, vector<1x64xf32>
    %17 = vector.broadcast %16 : vector<1x64xf32> to vector<64x64xf32>
    %18 = arith.addf %15, %17 : vector<64x64xf32>
    %19 = arith.truncf %12 : vector<64x64xf32> to vector<64x64xbf16>
    %c0_13 = arith.constant 0 : index
    %c0_14 = arith.constant 0 : index
    %c0_15 = arith.constant 0 : index
    %20 = vector.load %arg8[%c0_13, %c0_14, %c0_15] : memref<1x64x64xbf16, #tpu.memory_space<vmem>>, vector<1x64x64xbf16>
    %21 = vector.shape_cast %20 : vector<1x64x64xbf16> to vector<64x64xbf16>
    %22 = vector.shape_cast %19 : vector<64x64xbf16> to vector<1x64x64xbf16>
    tpu.vector_store %arg8[%c0_13, %c0_14, %c0_15], %22 {strides = array<i32>} : memref<1x64x64xbf16, #tpu.memory_space<vmem>>, vector<1x64x64xbf16>,
    %23 = arith.truncf %18 : vector<64x64xf32> to vector<64x64xbf16>
    %c0_16 = arith.constant 0 : index
    %c0_17 = arith.constant 0 : index
    %c0_18 = arith.constant 0 : index
    %24 = vector.load %arg9[%c0_16, %c0_17, %c0_18] : memref<1x64x64xbf16, #tpu.memory_space<vmem>>, vector<1x64x64xbf16>
    %25 = vector.shape_cast %24 : vector<1x64x64xbf16> to vector<64x64xbf16>
    %26 = vector.shape_cast %23 : vector<64x64xbf16> to vector<1x64x64xbf16>
    tpu.vector_store %arg9[%c0_16, %c0_17, %c0_18], %26 {strides = array<i32>} : memref<1x64x64xbf16, #tpu.memory_space<vmem>>, vector<1x64x64xbf16>,
    return
  }
  func.func @transform_0(%arg0: i32, %arg1: i32) -> (i32, i32, i32) {
    %c0_i32 = arith.constant 0 : i32
    %c0_i32_0 = arith.constant 0 : i32
    return %arg0, %arg1, %c0_i32 : i32, i32, i32
  }
  func.func @transform_1(%arg0: i32, %arg1: i32) -> (i32, i32) {
    %c0_i32 = arith.constant 0 : i32
    %c0_i32_0 = arith.constant 0 : i32
    return %arg1, %c0_i32 : i32, i32
  }
  func.func @transform_2(%arg0: i32, %arg1: i32) -> (i32, i32) {
    %c0_i32 = arith.constant 0 : i32
    %c0_i32_0 = arith.constant 0 : i32
    %c0_i32_1 = arith.constant 0 : i32
    return %c0_i32, %c0_i32_0 : i32, i32
  }
  func.func @transform_3(%arg0: i32, %arg1: i32) -> (i32, i32) {
    %c0_i32 = arith.constant 0 : i32
    %c0_i32_0 = arith.constant 0 : i32
    %c0_i32_1 = arith.constant 0 : i32
    return %c0_i32, %c0_i32_0 : i32, i32
  }
  func.func @transform_4(%arg0: i32, %arg1: i32) -> (i32, i32) {
    %c0_i32 = arith.constant 0 : i32
    %c0_i32_0 = arith.constant 0 : i32
    %c0_i32_1 = arith.constant 0 : i32
    return %c0_i32, %c0_i32_0 : i32, i32
  }
  func.func @transform_5(%arg0: i32, %arg1: i32) -> (i32, i32) {
    %c0_i32 = arith.constant 0 : i32
    %c0_i32_0 = arith.constant 0 : i32
    %c0_i32_1 = arith.constant 0 : i32
    return %c0_i32, %c0_i32_0 : i32, i32
  }
  func.func @transform_6(%arg0: i32, %arg1: i32) -> (i32, i32, i32) {
    %c0_i32 = arith.constant 0 : i32
    %c0_i32_0 = arith.constant 0 : i32
    return %arg0, %arg1, %c0_i32 : i32, i32, i32
  }
  func.func @transform_7(%arg0: i32, %arg1: i32) -> (i32, i32, i32) {
    %c0_i32 = arith.constant 0 : i32
    %c0_i32_0 = arith.constant 0 : i32
    return %arg0, %arg1, %c0_i32 : i32, i32, i32
  }
}

module attributes {stable_mosaic.version = 11 : i64} {
  func.func @_attn_proj_kernel(%arg0: i32, %arg1: i32, %arg2: memref<1x256x64xbf16, #tpu.memory_space<vmem>>, %arg3: memref<1x64x64xbf16, #tpu.memory_space<vmem>>, %arg4: memref<1x64x64xbf16, #tpu.memory_space<vmem>>, %arg5: memref<64x64xf32, #tpu.memory_space<vmem>>, %arg6: memref<1x64xf32, #tpu.memory_space<vmem>>, %arg7: memref<1x256x64xf32, #tpu.memory_space<vmem>>) attributes {dimension_semantics = [#tpu.dimension_semantics<parallel>, #tpu.dimension_semantics<parallel>], iteration_bounds = array<i64: 2, 1>, scalar_prefetch = 0 : i64, scratch_operands = 0 : i64, tpu.core_type = #tpu.core_type<tc>, window_params = [{transform_indices = @transform_0, window_bounds = array<i64: 1, 256, 64>}, {transform_indices = @transform_1, window_bounds = array<i64: 1, 64, 64>}, {transform_indices = @transform_2, window_bounds = array<i64: 1, 64, 64>}, {pipeline_mode = #tpu.pipeline_mode<synchronous>, transform_indices = @transform_3, window_bounds = array<i64: 64, 64>}, {pipeline_mode = #tpu.pipeline_mode<synchronous>, transform_indices = @transform_4, window_bounds = array<i64: 1, 64>}, {transform_indices = @transform_5, window_bounds = array<i64: 1, 256, 64>}]} {
    %c0 = arith.constant 0 : index
    %c0_0 = arith.constant 0 : index
    %c0_1 = arith.constant 0 : index
    %0 = vector.load %arg2[%c0, %c0_0, %c0_1] : memref<1x256x64xbf16, #tpu.memory_space<vmem>>, vector<1x256x64xbf16>
    %1 = vector.shape_cast %0 : vector<1x256x64xbf16> to vector<256x64xbf16>
    %c0_2 = arith.constant 0 : index
    %c0_3 = arith.constant 0 : index
    %c0_4 = arith.constant 0 : index
    %2 = vector.load %arg3[%c0_2, %c0_3, %c0_4] : memref<1x64x64xbf16, #tpu.memory_space<vmem>>, vector<1x64x64xbf16>
    %3 = vector.shape_cast %2 : vector<1x64x64xbf16> to vector<64x64xbf16>
    %c0_5 = arith.constant 0 : index
    %c0_6 = arith.constant 0 : index
    %c0_7 = arith.constant 0 : index
    %4 = vector.load %arg4[%c0_5, %c0_6, %c0_7] : memref<1x64x64xbf16, #tpu.memory_space<vmem>>, vector<1x64x64xbf16>
    %5 = vector.shape_cast %4 : vector<1x64x64xbf16> to vector<64x64xbf16>
    %cst = arith.constant 0.000000e+00 : f32
    %6 = vector.broadcast %cst : f32 to vector<256x64xf32>
    %7 = vector.extract_strided_slice %1 {offsets = [0, 0], sizes = [256, 32], strides = [1, 1]} : vector<256x64xbf16> to vector<256x32xbf16>
    %8 = vector.extract_strided_slice %3 {offsets = [0, 0], sizes = [64, 32], strides = [1, 1]} : vector<64x64xbf16> to vector<64x32xbf16>
    %9 = vector.extract_strided_slice %5 {offsets = [0, 0], sizes = [64, 32], strides = [1, 1]} : vector<64x64xbf16> to vector<64x32xbf16>
    %cst_8 = arith.constant dense<0.000000e+00> : vector<256x64xf32>
    %10 = tpu.matmul %7, %8, %cst_8 {dimension_numbers = #tpu.dot_dimension_numbers<[1], [1], [0], [0], [0, 0, 1, 0], [], []>} : vector<256x32xbf16>, vector<64x32xbf16>, vector<256x64xf32> -> vector<256x64xf32>
    %cst_9 = arith.constant dense<0xFF800000> : vector<256xf32>
    %11 = vector.multi_reduction <maximumf>, %10, %cst_9 [1] : vector<256x64xf32> to vector<256xf32>
    %12 = vector.shape_cast %11 : vector<256xf32> to vector<256x1xf32>
    %13 = vector.broadcast %12 : vector<256x1xf32> to vector<256x64xf32>
    %14 = arith.subf %10, %13 : vector<256x64xf32>
    %15 = math.exp %14 : vector<256x64xf32>
    %cst_10 = arith.constant dense<0.000000e+00> : vector<256xf32>
    %16 = vector.multi_reduction <add>, %15, %cst_10 [1] : vector<256x64xf32> to vector<256xf32>
    %17 = vector.shape_cast %16 : vector<256xf32> to vector<256x1xf32>
    %18 = arith.truncf %15 : vector<256x64xf32> to vector<256x64xbf16>
    %cst_11 = arith.constant dense<0.000000e+00> : vector<256x32xf32>
    %19 = tpu.matmul %18, %9, %cst_11 {dimension_numbers = #tpu.dot_dimension_numbers<[1], [0], [0], [1], [0, 0, 1, 1], [], []>} : vector<256x64xbf16>, vector<64x32xbf16>, vector<256x32xf32> -> vector<256x32xf32>
    %20 = tpu.reciprocal %17 {approx = true} : vector<256x1xf32> -> vector<256x1xf32>
    %21 = vector.broadcast %20 : vector<256x1xf32> to vector<256x32xf32>
    %22 = arith.mulf %19, %21 : vector<256x32xf32>
    %23 = arith.truncf %22 : vector<256x32xf32> to vector<256x32xbf16>
    %c0_12 = arith.constant 0 : index
    %c0_13 = arith.constant 0 : index
    %24 = vector.load %arg5[%c0_12, %c0_13] : memref<64x64xf32, #tpu.memory_space<vmem>>, vector<32x64xf32>
    %25 = arith.truncf %24 : vector<32x64xf32> to vector<32x64xbf16>
    %cst_14 = arith.constant dense<0.000000e+00> : vector<256x64xf32>
    %26 = tpu.matmul %23, %25, %cst_14 {dimension_numbers = #tpu.dot_dimension_numbers<[1], [0], [0], [1], [0, 0, 1, 1], [], []>} : vector<256x32xbf16>, vector<32x64xbf16>, vector<256x64xf32> -> vector<256x64xf32>
    %27 = arith.addf %6, %26 : vector<256x64xf32>
    %28 = vector.extract_strided_slice %1 {offsets = [0, 32], sizes = [256, 32], strides = [1, 1]} : vector<256x64xbf16> to vector<256x32xbf16>
    %29 = vector.extract_strided_slice %3 {offsets = [0, 32], sizes = [64, 32], strides = [1, 1]} : vector<64x64xbf16> to vector<64x32xbf16>
    %30 = vector.extract_strided_slice %5 {offsets = [0, 32], sizes = [64, 32], strides = [1, 1]} : vector<64x64xbf16> to vector<64x32xbf16>
    %cst_15 = arith.constant dense<0.000000e+00> : vector<256x64xf32>
    %31 = tpu.matmul %28, %29, %cst_15 {dimension_numbers = #tpu.dot_dimension_numbers<[1], [1], [0], [0], [0, 0, 1, 0], [], []>} : vector<256x32xbf16>, vector<64x32xbf16>, vector<256x64xf32> -> vector<256x64xf32>
    %cst_16 = arith.constant dense<0xFF800000> : vector<256xf32>
    %32 = vector.multi_reduction <maximumf>, %31, %cst_16 [1] : vector<256x64xf32> to vector<256xf32>
    %33 = vector.shape_cast %32 : vector<256xf32> to vector<256x1xf32>
    %34 = vector.broadcast %33 : vector<256x1xf32> to vector<256x64xf32>
    %35 = arith.subf %31, %34 : vector<256x64xf32>
    %36 = math.exp %35 : vector<256x64xf32>
    %cst_17 = arith.constant dense<0.000000e+00> : vector<256xf32>
    %37 = vector.multi_reduction <add>, %36, %cst_17 [1] : vector<256x64xf32> to vector<256xf32>
    %38 = vector.shape_cast %37 : vector<256xf32> to vector<256x1xf32>
    %39 = arith.truncf %36 : vector<256x64xf32> to vector<256x64xbf16>
    %cst_18 = arith.constant dense<0.000000e+00> : vector<256x32xf32>
    %40 = tpu.matmul %39, %30, %cst_18 {dimension_numbers = #tpu.dot_dimension_numbers<[1], [0], [0], [1], [0, 0, 1, 1], [], []>} : vector<256x64xbf16>, vector<64x32xbf16>, vector<256x32xf32> -> vector<256x32xf32>
    %41 = tpu.reciprocal %38 {approx = true} : vector<256x1xf32> -> vector<256x1xf32>
    %42 = vector.broadcast %41 : vector<256x1xf32> to vector<256x32xf32>
    %43 = arith.mulf %40, %42 : vector<256x32xf32>
    %44 = arith.truncf %43 : vector<256x32xf32> to vector<256x32xbf16>
    %c32 = arith.constant 32 : index
    %c0_19 = arith.constant 0 : index
    %45 = vector.load %arg5[%c32, %c0_19] : memref<64x64xf32, #tpu.memory_space<vmem>>, vector<32x64xf32>
    %46 = arith.truncf %45 : vector<32x64xf32> to vector<32x64xbf16>
    %cst_20 = arith.constant dense<0.000000e+00> : vector<256x64xf32>
    %47 = tpu.matmul %44, %46, %cst_20 {dimension_numbers = #tpu.dot_dimension_numbers<[1], [0], [0], [1], [0, 0, 1, 1], [], []>} : vector<256x32xbf16>, vector<32x64xbf16>, vector<256x64xf32> -> vector<256x64xf32>
    %48 = arith.addf %27, %47 : vector<256x64xf32>
    %c0_21 = arith.constant 0 : index
    %c0_22 = arith.constant 0 : index
    %49 = vector.load %arg6[%c0_21, %c0_22] : memref<1x64xf32, #tpu.memory_space<vmem>>, vector<1x64xf32>
    %50 = vector.broadcast %49 : vector<1x64xf32> to vector<256x64xf32>
    %51 = arith.addf %48, %50 : vector<256x64xf32>
    %c0_23 = arith.constant 0 : index
    %c0_24 = arith.constant 0 : index
    %c0_25 = arith.constant 0 : index
    %52 = vector.load %arg7[%c0_23, %c0_24, %c0_25] : memref<1x256x64xf32, #tpu.memory_space<vmem>>, vector<1x256x64xf32>
    %53 = vector.shape_cast %52 : vector<1x256x64xf32> to vector<256x64xf32>
    %54 = vector.shape_cast %51 : vector<256x64xf32> to vector<1x256x64xf32>
    tpu.vector_store %arg7[%c0_23, %c0_24, %c0_25], %54 {strides = array<i32>} : memref<1x256x64xf32, #tpu.memory_space<vmem>>, vector<1x256x64xf32>,
    return
  }
  func.func @transform_0(%arg0: i32, %arg1: i32) -> (i32, i32, i32) {
    %c0_i32 = arith.constant 0 : i32
    %c0_i32_0 = arith.constant 0 : i32
    return %arg0, %arg1, %c0_i32 : i32, i32, i32
  }
  func.func @transform_1(%arg0: i32, %arg1: i32) -> (i32, i32, i32) {
    %c0_i32 = arith.constant 0 : i32
    %c0_i32_0 = arith.constant 0 : i32
    %c0_i32_1 = arith.constant 0 : i32
    return %arg0, %c0_i32, %c0_i32_0 : i32, i32, i32
  }
  func.func @transform_2(%arg0: i32, %arg1: i32) -> (i32, i32, i32) {
    %c0_i32 = arith.constant 0 : i32
    %c0_i32_0 = arith.constant 0 : i32
    %c0_i32_1 = arith.constant 0 : i32
    return %arg0, %c0_i32, %c0_i32_0 : i32, i32, i32
  }
  func.func @transform_3(%arg0: i32, %arg1: i32) -> (i32, i32) {
    %c0_i32 = arith.constant 0 : i32
    %c0_i32_0 = arith.constant 0 : i32
    %c0_i32_1 = arith.constant 0 : i32
    return %c0_i32, %c0_i32_0 : i32, i32
  }
  func.func @transform_4(%arg0: i32, %arg1: i32) -> (i32, i32) {
    %c0_i32 = arith.constant 0 : i32
    %c0_i32_0 = arith.constant 0 : i32
    %c0_i32_1 = arith.constant 0 : i32
    return %c0_i32, %c0_i32_0 : i32, i32
  }
  func.func @transform_5(%arg0: i32, %arg1: i32) -> (i32, i32, i32) {
    %c0_i32 = arith.constant 0 : i32
    %c0_i32_0 = arith.constant 0 : i32
    return %arg0, %arg1, %c0_i32 : i32, i32, i32
  }
}

</mosaic_0001>

<bundles_post_ra>
// kernel: fwd.4
= control target key start
LH: loop header
LB: loop body
LE: loop exit
PB: predicated region body
PF: predicated region fallthrough
CT: control target
= control target key end

     0   :  { %s1132_s15 = smov 0   ;;  %s1134_s16 = smov 0   ;;  %s1442_s0 = inlined_call_operand.vmem [shape: f32[2,256,64], index: 0, kind: input, shape index: {}]   ;;  %s1443_s1 = inlined_call_operand.vmem [shape: f32[256,64], index: 1, kind: input, shape index: {}]   ;;  %s1444_s2 = inlined_call_operand.vmem [shape: f32[64,64], index: 2, kind: input, shape index: {}]   ;;  %s1445_s3 = inlined_call_operand.vmem [shape: f32[1,64], index: 3, kind: input, shape index: {}]   ;;  %s1446_s4 = inlined_call_operand.vmem [shape: bf16[2,256,64], index: 4, kind: output, shape index: {}]  }
   0x1   :  { %s1136_s17 = smov 0  }
   0x2 LB: > { %s26_s18 = sadd.s32 1, %s1101_s16  ;;  %p901_p0 = scmp.ge.s32.totalorder %s1105_s17, 1  ;;  %s1105_s17 = sphi %s1136_s17, %s14_s17   ;;  %s1101_s16 = sphi %s1134_s16, %s1448_s16   ;;  %s1097_s15 = sphi %s1132_s15, %s1447_s15  }
   0x3   : > { %p28_p1 = scmp.ge.s32.totalorder %s26_s18, 2  ;;  %p194_p2 = scmp.lt.s32.totalorder %s1105_s17, 3 }
   0x5   : > { %s1450_s18 = smov (%p28_p1, %s26_s18), 0  ;;  %p195_p3 = pnand %p901_p0, %p194_p2 }
   0x6   : > { %p234_p4 = scmp.lt.s32.totalorder (!%p195_p3), %s1097_s15, 1 }
   0x7   : > { %198 = sbr.rel (%p195_p3) target bundleno = 262 (0x106), region = 36 }
   0xc   : > { %v378_v0 = vld [vmem:[%s1444_s2 + $0x30] sm:$0xff]  ;;  %v379_v1 = vld [vmem:[%s1444_s2 + $0x38] sm:$0xff]  ;;  %v376_v2 = vld [vmem:[%s1444_s2 + $0x20] sm:$0xff]  ;;  %s1452_s15 = smov (!%p234_p4, %s1097_s15), 1  ;;  %vm391_vm0 = vcmask 523264   ;;  %vm761_vm1 = vcmask 519168  }
   0xd   : > { %v383_v3 = vpack.c.bf16 %v379_v1, %v378_v0  ;;  %v377_v4 = vld [vmem:[%s1444_s2 + $0x28] sm:$0xff]  ;;  %v374_v6 = vld [vmem:[%s1444_s2 + $0x10] sm:$0xff]  ;;  %v375_v7 = vld [vmem:[%s1444_s2 + $0x18] sm:$0xff]  ;;  %s957_s7 = sshll.u32 %s1452_s15, 8  ;;  %s958_s14 = sshll.u32 %s1452_s15, 7 }
   0xe   : > { %v382_v5 = vpack.c.bf16 %v377_v4, %v376_v2  ;;  %v372_v8 = vld [vmem:[%s1444_s2] sm:$0xff]  ;;  %v293_v10 = vld [vmem:[%s1443_s1 + $0x8] sm:$0xff]  ;;  %v381_v12 = vpack.c.bf16 %v375_v7, %v374_v6  ;;  %s1189_s22 = scalar_lea.vmem %s1442_s0, %s957_s7  ;;  %v294_v15 = vld [vmem:[%s1443_s1 + $0x10] sm:$0xff]  ;;  %s1339_s21 = scalar_lea.vmem %s1446_s4, %s958_s14 }
   0xf   : > { %1011 = vmatprep.subr.bf16.mxu0 %v383_v3  ;;  %1051 = vmatprep.subr.bf16.mxu1 %v383_v3  ;;  %v292_v9 = vld [vmem:[%s1443_s1] sm:$0xff]  ;;  %v373_v13 = vld [vmem:[%s1444_s2 + $0x8] sm:$0xff]  ;;  %v295_v19 = vld [vmem:[%s1443_s1 + $0x18] sm:$0xff] }
  0x10   : > { %1012 = vmatpush3.bf16.msra.mxu0 %v383_v3  ;;  %1055 = vmatpush3.bf16.msra.mxu1 %v383_v3  ;;  %v308_v11 = vld [vmem:[%s1443_s1 + $0x80] sm:$0xff]  ;;  %v309_v14 = vld [vmem:[%s1443_s1 + $0x88] sm:$0xff]  ;;  %v310_v20 = vld [vmem:[%s1443_s1 + $0x90] sm:$0xff]  ;;  %v380_v34 = vpack.c.bf16 %v373_v13, %v372_v8 }
  0x11   : > { %1013 = vmatprep.subr.bf16.mxu0 %v382_v5  ;;  %1052 = vmatprep.subr.bf16.mxu1 %v382_v5  ;;  %v260_v16 = vld [vmem:[%s1189_s22] sm:$0xff]  ;;  %v261_v17 = vld [vmem:[%s1189_s22 + $0x8] sm:$0xff]  ;;  %v311_v21 = vld [vmem:[%s1443_s1 + $0x98] sm:$0xff] }
  0x12   : > { %v276_v18 = vld [vmem:[%s1189_s22 + $0x80] sm:$0xff]  ;;  %v324_v23 = vadd.f32 %v292_v9, %v260_v16  ;;  %v325_v24 = vadd.f32 %v293_v10, %v261_v17  ;;  %v277_v25 = vld [vmem:[%s1189_s22 + $0x88] sm:$0xff]  ;;  %v262_v27 = vld [vmem:[%s1189_s22 + $0x10] sm:$0xff] }
  0x13   : > { %v296_v22 = vld [vmem:[%s1443_s1 + $0x20] sm:$0xff]  ;;  %v340_v26 = vadd.f32 %v308_v11, %v276_v18  ;;  %v263_v28 = vld [vmem:[%s1189_s22 + $0x18] sm:$0xff]  ;;  %v297_v29 = vld [vmem:[%s1443_s1 + $0x28] sm:$0xff]  ;;  %v341_v30 = vadd.f32 %v309_v14, %v277_v25  ;;  %v326_v40 = vadd.f32 %v294_v15, %v262_v27 }
  0x14   : > { %1014 = vmatpush3.bf16.msra.mxu0 %v382_v5  ;;  %1056 = vmatpush3.bf16.msra.mxu1 %v382_v5  ;;  %v278_v31 = vld [vmem:[%s1189_s22 + $0x90] sm:$0xff]  ;;  %v279_v32 = vld [vmem:[%s1189_s22 + $0x98] sm:$0xff]  ;;  %v264_v33 = vld [vmem:[%s1189_s22 + $0x20] sm:$0xff]  ;;  %v356_v35 = vpack.c.bf16 %v325_v24, %v324_v23  ;;  %v327_v43 = vadd.f32 %v295_v19, %v263_v28 }
  0x15   : > { %1015 = vmatprep.subr.bf16.mxu0 %v381_v12  ;;  %1053 = vmatprep.subr.bf16.mxu1 %v381_v12  ;;  %v265_v36 = vld [vmem:[%s1189_s22 + $0x28] sm:$0xff]  ;;  %v280_v37 = vld [vmem:[%s1189_s22 + $0xa0] sm:$0xff]  ;;  %v364_v39 = vpack.c.bf16 %v341_v30, %v340_v26  ;;  %v342_v44 = vadd.f32 %v310_v20, %v278_v31  ;;  %v343_v45 = vadd.f32 %v311_v21, %v279_v32  ;;  %v266_v50 = vld [vmem:[%s1189_s22 + $0x30] sm:$0xff] }
  0x16   : > { %v281_v38 = vld [vmem:[%s1189_s22 + $0xa8] sm:$0xff]  ;;  %v312_v41 = vld [vmem:[%s1443_s1 + $0xa0] sm:$0xff]  ;;  %1019 = vmatprep.mubr.msk.bf16.mxu0 %vm391_vm0, %v356_v35  ;;  %v328_v46 = vadd.f32 %v296_v22, %v264_v33  ;;  %v329_v47 = vadd.f32 %v297_v29, %v265_v36  ;;  %v267_v51 = vld [vmem:[%s1189_s22 + $0x38] sm:$0xff]  ;;  %v357_v57 = vpack.c.bf16 %v327_v43, %v326_v40 }
  0x17   : > { %v313_v42 = vld [vmem:[%s1443_s1 + $0xa8] sm:$0xff]  ;;  %v344_v48 = vadd.f32 %v312_v41, %v280_v37  ;;  %v298_v52 = vld [vmem:[%s1443_s1 + $0x30] sm:$0xff]  ;;  %v299_v53 = vld [vmem:[%s1443_s1 + $0x38] sm:$0xff]  ;;  %1035 = vmatprep.mubr.msk.bf16.mxu1 %vm391_vm0, %v364_v39  ;;  %v365_v58 = vpack.c.bf16 %v343_v45, %v342_v44 }
  0x18   : > { %1016 = vmatpush3.bf16.msra.mxu0 %v381_v12  ;;  %1057 = vmatpush3.bf16.msra.mxu1 %v381_v12  ;;  %v345_v49 = vadd.f32 %v313_v42, %v281_v38  ;;  %v282_v54 = vld [vmem:[%s1189_s22 + $0xb0] sm:$0xff]  ;;  %v283_v55 = vld [vmem:[%s1189_s22 + $0xb8] sm:$0xff]  ;;  %v268_v60 = vld [vmem:[%s1189_s22 + $0x40] sm:$0xff]  ;;  %v358_v62 = vpack.c.bf16 %v329_v47, %v328_v46  ;;  %v330_v6 = vadd.f32 %v298_v52, %v266_v50 }
  0x19   : > { %1017 = vmatprep.subr.bf16.mxu0 %v380_v34  ;;  %1054 = vmatprep.subr.bf16.mxu1 %v380_v34  ;;  %v314_v56 = vld [vmem:[%s1443_s1 + $0xb0] sm:$0xff]  ;;  %v315_v59 = vld [vmem:[%s1443_s1 + $0xb8] sm:$0xff]  ;;  %v269_v61 = vld [vmem:[%s1189_s22 + $0x48] sm:$0xff]  ;;  %v331_v7 = vadd.f32 %v299_v53, %v267_v51 }
  0x1a   : > { %v366_v63 = vpack.c.bf16 %v345_v49, %v344_v48  ;;  %v300_v0 = vld [vmem:[%s1443_s1 + $0x40] sm:$0xff]  ;;  %v301_v1 = vld [vmem:[%s1443_s1 + $0x48] sm:$0xff]  ;;  %v346_v8 = vadd.f32 %v314_v56, %v282_v54  ;;  %v347_v9 = vadd.f32 %v315_v59, %v283_v55  ;;  %v270_v14 = vld [vmem:[%s1189_s22 + $0x50] sm:$0xff] }
  0x1b   : > { %v284_v2 = vld [vmem:[%s1189_s22 + $0xc0] sm:$0xff]  ;;  %v285_v3 = vld [vmem:[%s1189_s22 + $0xc8] sm:$0xff]  ;;  %v332_v10 = vadd.f32 %v300_v0, %v268_v60  ;;  %v333_v11 = vadd.f32 %v301_v1, %v269_v61  ;;  %v271_v15 = vld [vmem:[%s1189_s22 + $0x58] sm:$0xff]  ;;  %v359_v21 = vpack.c.bf16 %v331_v7, %v330_v6 }
  0x1c   : > { %1018 = vmatpush3.bf16.msra.mxu0 %v380_v34  ;;  %1058 = vmatpush3.bf16.msra.mxu1 %v380_v34  ;;  %v316_v4 = vld [vmem:[%s1443_s1 + $0xc0] sm:$0xff]  ;;  %v317_v5 = vld [vmem:[%s1443_s1 + $0xc8] sm:$0xff]  ;;  %v302_v16 = vld [vmem:[%s1443_s1 + $0x50] sm:$0xff]  ;;  %v367_v22 = vpack.c.bf16 %v347_v9, %v346_v8 }
  0x1d   : > { %v348_v12 = vadd.f32 %v316_v4, %v284_v2  ;;  %v349_v13 = vadd.f32 %v317_v5, %v285_v3  ;;  %v303_v17 = vld [vmem:[%s1443_s1 + $0x58] sm:$0xff]  ;;  %v286_v18 = vld [vmem:[%s1189_s22 + $0xd0] sm:$0xff]  ;;  %v272_v24 = vld [vmem:[%s1189_s22 + $0x60] sm:$0xff]  ;;  %v360_v26 = vpack.c.bf16 %v333_v11, %v332_v10  ;;  %v334_v34 = vadd.f32 %v302_v16, %v270_v14 }
  0x1e   : > { %v287_v19 = vld [vmem:[%s1189_s22 + $0xd8] sm:$0xff]  ;;  %v318_v20 = vld [vmem:[%s1443_s1 + $0xd0] sm:$0xff]  ;;  %v273_v25 = vld [vmem:[%s1189_s22 + $0x68] sm:$0xff]  ;;  %v335_v35 = vadd.f32 %v303_v17, %v271_v15 }
  0x1f   : > { %1020 = vmatmul.mubr.msk.bf16.vlgmr.msra.gmra.mxu0 %vm391_vm0, %v357_v57  ;;  %1036 = vmatmul.mubr.msk.bf16.vlgmr.msra.gmra.mxu1 %vm391_vm0, %v365_v58  ;;  %v319_v23 = vld [vmem:[%s1443_s1 + $0xd8] sm:$0xff]  ;;  %v368_v27 = vpack.c.bf16 %v349_v13, %v348_v12  ;;  %v304_v28 = vld [vmem:[%s1443_s1 + $0x60] sm:$0xff]  ;;  %v305_v29 = vld [vmem:[%s1443_s1 + $0x68] sm:$0xff]  ;;  %v350_v36 = vadd.f32 %v318_v20, %v286_v18 }
  0x20   : > { %1023 = vmatprep.mubr.msk.bf16.mxu0 %vm391_vm0, %v358_v62  ;;  %1039 = vmatprep.mubr.msk.bf16.mxu1 %vm391_vm0, %v366_v63  ;;  %v288_v30 = vld [vmem:[%s1189_s22 + $0xe0] sm:$0xff]  ;;  %v289_v31 = vld [vmem:[%s1189_s22 + $0xe8] sm:$0xff]  ;;  %v351_v37 = vadd.f32 %v319_v23, %v287_v19  ;;  %v336_v38 = vadd.f32 %v304_v28, %v272_v24  ;;  %v337_v39 = vadd.f32 %v305_v29, %v273_v25  ;;  %v274_v42 = vld [vmem:[%s1189_s22 + $0x70] sm:$0xff] }
  0x21   : > { %v320_v32 = vld [vmem:[%s1443_s1 + $0xe0] sm:$0xff]  ;;  %v321_v33 = vld [vmem:[%s1443_s1 + $0xe8] sm:$0xff]  ;;  %v275_v43 = vld [vmem:[%s1189_s22 + $0x78] sm:$0xff]  ;;  %v361_v44 = vpack.c.bf16 %v335_v35, %v334_v34 }
  0x22   : > { %v352_v40 = vadd.f32 %v320_v32, %v288_v30  ;;  %v353_v41 = vadd.f32 %v321_v33, %v289_v31  ;;  %v369_v45 = vpack.c.bf16 %v351_v37, %v350_v36  ;;  %v306_v46 = vld [vmem:[%s1443_s1 + $0x70] sm:$0xff]  ;;  %v307_v47 = vld [vmem:[%s1443_s1 + $0x78] sm:$0xff]  ;;  %v362_v49 = vpack.c.bf16 %v337_v39, %v336_v38  ;;  %v1329_v60 = vld [vmem:[%s1445_s3] ss:$0 sm:$0xff] }
  0x23   : > { %v290_v48 = vld [vmem:[%s1189_s22 + $0xf0] sm:$0xff]  ;;  %v291_v51 = vld [vmem:[%s1189_s22 + $0xf8] sm:$0xff]  ;;  %v338_v54 = vadd.f32 %v306_v46, %v274_v42  ;;  %v339_v55 = vadd.f32 %v307_v47, %v275_v43 }
  0x24   : > { %v370_v50 = vpack.c.bf16 %v353_v41, %v352_v40  ;;  %v322_v52 = vld [vmem:[%s1443_s1 + $0xf0] sm:$0xff]  ;;  %v323_v53 = vld [vmem:[%s1443_s1 + $0xf8] sm:$0xff] }
  0x25   : > { %v354_v56 = vadd.f32 %v322_v52, %v290_v48  ;;  %v355_v57 = vadd.f32 %v323_v53, %v291_v51  ;;  %v363_v58 = vpack.c.bf16 %v339_v55, %v338_v54 }
  0x27   : > { %1024 = vmatmul.mubr.msk.bf16.gmra.mxu0 %vm391_vm0, %v359_v21  ;;  %1040 = vmatmul.mubr.msk.bf16.gmra.mxu1 %vm391_vm0, %v367_v22  ;;  %v371_v59 = vpack.c.bf16 %v355_v57, %v354_v56 }
  0x28   : > { %1027 = vmatprep.mubr.msk.bf16.mxu0 %vm391_vm0, %v360_v26  ;;  %1043 = vmatprep.mubr.msk.bf16.mxu1 %vm391_vm0, %v368_v27 }
  0x2f   : > { %1028 = vmatmul.mubr.msk.bf16.gmra.mxu0 %vm391_vm0, %v361_v44  ;;  %1044 = vmatmul.mubr.msk.bf16.gmra.mxu1 %vm391_vm0, %v369_v45 }
  0x30   : > { %1031 = vmatprep.mubr.msk.bf16.mxu0 %vm391_vm0, %v362_v49  ;;  %1047 = vmatprep.mubr.msk.bf16.mxu1 %vm391_vm0, %v370_v50 }
  0x37   : > { %1032 = vmatmul.mubr.msk.bf16.gmra.mxu0 %vm391_vm0, %v363_v58  ;;  %1048 = vmatmul.mubr.msk.bf16.gmra.mxu1 %vm391_vm0, %v371_v59 }
  0xdf   : > { %v1021_v61 = vpop.f32.mrf.mxu0  ;;  %v1037_v62 = vpop.f32.mrf.mxu1 }
  0xe0   : > { %v483_v63 = vadd.f32 %v1021_v61, %v1329_v60  ;;  %v547_v0 = vadd.f32 %v1037_v62, %v1329_v60 }
  0xe1   : > { %v474_v1 = vpop.f32.mrf.mxu0  ;;  %v538_v2 = vpop.f32.mrf.mxu1 }
  0xe2   : > { %v603_v3 = vmul.f32 0.17677669, %v483_v63  ;;  %v619_v4 = vmul.f32 0.17677669, %v547_v0  ;;  %v475_v5 = vadd.f32 %v1329_v60, %v474_v1  ;;  %v539_v6 = vadd.f32 %v1329_v60, %v538_v2 }
  0xe3   : > { %v1022_v7 = vpop.f32.mrf.mxu0  ;;  %v1038_v8 = vpop.f32.mrf.mxu1 }
  0xe4   : > { %v961_v9 = vpack.c.bf16 %v603_v3, %v603_v3  ;;  %v977_v10 = vpack.c.bf16 %v619_v4, %v619_v4  ;;  %v601_v11 = vmul.f32 0.17677669, %v475_v5  ;;  %v617_v12 = vmul.f32 0.17677669, %v539_v6 }
  0xe5   : > { %v486_v13 = vadd.f32 %v1022_v7, %v1329_v60  ;;  %v550_v14 = vadd.f32 %v1038_v8, %v1329_v60  ;;  %v477_v15 = vpop.f32.mrf.mxu0  ;;  %v541_v16 = vpop.f32.mrf.mxu1 }
  0xe6   : > { %764 = vst.msk [vmem:[%s1339_s21 + $0x8] sm:$0xf] %vm761_vm1, %v961_v9  ;;  %780 = vst.msk [vmem:[%s1339_s21 + $0x48] sm:$0xf] %vm761_vm1, %v977_v10  ;;  %v959_v17 = vpack.c.bf16 %v601_v11, %v601_v11  ;;  %v975_v18 = vpack.c.bf16 %v617_v12, %v617_v12  ;;  %v478_v19 = vadd.f32 %v1329_v60, %v477_v15 }
  0xe7   : > { %v542_v20 = vadd.f32 %v1329_v60, %v541_v16  ;;  %v604_v21 = vmul.f32 0.17677669, %v486_v13  ;;  %v620_v22 = vmul.f32 0.17677669, %v550_v14  ;;  %v1025_v23 = vpop.f32.mrf.mxu0  ;;  %v1041_v24 = vpop.f32.mrf.mxu1 }
  0xe8   : > { %762 = vst.msk [vmem:[%s1339_s21] sm:$0xf] %vm761_vm1, %v959_v17  ;;  %778 = vst.msk [vmem:[%s1339_s21 + $0x40] sm:$0xf] %vm761_vm1, %v975_v18  ;;  %v602_v25 = vmul.f32 0.17677669, %v478_v19  ;;  %v499_v27 = vadd.f32 %v1025_v23, %v1329_v60  ;;  %v563_v28 = vadd.f32 %v1041_v24, %v1329_v60 }
  0xe9   : > { %v618_v26 = vmul.f32 0.17677669, %v542_v20  ;;  %v962_v29 = vpack.c.bf16 %v604_v21, %v604_v21  ;;  %v978_v30 = vpack.c.bf16 %v620_v22, %v620_v22  ;;  %v490_v31 = vpop.f32.mrf.mxu0  ;;  %v554_v32 = vpop.f32.mrf.mxu1 }
  0xea   : > { %v960_v33 = vpack.c.bf16 %v602_v25, %v602_v25  ;;  %v607_v35 = vmul.f32 0.17677669, %v499_v27  ;;  %v623_v36 = vmul.f32 0.17677669, %v563_v28  ;;  %v491_v37 = vadd.f32 %v1329_v60, %v490_v31 }
  0xeb   : > { %v976_v34 = vpack.c.bf16 %v618_v26, %v618_v26  ;;  %765 = vst.msk [vmem:[%s1339_s21 + $0xc] sm:$0xf] %vm761_vm1, %v962_v29  ;;  %781 = vst.msk [vmem:[%s1339_s21 + $0x4c] sm:$0xf] %vm761_vm1, %v978_v30  ;;  %v555_v38 = vadd.f32 %v1329_v60, %v554_v32  ;;  %v1026_v39 = vpop.f32.mrf.mxu0  ;;  %v1042_v40 = vpop.f32.mrf.mxu1 }
  0xec   : > { %763 = vst.msk [vmem:[%s1339_s21 + $0x4] sm:$0xf] %vm761_vm1, %v960_v33  ;;  %v965_v41 = vpack.c.bf16 %v607_v35, %v607_v35  ;;  %v981_v42 = vpack.c.bf16 %v623_v36, %v623_v36  ;;  %v502_v43 = vadd.f32 %v1026_v39, %v1329_v60  ;;  %v566_v44 = vadd.f32 %v1042_v40, %v1329_v60 }
  0xed   : > { %779 = vst.msk [vmem:[%s1339_s21 + $0x44] sm:$0xf] %vm761_vm1, %v976_v34  ;;  %v605_v45 = vmul.f32 0.17677669, %v491_v37  ;;  %v621_v46 = vmul.f32 0.17677669, %v555_v38  ;;  %v493_v47 = vpop.f32.mrf.mxu0  ;;  %v557_v48 = vpop.f32.mrf.mxu1 }
  0xee   : > { %768 = vst.msk [vmem:[%s1339_s21 + $0x18] sm:$0xf] %vm761_vm1, %v965_v41  ;;  %784 = vst.msk [vmem:[%s1339_s21 + $0x58] sm:$0xf] %vm761_vm1, %v981_v42  ;;  %v608_v49 = vmul.f32 0.17677669, %v502_v43  ;;  %v494_v51 = vadd.f32 %v1329_v60, %v493_v47  ;;  %v558_v52 = vadd.f32 %v1329_v60, %v557_v48 }
  0xef   : > { %v624_v50 = vmul.f32 0.17677669, %v566_v44  ;;  %v963_v53 = vpack.c.bf16 %v605_v45, %v605_v45  ;;  %v979_v54 = vpack.c.bf16 %v621_v46, %v621_v46  ;;  %v1029_v55 = vpop.f32.mrf.mxu0  ;;  %v1045_v56 = vpop.f32.mrf.mxu1 }
  0xf0   : > { %v966_v57 = vpack.c.bf16 %v608_v49, %v608_v49  ;;  %v606_v59 = vmul.f32 0.17677669, %v494_v51  ;;  %v622_v61 = vmul.f32 0.17677669, %v558_v52  ;;  %v515_v62 = vadd.f32 %v1029_v55, %v1329_v60 }
  0xf1   : > { %v982_v58 = vpack.c.bf16 %v624_v50, %v624_v50  ;;  %766 = vst.msk [vmem:[%s1339_s21 + $0x10] sm:$0xf] %vm761_vm1, %v963_v53  ;;  %782 = vst.msk [vmem:[%s1339_s21 + $0x50] sm:$0xf] %vm761_vm1, %v979_v54  ;;  %v579_v63 = vadd.f32 %v1045_v56, %v1329_v60  ;;  %v506_v0 = vpop.f32.mrf.mxu0  ;;  %v570_v1 = vpop.f32.mrf.mxu1 }
  0xf2   : > { %769 = vst.msk [vmem:[%s1339_s21 + $0x1c] sm:$0xf] %vm761_vm1, %v966_v57  ;;  %v964_v2 = vpack.c.bf16 %v606_v59, %v606_v59  ;;  %v980_v3 = vpack.c.bf16 %v622_v61, %v622_v61  ;;  %v507_v4 = vadd.f32 %v1329_v60, %v506_v0  ;;  %v571_v5 = vadd.f32 %v1329_v60, %v570_v1 }
  0xf3   : > { %785 = vst.msk [vmem:[%s1339_s21 + $0x5c] sm:$0xf] %vm761_vm1, %v982_v58  ;;  %v611_v6 = vmul.f32 0.17677669, %v515_v62  ;;  %v627_v7 = vmul.f32 0.17677669, %v579_v63  ;;  %v1030_v8 = vpop.f32.mrf.mxu0  ;;  %v1046_v9 = vpop.f32.mrf.mxu1 }
  0xf4   : > { %767 = vst.msk [vmem:[%s1339_s21 + $0x14] sm:$0xf] %vm761_vm1, %v964_v2  ;;  %783 = vst.msk [vmem:[%s1339_s21 + $0x54] sm:$0xf] %vm761_vm1, %v980_v3  ;;  %v609_v10 = vmul.f32 0.17677669, %v507_v4  ;;  %v518_v12 = vadd.f32 %v1030_v8, %v1329_v60  ;;  %v582_v13 = vadd.f32 %v1046_v9, %v1329_v60 }
  0xf5   : > { %v625_v11 = vmul.f32 0.17677669, %v571_v5  ;;  %v969_v14 = vpack.c.bf16 %v611_v6, %v611_v6  ;;  %v985_v15 = vpack.c.bf16 %v627_v7, %v627_v7  ;;  %v509_v16 = vpop.f32.mrf.mxu0  ;;  %v573_v17 = vpop.f32.mrf.mxu1 }
  0xf6   : > { %v967_v18 = vpack.c.bf16 %v609_v10, %v609_v10  ;;  %v612_v20 = vmul.f32 0.17677669, %v518_v12  ;;  %v628_v21 = vmul.f32 0.17677669, %v582_v13  ;;  %v510_v22 = vadd.f32 %v1329_v60, %v509_v16 }
  0xf7   : > { %v983_v19 = vpack.c.bf16 %v625_v11, %v625_v11  ;;  %772 = vst.msk [vmem:[%s1339_s21 + $0x28] sm:$0xf] %vm761_vm1, %v969_v14  ;;  %788 = vst.msk [vmem:[%s1339_s21 + $0x68] sm:$0xf] %vm761_vm1, %v985_v15  ;;  %v574_v23 = vadd.f32 %v1329_v60, %v573_v17  ;;  %v1033_v24 = vpop.f32.mrf.mxu0  ;;  %v1049_v25 = vpop.f32.mrf.mxu1 }
  0xf8   : > { %770 = vst.msk [vmem:[%s1339_s21 + $0x20] sm:$0xf] %vm761_vm1, %v967_v18  ;;  %v970_v26 = vpack.c.bf16 %v612_v20, %v612_v20  ;;  %v986_v27 = vpack.c.bf16 %v628_v21, %v628_v21  ;;  %v531_v28 = vadd.f32 %v1033_v24, %v1329_v60  ;;  %v595_v29 = vadd.f32 %v1049_v25, %v1329_v60 }
  0xf9   : > { %786 = vst.msk [vmem:[%s1339_s21 + $0x60] sm:$0xf] %vm761_vm1, %v983_v19  ;;  %v610_v30 = vmul.f32 0.17677669, %v510_v22  ;;  %v626_v31 = vmul.f32 0.17677669, %v574_v23  ;;  %v522_v32 = vpop.f32.mrf.mxu0  ;;  %v586_v33 = vpop.f32.mrf.mxu1 }
  0xfa   : > { %773 = vst.msk [vmem:[%s1339_s21 + $0x2c] sm:$0xf] %vm761_vm1, %v970_v26  ;;  %789 = vst.msk [vmem:[%s1339_s21 + $0x6c] sm:$0xf] %vm761_vm1, %v986_v27  ;;  %v615_v34 = vmul.f32 0.17677669, %v531_v28  ;;  %v523_v36 = vadd.f32 %v1329_v60, %v522_v32  ;;  %v587_v37 = vadd.f32 %v1329_v60, %v586_v33 }
  0xfb   : > { %v631_v35 = vmul.f32 0.17677669, %v595_v29  ;;  %v968_v38 = vpack.c.bf16 %v610_v30, %v610_v30  ;;  %v984_v39 = vpack.c.bf16 %v626_v31, %v626_v31  ;;  %v1034_v40 = vpop.f32.mrf.mxu0  ;;  %v1050_v41 = vpop.f32.mrf.mxu1 }
  0xfc   : > { %v973_v42 = vpack.c.bf16 %v615_v34, %v615_v34  ;;  %v613_v44 = vmul.f32 0.17677669, %v523_v36  ;;  %v629_v45 = vmul.f32 0.17677669, %v587_v37  ;;  %v534_v46 = vadd.f32 %v1034_v40, %v1329_v60 }
  0xfd   : > { %v989_v43 = vpack.c.bf16 %v631_v35, %v631_v35  ;;  %771 = vst.msk [vmem:[%s1339_s21 + $0x24] sm:$0xf] %vm761_vm1, %v968_v38  ;;  %787 = vst.msk [vmem:[%s1339_s21 + $0x64] sm:$0xf] %vm761_vm1, %v984_v39  ;;  %v598_v47 = vadd.f32 %v1050_v41, %v1329_v60  ;;  %v525_v48 = vpop.f32.mrf.mxu0  ;;  %v589_v49 = vpop.f32.mrf.mxu1 }
  0xfe   : > { %776 = vst.msk [vmem:[%s1339_s21 + $0x38] sm:$0xf] %vm761_vm1, %v973_v42  ;;  %v971_v50 = vpack.c.bf16 %v613_v44, %v613_v44  ;;  %v987_v51 = vpack.c.bf16 %v629_v45, %v629_v45  ;;  %v526_v52 = vadd.f32 %v1329_v60, %v525_v48  ;;  %v590_v53 = vadd.f32 %v1329_v60, %v589_v49 }
  0xff   : > { %792 = vst.msk [vmem:[%s1339_s21 + $0x78] sm:$0xf] %vm761_vm1, %v989_v43  ;;  %v616_v54 = vmul.f32 0.17677669, %v534_v46  ;;  %v632_v55 = vmul.f32 0.17677669, %v598_v47 }
 0x100   : > { %774 = vst.msk [vmem:[%s1339_s21 + $0x30] sm:$0xf] %vm761_vm1, %v971_v50  ;;  %790 = vst.msk [vmem:[%s1339_s21 + $0x70] sm:$0xf] %vm761_vm1, %v987_v51  ;;  %v614_v56 = vmul.f32 0.17677669, %v526_v52 }
 0x101   : > { %v630_v57 = vmul.f32 0.17677669, %v590_v53  ;;  %v974_v58 = vpack.c.bf16 %v616_v54, %v616_v54  ;;  %v990_v59 = vpack.c.bf16 %v632_v55, %v632_v55 }
 0x102   : > { %v972_v61 = vpack.c.bf16 %v614_v56, %v614_v56 }
 0x103   : > { %v988_v62 = vpack.c.bf16 %v630_v57, %v630_v57  ;;  %777 = vst.msk [vmem:[%s1339_s21 + $0x3c] sm:$0xf] %vm761_vm1, %v974_v58  ;;  %793 = vst.msk [vmem:[%s1339_s21 + $0x7c] sm:$0xf] %vm761_vm1, %v990_v59 }
 0x104   : > { %775 = vst.msk [vmem:[%s1339_s21 + $0x34] sm:$0xf] %vm761_vm1, %v972_v61 }
 0x105   : > { %791 = vst.msk [vmem:[%s1339_s21 + $0x74] sm:$0xf] %vm761_vm1, %v988_v62 }
 0x106 PF: > { %s14_s17 = sadd.s32 1, %s1105_s17   ;;  %s1447_s15 = smov %s1101_s16 }
 0x107   : > { %p11_p5 = scmp.ge.s32.totalorder %s14_s17, 4   ;;  %s1448_s16 = smov %s1450_s18 }
 0x109   :  { %13 = sbr.rel (!%p11_p5) target bundleno = 2 (0x2), region = 69 }

// kernel: fwd.5
= control target key start
LH: loop header
LB: loop body
LE: loop exit
PB: predicated region body
PF: predicated region fallthrough
CT: control target
= control target key end

     0   :  { %vm221_vm0 = vcmask 523264   ;;  %vm541_vm1 = vcmask 519168   ;;  %s1234_s1 = inlined_call_operand.vmem [shape: f32[256,64], index: 1, kind: input, shape index: {}]   ;;  %s1235_s0 = inlined_call_operand.vmem [shape: f32[128,256], index: 0, kind: input, shape index: {}]   ;;  %s1236_s2 = inlined_call_operand.vmem [shape: f32[1,64], index: 2, kind: input, shape index: {}]   ;;  %s1237_s3 = inlined_call_operand.vmem [shape: f32[1,64], index: 3, kind: input, shape index: {}]   ;;  %s1238_s4 = inlined_call_operand.vmem [shape: f32[1,64], index: 4, kind: input, shape index: {}]   ;;  %s1239_s5 = inlined_call_operand.vmem [shape: bf16[128,64], index: 5, kind: output, shape index: {}]  }
   0x1   :  { %v99_v0 = vld [vmem:[%s1234_s1 + $0xf0] sm:$0xff]  ;;  %v100_v1 = vld [vmem:[%s1234_s1 + $0xf8] sm:$0xff]  ;;  %v97_v5 = vld [vmem:[%s1234_s1 + $0xe0] sm:$0xff] }
   0x2   :  { %v83_v2 = vld [vmem:[%s1234_s1 + $0x70] sm:$0xff]  ;;  %v116_v3 = vpack.c.bf16 %v100_v1, %v99_v0  ;;  %v84_v4 = vld [vmem:[%s1234_s1 + $0x78] sm:$0xff]  ;;  %v98_v6 = vld [vmem:[%s1234_s1 + $0xe8] sm:$0xff] }
   0x3   :  { %v108_v7 = vpack.c.bf16 %v84_v4, %v83_v2  ;;  %v115_v8 = vpack.c.bf16 %v98_v6, %v97_v5  ;;  %v81_v9 = vld [vmem:[%s1234_s1 + $0x60] sm:$0xff]  ;;  %v82_v10 = vld [vmem:[%s1234_s1 + $0x68] sm:$0xff]  ;;  %v95_v11 = vld [vmem:[%s1234_s1 + $0xd0] sm:$0xff] }
   0x4   :  { %597 = vmatprep.subr.bf16.mxu0 %v116_v3  ;;  %661 = vmatprep.subr.bf16.mxu1 %v116_v3  ;;  %v96_v12 = vld [vmem:[%s1234_s1 + $0xd8] sm:$0xff]  ;;  %v107_v13 = vpack.c.bf16 %v82_v10, %v81_v9  ;;  %v79_v15 = vld [vmem:[%s1234_s1 + $0x50] sm:$0xff]  ;;  %v93_v17 = vld [vmem:[%s1234_s1 + $0xc0] sm:$0xff] }
   0x5   :  { %598 = vmatpush3.bf16.msra.mxu0 %v108_v7  ;;  %669 = vmatpush3.bf16.msra.mxu1 %v108_v7  ;;  %v114_v14 = vpack.c.bf16 %v96_v12, %v95_v11  ;;  %v80_v16 = vld [vmem:[%s1234_s1 + $0x58] sm:$0xff]  ;;  %v94_v18 = vld [vmem:[%s1234_s1 + $0xc8] sm:$0xff]  ;;  %v77_v21 = vld [vmem:[%s1234_s1 + $0x40] sm:$0xff] }
   0x6   :  { %599 = vmatprep.subr.bf16.mxu0 %v115_v8  ;;  %662 = vmatprep.subr.bf16.mxu1 %v115_v8  ;;  %v106_v19 = vpack.c.bf16 %v80_v16, %v79_v15  ;;  %v113_v20 = vpack.c.bf16 %v94_v18, %v93_v17  ;;  %v78_v22 = vld [vmem:[%s1234_s1 + $0x48] sm:$0xff]  ;;  %v91_v23 = vld [vmem:[%s1234_s1 + $0xb0] sm:$0xff]  ;;  %v92_v24 = vld [vmem:[%s1234_s1 + $0xb8] sm:$0xff] }
   0x7   :  { %v22_v25 = vld [vmem:[%s1235_s0 + $0x8] sm:$0xff]  ;;  %v24_v26 = vld [vmem:[%s1235_s0 + $0x18] sm:$0xff]  ;;  %v105_v29 = vpack.c.bf16 %v78_v22, %v77_v21  ;;  %v112_v32 = vpack.c.bf16 %v92_v24, %v91_v23  ;;  %v75_v33 = vld [vmem:[%s1234_s1 + $0x30] sm:$0xff] }
   0x8   :  { %v38_v27 = vld [vmem:[%s1235_s0 + $0x88] sm:$0xff]  ;;  %v40_v28 = vld [vmem:[%s1235_s0 + $0x98] sm:$0xff]  ;;  %v54_v30 = vpack.c.bf16 %v24_v26, %v22_v25  ;;  %v89_v35 = vld [vmem:[%s1234_s1 + $0xa0] sm:$0xff] }
   0x9   :  { %600 = vmatpush3.bf16.msra.mxu0 %v107_v13  ;;  %670 = vmatpush3.bf16.msra.mxu1 %v107_v13  ;;  %v62_v31 = vpack.c.bf16 %v40_v28, %v38_v27  ;;  %v76_v34 = vld [vmem:[%s1234_s1 + $0x38] sm:$0xff]  ;;  %v90_v36 = vld [vmem:[%s1234_s1 + $0xa8] sm:$0xff]  ;;  %v73_v39 = vld [vmem:[%s1234_s1 + $0x20] sm:$0xff] }
   0xa   :  { %601 = vmatprep.subr.bf16.mxu0 %v114_v14  ;;  %663 = vmatprep.subr.bf16.mxu1 %v114_v14  ;;  %v104_v37 = vpack.c.bf16 %v76_v34, %v75_v33  ;;  %v111_v38 = vpack.c.bf16 %v90_v36, %v89_v35  ;;  %v74_v40 = vld [vmem:[%s1234_s1 + $0x28] sm:$0xff]  ;;  %v87_v41 = vld [vmem:[%s1234_s1 + $0x90] sm:$0xff]  ;;  %v88_v42 = vld [vmem:[%s1234_s1 + $0x98] sm:$0xff] }
   0xb   :  { %156 = vmatprep.mubr.bf16.mxu0 %v54_v30  ;;  %188 = vmatprep.mubr.bf16.mxu1 %v62_v31  ;;  %v103_v43 = vpack.c.bf16 %v74_v40, %v73_v39  ;;  %v110_v44 = vpack.c.bf16 %v88_v42, %v87_v41  ;;  %v71_v45 = vld [vmem:[%s1234_s1 + $0x10] sm:$0xff]  ;;  %v72_v46 = vld [vmem:[%s1234_s1 + $0x18] sm:$0xff]  ;;  %v85_v47 = vld [vmem:[%s1234_s1 + $0x80] sm:$0xff] }
   0xc   :  { %v86_v48 = vld [vmem:[%s1234_s1 + $0x88] sm:$0xff]  ;;  %v102_v49 = vpack.c.bf16 %v72_v46, %v71_v45  ;;  %v69_v51 = vld [vmem:[%s1234_s1] sm:$0xff]  ;;  %v23_v54 = vld [vmem:[%s1235_s0 + $0x10] sm:$0xff] }
   0xd   :  { %602 = vmatpush3.bf16.msra.mxu0 %v106_v19  ;;  %671 = vmatpush3.bf16.msra.mxu1 %v106_v19  ;;  %v109_v50 = vpack.c.bf16 %v86_v48, %v85_v47  ;;  %v70_v52 = vld [vmem:[%s1234_s1 + $0x8] sm:$0xff]  ;;  %v21_v53 = vld [vmem:[%s1235_s0] sm:$0xff]  ;;  %v39_v57 = vld [vmem:[%s1235_s0 + $0x90] sm:$0xff] }
   0xe   :  { %603 = vmatprep.subr.bf16.mxu0 %v113_v20  ;;  %664 = vmatprep.subr.bf16.mxu1 %v113_v20  ;;  %v101_v55 = vpack.c.bf16 %v70_v52, %v69_v51  ;;  %v37_v56 = vld [vmem:[%s1235_s0 + $0x80] sm:$0xff]  ;;  %v26_v58 = vld [vmem:[%s1235_s0 + $0x28] sm:$0xff]  ;;  %v28_v59 = vld [vmem:[%s1235_s0 + $0x38] sm:$0xff]  ;;  %v53_v62 = vpack.c.bf16 %v23_v54, %v21_v53 }
   0xf   :  { %v42_v60 = vld [vmem:[%s1235_s0 + $0xa8] sm:$0xff]  ;;  %v44_v61 = vld [vmem:[%s1235_s0 + $0xb8] sm:$0xff]  ;;  %v61_v63 = vpack.c.bf16 %v39_v57, %v37_v56  ;;  %v56_v0 = vpack.c.bf16 %v28_v59, %v26_v58  ;;  %v25_v2 = vld [vmem:[%s1235_s0 + $0x20] sm:$0xff] }
  0x10   :  { %v64_v1 = vpack.c.bf16 %v44_v61, %v42_v60  ;;  %v27_v3 = vld [vmem:[%s1235_s0 + $0x30] sm:$0xff]  ;;  %v41_v4 = vld [vmem:[%s1235_s0 + $0xa0] sm:$0xff]  ;;  %v30_v6 = vld [vmem:[%s1235_s0 + $0x48] sm:$0xff] }
  0x11   :  { %604 = vmatpush3.bf16.msra.mxu0 %v105_v29  ;;  %672 = vmatpush3.bf16.msra.mxu1 %v105_v29  ;;  %v43_v5 = vld [vmem:[%s1235_s0 + $0xb0] sm:$0xff]  ;;  %v32_v7 = vld [vmem:[%s1235_s0 + $0x58] sm:$0xff]  ;;  %v46_v8 = vld [vmem:[%s1235_s0 + $0xc8] sm:$0xff]  ;;  %v55_v10 = vpack.c.bf16 %v27_v3, %v25_v2 }
  0x12   :  { %605 = vmatprep.subr.bf16.mxu0 %v112_v32  ;;  %665 = vmatprep.subr.bf16.mxu1 %v112_v32  ;;  %v48_v9 = vld [vmem:[%s1235_s0 + $0xd8] sm:$0xff]  ;;  %v63_v11 = vpack.c.bf16 %v43_v5, %v41_v4  ;;  %v58_v12 = vpack.c.bf16 %v32_v7, %v30_v6  ;;  %v29_v14 = vld [vmem:[%s1235_s0 + $0x40] sm:$0xff]  ;;  %v31_v15 = vld [vmem:[%s1235_s0 + $0x50] sm:$0xff] }
  0x13   :  { %v66_v13 = vpack.c.bf16 %v48_v9, %v46_v8  ;;  %v45_v16 = vld [vmem:[%s1235_s0 + $0xc0] sm:$0xff]  ;;  %v47_v17 = vld [vmem:[%s1235_s0 + $0xd0] sm:$0xff]  ;;  %v34_v18 = vld [vmem:[%s1235_s0 + $0x68] sm:$0xff]  ;;  %v57_v22 = vpack.c.bf16 %v31_v15, %v29_v14 }
  0x14   :  { %v36_v19 = vld [vmem:[%s1235_s0 + $0x78] sm:$0xff]  ;;  %v50_v20 = vld [vmem:[%s1235_s0 + $0xe8] sm:$0xff]  ;;  %v65_v23 = vpack.c.bf16 %v47_v17, %v45_v16  ;;  %v33_v26 = vld [vmem:[%s1235_s0 + $0x60] sm:$0xff] }
  0x15   :  { %606 = vmatpush3.bf16.msra.mxu0 %v104_v37  ;;  %673 = vmatpush3.bf16.msra.mxu1 %v104_v37  ;;  %v52_v21 = vld [vmem:[%s1235_s0 + $0xf8] sm:$0xff]  ;;  %v60_v24 = vpack.c.bf16 %v36_v19, %v34_v18  ;;  %v35_v27 = vld [vmem:[%s1235_s0 + $0x70] sm:$0xff]  ;;  %v49_v28 = vld [vmem:[%s1235_s0 + $0xe0] sm:$0xff] }
  0x16   :  { %607 = vmatprep.subr.bf16.mxu0 %v111_v38  ;;  %666 = vmatprep.subr.bf16.mxu1 %v111_v38  ;;  %v68_v25 = vpack.c.bf16 %v52_v21, %v50_v20  ;;  %v51_v29 = vld [vmem:[%s1235_s0 + $0xf0] sm:$0xff]  ;;  %v59_v30 = vpack.c.bf16 %v35_v27, %v33_v26  ;;  %v934_v36 = vld [vmem:[%s1236_s2] ss:$0 sm:$0xff] }
  0x17   :  { %v67_v31 = vpack.c.bf16 %v51_v29, %v49_v28 }
  0x19   :  { %608 = vmatpush3.bf16.msra.mxu0 %v103_v43  ;;  %674 = vmatpush3.bf16.msra.mxu1 %v103_v43 }
  0x1a   :  { %609 = vmatprep.subr.bf16.mxu0 %v110_v44  ;;  %667 = vmatprep.subr.bf16.mxu1 %v110_v44 }
  0x1d   :  { %610 = vmatpush3.bf16.msra.mxu0 %v102_v49  ;;  %675 = vmatpush3.bf16.msra.mxu1 %v102_v49 }
  0x1e   :  { %611 = vmatprep.subr.bf16.mxu0 %v109_v50  ;;  %668 = vmatprep.subr.bf16.mxu1 %v109_v50 }
  0x21   :  { %612 = vmatpush3.bf16.msra.mxu0 %v101_v55  ;;  %676 = vmatpush3.bf16.msra.mxu1 %v101_v55 }
  0x24   :  { %157 = vmatmul.mubr.bf16.vlgmr.msra.gmra.mxu0 %v53_v62  ;;  %189 = vmatmul.mubr.bf16.vlgmr.msra.gmra.mxu1 %v61_v63 }
  0x25   :  { %164 = vmatprep.mubr.bf16.mxu0 %v56_v0  ;;  %196 = vmatprep.mubr.bf16.mxu1 %v64_v1 }
  0x2c   :  { %165 = vmatmul.mubr.bf16.gmra.mxu0 %v55_v10  ;;  %197 = vmatmul.mubr.bf16.gmra.mxu1 %v63_v11 }
  0x2d   :  { %172 = vmatprep.mubr.bf16.mxu0 %v58_v12  ;;  %204 = vmatprep.mubr.bf16.mxu1 %v66_v13 }
  0x34   :  { %173 = vmatmul.mubr.bf16.gmra.mxu0 %v57_v22  ;;  %205 = vmatmul.mubr.bf16.gmra.mxu1 %v65_v23 }
  0x35   :  { %180 = vmatprep.mubr.bf16.mxu0 %v60_v24  ;;  %212 = vmatprep.mubr.bf16.mxu1 %v68_v25 }
  0x3c   :  { %181 = vmatmul.mubr.bf16.gmra.mxu0 %v59_v30  ;;  %213 = vmatmul.mubr.bf16.gmra.mxu1 %v67_v31 }
  0xe4   :  { %v613_v32 = vpop.f32.mrf.mxu0  ;;  %v637_v33 = vpop.f32.mrf.mxu1 }
  0xe6   :  { %v614_v34 = vpop.f32.mrf.mxu0  ;;  %v638_v35 = vpop.f32.mrf.mxu1 }
  0xe7   :  { %v615_v37 = vadd.f32 %v614_v34, %v613_v32  ;;  %v639_v38 = vadd.f32 %v638_v35, %v637_v33 }
  0xe8   :  { %v616_v39 = vpop.f32.mrf.mxu0  ;;  %v640_v40 = vpop.f32.mrf.mxu1 }
  0xe9   :  { %v937_v41 = vadd.f32 %v615_v37, %v934_v36  ;;  %v940_v44 = vadd.f32 %v639_v38, %v934_v36 }
  0xea   :  { %v617_v42 = vpop.f32.mrf.mxu0  ;;  %v641_v43 = vpop.f32.mrf.mxu1 }
  0xeb   :  { %v618_v45 = vadd.f32 %v617_v42, %v616_v39  ;;  %v642_v46 = vadd.f32 %v641_v43, %v640_v40  ;;  %v222_v47 = vsel %vm221_vm0, %v937_v41, 0.0  ;;  %v246_v53 = vsel %vm221_vm0, %v940_v44, 0.0 }
  0xec   :  { %v619_v48 = vpop.f32.mrf.mxu0  ;;  %223 = vadd.xlane.f32.xlu0 %v222_v47  ;;  %v643_v49 = vpop.f32.mrf.mxu1 }
  0xed   :  { %v945_v50 = vadd.f32 %v642_v46, %v934_v36  ;;  %v952_v57 = vadd.f32 %v618_v45, %v934_v36 }
  0xee   :  { %v620_v51 = vpop.f32.mrf.mxu0  ;;  %v644_v52 = vpop.f32.mrf.mxu1 }
  0xef   :  { %v621_v54 = vadd.f32 %v620_v51, %v619_v48  ;;  %v645_v55 = vadd.f32 %v644_v52, %v643_v49  ;;  %v249_v56 = vsel %vm221_vm0, %v945_v50, 0.0  ;;  %v225_v3 = vsel %vm221_vm0, %v952_v57, 0.0 }
  0xf0   :  { %250 = vadd.xlane.f32.xlu1 %v249_v56  ;;  %v622_v58 = vpop.f32.mrf.mxu0  ;;  %247 = vadd.xlane.f32.xlu0 %v246_v53  ;;  %v646_v59 = vpop.f32.mrf.mxu1 }
  0xf1   :  { %v955_v60 = vadd.f32 %v621_v54, %v934_v36  ;;  %v958_v61 = vadd.f32 %v645_v55, %v934_v36 }
  0xf2   :  { %v623_v62 = vpop.f32.mrf.mxu0  ;;  %v647_v63 = vpop.f32.mrf.mxu1 }
  0xf3   :  { %v624_v0 = vadd.f32 %v623_v62, %v622_v58  ;;  %v648_v1 = vadd.f32 %v647_v63, %v646_v59  ;;  %v228_v2 = vsel %vm221_vm0, %v955_v60, 0.0  ;;  %v252_v7 = vsel %vm221_vm0, %v958_v61, 0.0 }
  0xf4   :  { %v625_v4 = vpop.f32.mrf.mxu0  ;;  %229 = vadd.xlane.f32.xlu1 %v228_v2  ;;  %226 = vadd.xlane.f32.xlu0 %v225_v3  ;;  %v649_v5 = vpop.f32.mrf.mxu1 }
  0xf5   :  { %v965_v6 = vadd.f32 %v624_v0, %v934_v36  ;;  %v972_v13 = vadd.f32 %v648_v1, %v934_v36 }
  0xf6   :  { %v626_v8 = vpop.f32.mrf.mxu0  ;;  %v650_v9 = vpop.f32.mrf.mxu1 }
  0xf7   :  { %v627_v10 = vadd.f32 %v626_v8, %v625_v4  ;;  %v651_v11 = vadd.f32 %v650_v9, %v649_v5  ;;  %v231_v12 = vsel %vm221_vm0, %v965_v6, 0.0  ;;  %v255_v22 = vsel %vm221_vm0, %v972_v13, 0.0 }
  0xf8   :  { %v628_v14 = vpop.f32.mrf.mxu0  ;;  %232 = vadd.xlane.f32.xlu1 %v231_v12  ;;  %253 = vadd.xlane.f32.xlu0 %v252_v7  ;;  %v652_v15 = vpop.f32.mrf.mxu1 }
  0xf9   :  { %v975_v16 = vadd.f32 %v627_v10, %v934_v36  ;;  %v978_v17 = vadd.f32 %v651_v11, %v934_v36 }
  0xfa   :  { %v629_v18 = vpop.f32.mrf.mxu0  ;;  %v653_v19 = vpop.f32.mrf.mxu1 }
  0xfb   :  { %v630_v20 = vadd.f32 %v629_v18, %v628_v14  ;;  %v654_v21 = vadd.f32 %v653_v19, %v652_v15  ;;  %v234_v23 = vsel %vm221_vm0, %v975_v16, 0.0  ;;  %v258_v27 = vsel %vm221_vm0, %v978_v17, 0.0 }
  0xfc   :  { %v631_v24 = vpop.f32.mrf.mxu0  ;;  %256 = vadd.xlane.f32.xlu1 %v255_v22  ;;  %235 = vadd.xlane.f32.xlu0 %v234_v23  ;;  %v655_v25 = vpop.f32.mrf.mxu1 }
  0xfd   :  { %v985_v26 = vadd.f32 %v630_v20, %v934_v36  ;;  %v992_v33 = vadd.f32 %v654_v21, %v934_v36 }
  0xfe   :  { %v632_v28 = vpop.f32.mrf.mxu0  ;;  %v656_v29 = vpop.f32.mrf.mxu1 }
  0xff   :  { %v633_v30 = vadd.f32 %v632_v28, %v631_v24  ;;  %v657_v31 = vadd.f32 %v656_v29, %v655_v25  ;;  %v237_v32 = vsel %vm221_vm0, %v985_v26, 0.0  ;;  %v261_v45 = vsel %vm221_vm0, %v992_v33, 0.0 }
 0x100   :  { %v634_v34 = vpop.f32.mrf.mxu0  ;;  %238 = vadd.xlane.f32.xlu1 %v237_v32  ;;  %259 = vadd.xlane.f32.xlu0 %v258_v27  ;;  %v658_v35 = vpop.f32.mrf.mxu1 }
 0x101   :  { %v995_v37 = vadd.f32 %v633_v30, %v934_v36  ;;  %v998_v38 = vadd.f32 %v657_v31, %v934_v36 }
 0x102   :  { %v635_v39 = vpop.f32.mrf.mxu0  ;;  %v659_v40 = vpop.f32.mrf.mxu1 }
 0x103   :  { %v636_v42 = vadd.f32 %v635_v39, %v634_v34  ;;  %v660_v43 = vadd.f32 %v659_v40, %v658_v35  ;;  %v240_v46 = vsel %vm221_vm0, %v995_v37, 0.0  ;;  %v264_v48 = vsel %vm221_vm0, %v998_v38, 0.0 }
 0x104   :  { %262 = vadd.xlane.f32.xlu1 %v261_v45  ;;  %241 = vadd.xlane.f32.xlu0 %v240_v46 }
 0x105   :  { %v1005_v47 = vadd.f32 %v636_v42, %v934_v36  ;;  %v1012_v51 = vadd.f32 %v660_v43, %v934_v36 }
 0x107   :  { %v243_v49 = vsel %vm221_vm0, %v1005_v47, 0.0  ;;  %v267_v52 = vsel %vm221_vm0, %v1012_v51, 0.0 }
 0x108   :  { %244 = vadd.xlane.f32.xlu1 %v243_v49  ;;  %265 = vadd.xlane.f32.xlu0 %v264_v48 }
 0x10c   :  { %268 = vadd.xlane.f32.xlu1 %v267_v52 }
 0x175   :  { %v224_v53 = vpop.xlane.xlu0 %223 }
 0x176   :  { %v271_v54 = vmul.f32 0.015625, %v224_v53 }
 0x178   :  { %v1017_v55 = vsub.f32 %v937_v41, %v271_v54 }
 0x179   :  { %v251_v56 = vpop.xlane.xlu1 %250  ;;  %v248_v58 = vpop.xlane.xlu0 %247 }
 0x17a   :  { %v279_v59 = vmul.f32 0.015625, %v248_v58  ;;  %v303_v62 = vmul.f32 %v1017_v55, %v1017_v55  ;;  %v280_v63 = vmul.f32 0.015625, %v251_v56 }
 0x17c   :  { %v1022_v36 = vsub.f32 %v940_v44, %v279_v59  ;;  %v319_v0 = vsel %vm221_vm0, %v303_v62, 0.0  ;;  %v1028_v5 = vsub.f32 %v945_v50, %v280_v63 }
 0x17d   :  { %v230_v1 = vpop.xlane.xlu1 %229  ;;  %320 = vadd.xlane.f32.xlu0 %v319_v0  ;;  %v227_v2 = vpop.xlane.xlu0 %226 }
 0x17e   :  { %v273_v3 = vmul.f32 0.015625, %v230_v1  ;;  %v272_v4 = vmul.f32 0.015625, %v227_v2  ;;  %v311_v41 = vmul.f32 %v1022_v36, %v1022_v36 }
 0x180   :  { %v1031_v7 = vsub.f32 %v955_v60, %v273_v3  ;;  %v1034_v8 = vsub.f32 %v952_v57, %v272_v4  ;;  %v343_v44 = vsel %vm221_vm0, %v311_v41, 0.0  ;;  %v312_v60 = vmul.f32 %v1028_v5, %v1028_v5 }
 0x181   :  { %v233_v9 = vpop.xlane.xlu1 %232  ;;  %344 = vadd.xlane.f32.xlu0 %v343_v44  ;;  %v254_v10 = vpop.xlane.xlu0 %253 }
 0x182   :  { %v274_v11 = vmul.f32 0.015625, %v233_v9  ;;  %v281_v12 = vmul.f32 0.015625, %v254_v10  ;;  %v305_v14 = vmul.f32 %v1031_v7, %v1031_v7  ;;  %v304_v50 = vmul.f32 %v1034_v8, %v1034_v8 }
 0x183   :  { %v346_v27 = vsel %vm221_vm0, %v312_v60, 0.0 }
 0x184   :  { %v1044_v15 = vsub.f32 %v965_v6, %v274_v11  ;;  %v1047_v57 = vsub.f32 %v958_v61, %v281_v12  ;;  %v325_v18 = vsel %vm221_vm0, %v305_v14, 0.0  ;;  %v322_v19 = vsel %vm221_vm0, %v304_v50, 0.0 }
 0x185   :  { %v257_v20 = vpop.xlane.xlu1 %256  ;;  %326 = vadd.xlane.f32.xlu0 %v325_v18  ;;  %323 = vadd.xlane.f32.xlu1 %v322_v19  ;;  %v236_v21 = vpop.xlane.xlu0 %235 }
 0x186   :  { %v282_v22 = vmul.f32 0.015625, %v257_v20  ;;  %v275_v23 = vmul.f32 0.015625, %v236_v21  ;;  %v313_v24 = vmul.f32 %v1047_v57, %v1047_v57  ;;  %v306_v6 = vmul.f32 %v1044_v15, %v1044_v15 }
 0x188   :  { %v1056_v25 = vsub.f32 %v972_v13, %v282_v22  ;;  %v1059_v61 = vsub.f32 %v975_v16, %v275_v23  ;;  %v349_v28 = vsel %vm221_vm0, %v313_v24, 0.0  ;;  %v328_v35 = vsel %vm221_vm0, %v306_v6, 0.0 }
 0x189   :  { %v239_v29 = vpop.xlane.xlu1 %238  ;;  %347 = vadd.xlane.f32.xlu1 %v346_v27  ;;  %350 = vadd.xlane.f32.xlu0 %v349_v28  ;;  %v260_v30 = vpop.xlane.xlu0 %259 }
 0x18a   :  { %v276_v31 = vmul.f32 0.015625, %v239_v29  ;;  %v283_v32 = vmul.f32 0.015625, %v260_v30  ;;  %v307_v34 = vmul.f32 %v1059_v61, %v1059_v61  ;;  %v314_v40 = vmul.f32 %v1056_v25, %v1056_v25 }
 0x18c   :  { %v1067_v13 = vsub.f32 %v985_v26, %v276_v31  ;;  %v1070_v16 = vsub.f32 %v978_v17, %v283_v32  ;;  %v331_v39 = vsel %vm221_vm0, %v307_v34, 0.0  ;;  %v352_v52 = vsel %vm221_vm0, %v314_v40, 0.0 }
 0x18d   :  { %v263_v42 = vpop.xlane.xlu1 %262  ;;  %329 = vadd.xlane.f32.xlu1 %v328_v35  ;;  %332 = vadd.xlane.f32.xlu0 %v331_v39  ;;  %v242_v43 = vpop.xlane.xlu0 %241 }
 0x18e   :  { %v284_v45 = vmul.f32 0.015625, %v263_v42  ;;  %v277_v46 = vmul.f32 0.015625, %v242_v43  ;;  %v315_v48 = vmul.f32 %v1070_v16, %v1070_v16  ;;  %v308_v26 = vmul.f32 %v1067_v13, %v1067_v13  ;;  %v1115_v42 = vld [vmem:[%s1237_s3] ss:$0 sm:$0xff] }
 0x190   :  { %v1080_v17 = vsub.f32 %v992_v33, %v284_v45  ;;  %v1083_v49 = vsub.f32 %v995_v37, %v277_v46  ;;  %v355_v53 = vsel %vm221_vm0, %v315_v48, 0.0  ;;  %v334_v63 = vsel %vm221_vm0, %v308_v26, 0.0  ;;  %v1121_v48 = vld [vmem:[%s1238_s4] ss:$0 sm:$0xff] }
 0x191   :  { %v245_v54 = vpop.xlane.xlu1 %244  ;;  %353 = vadd.xlane.f32.xlu1 %v352_v52  ;;  %356 = vadd.xlane.f32.xlu0 %v355_v53  ;;  %v266_v56 = vpop.xlane.xlu0 %265 }
 0x192   :  { %v278_v58 = vmul.f32 0.015625, %v245_v54  ;;  %v285_v59 = vmul.f32 0.015625, %v266_v56  ;;  %v309_v62 = vmul.f32 %v1083_v49, %v1083_v49  ;;  %v316_v1 = vmul.f32 %v1080_v17, %v1080_v17 }
 0x194   :  { %v1091_v33 = vsub.f32 %v1005_v47, %v278_v58  ;;  %v1094_v37 = vsub.f32 %v998_v38, %v285_v59  ;;  %v337_v0 = vsel %vm221_vm0, %v309_v62, 0.0  ;;  %v358_v47 = vsel %vm221_vm0, %v316_v1, 0.0 }
 0x195   :  { %v269_v2 = vpop.xlane.xlu1 %268  ;;  %335 = vadd.xlane.f32.xlu1 %v334_v63  ;;  %338 = vadd.xlane.f32.xlu0 %v337_v0 }
 0x196   :  { %v286_v3 = vmul.f32 0.015625, %v269_v2  ;;  %v317_v4 = vmul.f32 %v1094_v37, %v1094_v37  ;;  %v310_v44 = vmul.f32 %v1091_v33, %v1091_v33 }
 0x198   :  { %v1102_v41 = vsub.f32 %v1012_v51, %v286_v3  ;;  %v361_v38 = vsel %vm221_vm0, %v317_v4, 0.0  ;;  %v340_v9 = vsel %vm221_vm0, %v310_v44, 0.0 }
 0x199   :  { %359 = vadd.xlane.f32.xlu1 %v358_v47  ;;  %362 = vadd.xlane.f32.xlu0 %v361_v38 }
 0x19a   :  { %v318_v10 = vmul.f32 %v1102_v41, %v1102_v41 }
 0x19c   :  { %v364_v11 = vsel %vm221_vm0, %v318_v10, 0.0 }
 0x19d   :  { %341 = vadd.xlane.f32.xlu1 %v340_v9 }
 0x1a1   :  { %365 = vadd.xlane.f32.xlu1 %v364_v11 }
 0x206   :  { %v321_v51 = vpop.xlane.xlu0 %320 }
 0x207   :  { %v367_v12 = vmul.f32 0.015625, %v321_v51 }
 0x209   :  { %v383_v14 = vadd.f32 1e-05, %v367_v12 }
 0x20a   :  { %v345_v50 = vpop.xlane.xlu0 %344 }
 0x20b   :  { %677 = vrsqrt.f32 %v383_v14  ;;  %v375_v60 = vmul.f32 0.015625, %v345_v50 }
 0x20d   :  { %v391_v18 = vadd.f32 1e-05, %v375_v60 }
 0x20e   :  { %v324_v19 = vpop.xlane.xlu1 %323  ;;  %v327_v20 = vpop.xlane.xlu0 %326 }
 0x20f   :  { %679 = vrsqrt.f32 %v391_v18  ;;  %v368_v21 = vmul.f32 0.015625, %v324_v19  ;;  %v369_v22 = vmul.f32 0.015625, %v327_v20 }
 0x211   :  { %v384_v23 = vadd.f32 1e-05, %v368_v21  ;;  %v385_v24 = vadd.f32 1e-05, %v369_v22 }
 0x212   :  { %v348_v6 = vpop.xlane.xlu1 %347  ;;  %v351_v27 = vpop.xlane.xlu0 %350 }
 0x213   :  { %681 = vrsqrt.f32 %v384_v23  ;;  %v376_v28 = vmul.f32 0.015625, %v348_v6  ;;  %v377_v29 = vmul.f32 0.015625, %v351_v27 }
 0x214   :  { %683 = vrsqrt.f32 %v385_v24 }
 0x215   :  { %v392_v30 = vadd.f32 1e-05, %v376_v28  ;;  %v393_v31 = vadd.f32 1e-05, %v377_v29 }
 0x216   :  { %v330_v32 = vpop.xlane.xlu1 %329  ;;  %v333_v34 = vpop.xlane.xlu0 %332 }
 0x217   :  { %685 = vrsqrt.f32 %v392_v30  ;;  %v370_v35 = vmul.f32 0.015625, %v330_v32  ;;  %v371_v39 = vmul.f32 0.015625, %v333_v34 }
 0x218   :  { %v678_v40 = vpop.eup %677  ;;  %687 = vrsqrt.f32 %v393_v31 }
 0x219   :  { %v415_v43 = vmul.f32 %v678_v40, %v1017_v55  ;;  %v386_v45 = vadd.f32 1e-05, %v370_v35  ;;  %v387_v46 = vadd.f32 1e-05, %v371_v39 }
 0x21a   :  { %v354_v26 = vpop.xlane.xlu1 %353  ;;  %v357_v52 = vpop.xlane.xlu0 %356 }
 0x21b   :  { %v438_v53 = vmul.f32 %v1115_v42, %v415_v43  ;;  %689 = vrsqrt.f32 %v386_v45  ;;  %v378_v54 = vmul.f32 0.015625, %v354_v26  ;;  %v379_v56 = vmul.f32 0.015625, %v357_v52 }
 0x21c   :  { %v680_v58 = vpop.eup %679  ;;  %691 = vrsqrt.f32 %v387_v46 }
 0x21d   :  { %v461_v59 = vadd.f32 %v1121_v48, %v438_v53  ;;  %v423_v55 = vmul.f32 %v680_v58, %v1022_v36  ;;  %v394_v62 = vadd.f32 1e-05, %v378_v54  ;;  %v395_v63 = vadd.f32 1e-05, %v379_v56 }
 0x21e   :  { %v336_v0 = vpop.xlane.xlu1 %335  ;;  %v339_v1 = vpop.xlane.xlu0 %338 }
 0x21f   :  { %v581_v2 = vpack.c.bf16 %v461_v59, %v461_v59  ;;  %v446_v3 = vmul.f32 %v1115_v42, %v423_v55  ;;  %693 = vrsqrt.f32 %v394_v62  ;;  %v372_v4 = vmul.f32 0.015625, %v336_v0 }
 0x220   :  { %v682_v47 = vpop.eup %681  ;;  %695 = vrsqrt.f32 %v395_v63  ;;  %v373_v38 = vmul.f32 0.015625, %v339_v1 }
 0x221   :  { %v684_v44 = vpop.eup %683  ;;  %542 = vst.msk [vmem:[%s1239_s5] sm:$0xf] %vm541_vm1, %v581_v2  ;;  %v469_v36 = vadd.f32 %v1121_v48, %v446_v3  ;;  %v416_v9 = vmul.f32 %v682_v47, %v1034_v8  ;;  %v388_v10 = vadd.f32 1e-05, %v372_v4 }
 0x222   :  { %v417_v11 = vmul.f32 %v684_v44, %v1031_v7  ;;  %v389_v51 = vadd.f32 1e-05, %v373_v38  ;;  %v360_v12 = vpop.xlane.xlu1 %359  ;;  %v363_v14 = vpop.xlane.xlu0 %362 }
 0x223   :  { %v589_v50 = vpack.c.bf16 %v469_v36, %v469_v36  ;;  %v439_v60 = vmul.f32 %v1115_v42, %v416_v9  ;;  %697 = vrsqrt.f32 %v388_v10  ;;  %v380_v18 = vmul.f32 0.015625, %v360_v12 }
 0x224   :  { %v686_v19 = vpop.eup %685  ;;  %v440_v20 = vmul.f32 %v1115_v42, %v417_v11  ;;  %699 = vrsqrt.f32 %v389_v51  ;;  %v381_v21 = vmul.f32 0.015625, %v363_v14 }
 0x225   :  { %v688_v22 = vpop.eup %687  ;;  %550 = vst.msk [vmem:[%s1239_s5 + $0x20] sm:$0xf] %vm541_vm1, %v589_v50  ;;  %v462_v7 = vadd.f32 %v1121_v48, %v439_v60  ;;  %v424_v8 = vmul.f32 %v686_v19, %v1028_v5  ;;  %v396_v23 = vadd.f32 1e-05, %v380_v18 }
 0x226   :  { %v463_v24 = vadd.f32 %v1121_v48, %v440_v20  ;;  %v425_v6 = vmul.f32 %v688_v22, %v1047_v57  ;;  %v397_v27 = vadd.f32 1e-05, %v381_v21  ;;  %v342_v28 = vpop.xlane.xlu1 %341 }
 0x227   :  { %v582_v29 = vpack.c.bf16 %v462_v7, %v462_v7  ;;  %v447_v30 = vmul.f32 %v1115_v42, %v424_v8  ;;  %701 = vrsqrt.f32 %v396_v23  ;;  %v374_v31 = vmul.f32 0.015625, %v342_v28 }
 0x228   :  { %v690_v32 = vpop.eup %689  ;;  %v583_v34 = vpack.c.bf16 %v463_v24, %v463_v24  ;;  %v448_v35 = vmul.f32 %v1115_v42, %v425_v6  ;;  %703 = vrsqrt.f32 %v397_v27 }
 0x229   :  { %v692_v39 = vpop.eup %691  ;;  %543 = vst.msk [vmem:[%s1239_s5 + $0x4] sm:$0xf] %vm541_vm1, %v582_v29  ;;  %v470_v5 = vadd.f32 %v1121_v48, %v447_v30  ;;  %v418_v57 = vmul.f32 %v690_v32, %v1044_v15  ;;  %v390_v40 = vadd.f32 1e-05, %v374_v31 }
 0x22a   :  { %544 = vst.msk [vmem:[%s1239_s5 + $0x8] sm:$0xf] %vm541_vm1, %v583_v34  ;;  %v471_v43 = vadd.f32 %v1121_v48, %v448_v35  ;;  %v419_v45 = vmul.f32 %v692_v39, %v1059_v61  ;;  %v366_v46 = vpop.xlane.xlu1 %365 }
 0x22b   :  { %v590_v26 = vpack.c.bf16 %v470_v5, %v470_v5  ;;  %v441_v52 = vmul.f32 %v1115_v42, %v418_v57  ;;  %705 = vrsqrt.f32 %v390_v40  ;;  %v382_v53 = vmul.f32 0.015625, %v366_v46 }
 0x22c   :  { %v694_v54 = vpop.eup %693  ;;  %v591_v56 = vpack.c.bf16 %v471_v43, %v471_v43  ;;  %v442_v15 = vmul.f32 %v1115_v42, %v419_v45 }
 0x22d   :  { %v696_v58 = vpop.eup %695  ;;  %551 = vst.msk [vmem:[%s1239_s5 + $0x24] sm:$0xf] %vm541_vm1, %v590_v26  ;;  %v464_v59 = vadd.f32 %v1121_v48, %v441_v52  ;;  %v426_v61 = vmul.f32 %v694_v54, %v1056_v25  ;;  %v398_v55 = vadd.f32 1e-05, %v382_v53 }
 0x22e   :  { %552 = vst.msk [vmem:[%s1239_s5 + $0x28] sm:$0xf] %vm541_vm1, %v591_v56  ;;  %v465_v62 = vadd.f32 %v1121_v48, %v442_v15  ;;  %v427_v63 = vmul.f32 %v696_v58, %v1070_v16 }
 0x22f   :  { %v584_v0 = vpack.c.bf16 %v464_v59, %v464_v59  ;;  %v449_v1 = vmul.f32 %v1115_v42, %v426_v61  ;;  %707 = vrsqrt.f32 %v398_v55 }
 0x230   :  { %v698_v2 = vpop.eup %697  ;;  %v585_v3 = vpack.c.bf16 %v465_v62, %v465_v62  ;;  %v450_v4 = vmul.f32 %v1115_v42, %v427_v63 }
 0x231   :  { %v700_v47 = vpop.eup %699  ;;  %545 = vst.msk [vmem:[%s1239_s5 + $0xc] sm:$0xf] %vm541_vm1, %v584_v0  ;;  %v472_v25 = vadd.f32 %v1121_v48, %v449_v1  ;;  %v420_v38 = vmul.f32 %v698_v2, %v1067_v13 }
 0x232   :  { %546 = vst.msk [vmem:[%s1239_s5 + $0x10] sm:$0xf] %vm541_vm1, %v585_v3  ;;  %v473_v16 = vadd.f32 %v1121_v48, %v450_v4  ;;  %v421_v44 = vmul.f32 %v700_v47, %v1083_v49 }
 0x233   :  { %v592_v36 = vpack.c.bf16 %v472_v25, %v472_v25  ;;  %v443_v9 = vmul.f32 %v1115_v42, %v420_v38 }
 0x234   :  { %v702_v10 = vpop.eup %701  ;;  %v593_v11 = vpack.c.bf16 %v473_v16, %v473_v16  ;;  %v444_v51 = vmul.f32 %v1115_v42, %v421_v44 }
 0x235   :  { %v704_v12 = vpop.eup %703  ;;  %553 = vst.msk [vmem:[%s1239_s5 + $0x2c] sm:$0xf] %vm541_vm1, %v592_v36  ;;  %v466_v13 = vadd.f32 %v1121_v48, %v443_v9  ;;  %v428_v14 = vmul.f32 %v702_v10, %v1080_v17 }
 0x236   :  { %554 = vst.msk [vmem:[%s1239_s5 + $0x30] sm:$0xf] %vm541_vm1, %v593_v11  ;;  %v467_v49 = vadd.f32 %v1121_v48, %v444_v51  ;;  %v429_v50 = vmul.f32 %v704_v12, %v1094_v37 }
 0x237   :  { %v586_v60 = vpack.c.bf16 %v466_v13, %v466_v13  ;;  %v451_v18 = vmul.f32 %v1115_v42, %v428_v14 }
 0x238   :  { %v706_v19 = vpop.eup %705  ;;  %v587_v20 = vpack.c.bf16 %v467_v49, %v467_v49  ;;  %v452_v21 = vmul.f32 %v1115_v42, %v429_v50 }
 0x239   :  { %547 = vst.msk [vmem:[%s1239_s5 + $0x14] sm:$0xf] %vm541_vm1, %v586_v60  ;;  %v474_v17 = vadd.f32 %v1121_v48, %v451_v18  ;;  %v422_v22 = vmul.f32 %v706_v19, %v1091_v33 }
 0x23a   :  { %548 = vst.msk [vmem:[%s1239_s5 + $0x18] sm:$0xf] %vm541_vm1, %v587_v20  ;;  %v475_v37 = vadd.f32 %v1121_v48, %v452_v21 }
 0x23b   :  { %v594_v7 = vpack.c.bf16 %v474_v17, %v474_v17  ;;  %v445_v8 = vmul.f32 %v1115_v42, %v422_v22 }
 0x23c   :  { %v708_v23 = vpop.eup %707  ;;  %v595_v24 = vpack.c.bf16 %v475_v37, %v475_v37 }
 0x23d   :  { %555 = vst.msk [vmem:[%s1239_s5 + $0x34] sm:$0xf] %vm541_vm1, %v594_v7  ;;  %v468_v6 = vadd.f32 %v1121_v48, %v445_v8  ;;  %v430_v33 = vmul.f32 %v708_v23, %v1102_v41 }
 0x23e   :  { %556 = vst.msk [vmem:[%s1239_s5 + $0x38] sm:$0xf] %vm541_vm1, %v595_v24 }
 0x23f   :  { %v588_v27 = vpack.c.bf16 %v468_v6, %v468_v6  ;;  %v453_v28 = vmul.f32 %v1115_v42, %v430_v33 }
 0x241   :  { %549 = vst.msk [vmem:[%s1239_s5 + $0x1c] sm:$0xf] %vm541_vm1, %v588_v27  ;;  %v476_v29 = vadd.f32 %v1121_v48, %v453_v28 }
 0x243   :  { %v596_v30 = vpack.c.bf16 %v476_v29, %v476_v29 }
 0x245   :  { %557 = vst.msk [vmem:[%s1239_s5 + $0x3c] sm:$0xf] %vm541_vm1, %v596_v30 }

// kernel: fwd.6
= control target key start
LH: loop header
LB: loop body
LE: loop exit
PB: predicated region body
PF: predicated region fallthrough
CT: control target
= control target key end

     0   :  { %s1054_s24 = smov 0   ;;  %s1056_s25 = smov 0   ;;  %s1223_s0 = inlined_call_operand.vmem [shape: bf16[2,64,64], index: 0, kind: input, shape index: {}]   ;;  %s1224_s1 = inlined_call_operand.vmem [shape: f32[64,64], index: 1, kind: input, shape index: {}]   ;;  %s1225_s2 = inlined_call_operand.vmem [shape: f32[64,64], index: 2, kind: input, shape index: {}]   ;;  %s1226_s3 = inlined_call_operand.vmem [shape: f32[1,64], index: 3, kind: input, shape index: {}]   ;;  %s1227_s4 = inlined_call_operand.vmem [shape: f32[64,64], index: 4, kind: input, shape index: {}]   ;;  %s1228_s5 = inlined_call_operand.vmem [shape: f32[1,64], index: 5, kind: input, shape index: {}]   ;;  %s1229_s6 = inlined_call_operand.vmem [shape: bf16[2,64,64], index: 6, kind: output, shape index: {0}]   ;;  %s1230_s7 = inlined_call_operand.vmem [shape: bf16[2,64,64], index: 7, kind: output, shape index: {1}]  }
   0x1   :  { %s1058_s26 = smov 0  }
   0x2 LB: > { %s30_s27 = sadd.s32 1, %s1008_s25  ;;  %p852_p0 = scmp.ge.s32.totalorder %s1012_s26, 1  ;;  %s1012_s26 = sphi %s1058_s26, %s18_s26   ;;  %s1008_s25 = sphi %s1056_s25, %s1232_s25   ;;  %s1004_s24 = sphi %s1054_s24, %s1231_s24  }
   0x3   : > { %p32_p1 = scmp.ge.s32.totalorder %s30_s27, 2  ;;  %p274_p2 = scmp.lt.s32.totalorder %s1012_s26, 3 }
   0x5   : > { %s1234_s27 = smov (%p32_p1, %s30_s27), 0  ;;  %p275_p3 = pnand %p852_p0, %p274_p2 }
   0x6   : > { %p329_p4 = scmp.lt.s32.totalorder (!%p275_p3), %s1004_s24, 1 }
   0x7   : > { %278 = sbr.rel (%p275_p3) target bundleno = 244 (0xf4), region = 44 }
   0xc   : > { %v407_v0 = vld [vmem:[%s1225_s2 + $0x30] sm:$0xff]  ;;  %v408_v1 = vld [vmem:[%s1225_s2 + $0x38] sm:$0xff]  ;;  %v405_v5 = vld [vmem:[%s1225_s2 + $0x20] sm:$0xff]  ;;  %s1236_s24 = smov (!%p329_p4, %s1004_s24), 1  ;;  %vm420_vm0 = vcmask 523264   ;;  %vm646_vm1 = vcmask 519168  }
   0xd   : > { %v504_v2 = vld [vmem:[%s1227_s4 + $0x30] sm:$0xff]  ;;  %v412_v3 = vpack.c.bf16 %v408_v1, %v407_v0  ;;  %v505_v4 = vld [vmem:[%s1227_s4 + $0x38] sm:$0xff]  ;;  %v406_v6 = vld [vmem:[%s1225_s2 + $0x28] sm:$0xff]  ;;  %s1108_s10 = sshll.u32 %s1236_s24, 5 }
   0xe   : > { %v509_v7 = vpack.c.bf16 %v505_v4, %v504_v2  ;;  %v411_v8 = vpack.c.bf16 %v406_v6, %v405_v5  ;;  %v502_v9 = vld [vmem:[%s1227_s4 + $0x20] sm:$0xff]  ;;  %v503_v10 = vld [vmem:[%s1227_s4 + $0x28] sm:$0xff]  ;;  %v403_v11 = vld [vmem:[%s1225_s2 + $0x10] sm:$0xff]  ;;  %s1120_s17 = scalar_lea.vmem %s1223_s0, %s1108_s10  ;;  %s1174_s28 = scalar_lea.vmem %s1229_s6, %s1108_s10 }
   0xf   : > { %926 = vmatprep.subr.bf16.mxu0 %v412_v3  ;;  %v508_v12 = vpack.c.bf16 %v503_v10, %v502_v9  ;;  %v404_v13 = vld [vmem:[%s1225_s2 + $0x18] sm:$0xff]  ;;  %v500_v14 = vld [vmem:[%s1227_s4 + $0x10] sm:$0xff]  ;;  %v401_v17 = vld [vmem:[%s1225_s2] sm:$0xff]  ;;  %s1180_s8 = scalar_lea.vmem %s1230_s7, %s1108_s10 }
  0x10   : > { %v501_v15 = vld [vmem:[%s1227_s4 + $0x18] sm:$0xff]  ;;  %942 = vmatprep.subr.bf16.mxu1 %v509_v7  ;;  %927 = vmatpush3.bf16.msra.mxu0 %v412_v3  ;;  %v410_v16 = vpack.c.bf16 %v404_v13, %v403_v11  ;;  %v402_v18 = vld [vmem:[%s1225_s2 + $0x8] sm:$0xff]  ;;  %v381_v19 = vld [vmem:[%s1224_s1] sm:$0xff] }
  0x11   : > { %943 = vmatpush3.bf16.msra.mxu1 %v509_v7  ;;  %928 = vmatprep.subr.bf16.mxu0 %v411_v8  ;;  %v507_v20 = vpack.c.bf16 %v501_v15, %v500_v14  ;;  %v365_v21 = vld [vmem:[%s1120_s17] sm:$0xff]   ;;  %v382_v22 = vld [vmem:[%s1224_s1 + $0x8] sm:$0xff]  ;;  %v369_v29 = vld [vmem:[%s1120_s17 + $0x10] sm:$0xff]   ;;  %v409_v35 = vpack.c.bf16 %v402_v18, %v401_v17 }
  0x12   : > { %944 = vmatprep.subr.bf16.mxu1 %v508_v12  ;;  %v367_v23 = vld [vmem:[%s1120_s17 + $0x8] sm:$0xff]   ;;  %v498_v24 = vld [vmem:[%s1227_s4] sm:$0xff]  ;;  %v373_v26 = vunpack.c.l.bf16 %v365_v21  ;;  %v374_v27 = vunpack.c.h.bf16 %v365_v21  ;;  %v383_v31 = vld [vmem:[%s1224_s1 + $0x10] sm:$0xff]  ;;  %v377_v33 = vunpack.c.l.bf16 %v369_v29  ;;  %v378_v34 = vunpack.c.h.bf16 %v369_v29  ;;  %950 = vmatprep.mubr.msk.bf16.mxu1 %vm420_vm0, %v365_v21 }
  0x13   : > { %v499_v25 = vld [vmem:[%s1227_s4 + $0x8] sm:$0xff]  ;;  %v375_v28 = vunpack.c.l.bf16 %v367_v23  ;;  %v376_v30 = vunpack.c.h.bf16 %v367_v23  ;;  %v384_v32 = vld [vmem:[%s1224_s1 + $0x18] sm:$0xff]  ;;  %v385_v38 = vld [vmem:[%s1224_s1 + $0x20] sm:$0xff] }
  0x14   : > { %929 = vmatpush3.bf16.msra.mxu0 %v411_v8  ;;  %v389_v36 = vadd.f32 %v381_v19, %v373_v26  ;;  %v390_v37 = vadd.f32 %v382_v22, %v374_v27  ;;  %v386_v39 = vld [vmem:[%s1224_s1 + $0x28] sm:$0xff]  ;;  %v506_v40 = vpack.c.bf16 %v499_v25, %v498_v24  ;;  %v393_v44 = vadd.f32 %v385_v38, %v377_v33  ;;  %v371_v46 = vld [vmem:[%s1120_s17 + $0x18] sm:$0xff]   ;;  %v387_v51 = vld [vmem:[%s1224_s1 + $0x30] sm:$0xff] }
  0x15   : > { %945 = vmatpush3.bf16.msra.mxu1 %v508_v12  ;;  %930 = vmatprep.subr.bf16.mxu0 %v410_v16  ;;  %v391_v42 = vadd.f32 %v383_v31, %v375_v28  ;;  %v392_v43 = vadd.f32 %v384_v32, %v376_v30  ;;  %v394_v45 = vadd.f32 %v386_v39, %v378_v34  ;;  %v379_v48 = vunpack.c.l.bf16 %v371_v46  ;;  %v388_v52 = vld [vmem:[%s1224_s1 + $0x38] sm:$0xff]  ;;  %v859_v56 = vld [vmem:[%s1226_s3] ss:$0 sm:$0xff] }
  0x16   : > { %946 = vmatprep.subr.bf16.mxu1 %v507_v20  ;;  %v397_v41 = vpack.c.bf16 %v390_v37, %v389_v36  ;;  %v380_v49 = vunpack.c.h.bf16 %v371_v46  ;;  %v864_v57 = vld [vmem:[%s1228_s5] ss:$0 sm:$0xff] }
  0x17   : > { %v398_v47 = vpack.c.bf16 %v392_v43, %v391_v42  ;;  %v399_v50 = vpack.c.bf16 %v394_v45, %v393_v44  ;;  %v395_v53 = vadd.f32 %v387_v51, %v379_v48 }
  0x18   : > { %931 = vmatpush3.bf16.msra.mxu0 %v410_v16  ;;  %934 = vmatprep.mubr.msk.bf16.mxu0 %vm420_vm0, %v397_v41  ;;  %v396_v54 = vadd.f32 %v388_v52, %v380_v49 }
  0x19   : > { %947 = vmatpush3.bf16.msra.mxu1 %v507_v20  ;;  %932 = vmatprep.subr.bf16.mxu0 %v409_v35 }
  0x1a   : > { %948 = vmatprep.subr.bf16.mxu1 %v506_v40  ;;  %v400_v55 = vpack.c.bf16 %v396_v54, %v395_v53 }
  0x1c   : > { %933 = vmatpush3.bf16.msra.mxu0 %v409_v35 }
  0x1d   : > { %949 = vmatpush3.bf16.msra.mxu1 %v506_v40 }
  0x1f   : > { %935 = vmatmul.mubr.msk.bf16.vlgmr.msra.gmra.mxu0 %vm420_vm0, %v398_v47 }
  0x20   : > { %951 = vmatmul.mubr.msk.bf16.vlgmr.msra.gmra.mxu1 %vm420_vm0, %v367_v23  ;;  %938 = vmatprep.mubr.msk.bf16.mxu0 %vm420_vm0, %v399_v50 }
  0x21   : > { %954 = vmatprep.mubr.msk.bf16.mxu1 %vm420_vm0, %v369_v29 }
  0x27   : > { %939 = vmatmul.mubr.msk.bf16.gmra.mxu0 %vm420_vm0, %v400_v55 }
  0x28   : > { %955 = vmatmul.mubr.msk.bf16.gmra.mxu1 %vm420_vm0, %v371_v46 }
  0xdf   : > { %v936_v58 = vpop.f32.mrf.mxu0 }
  0xe0   : > { %v476_v59 = vadd.f32 %v936_v58, %v859_v56  ;;  %v952_v60 = vpop.f32.mrf.mxu1 }
  0xe1   : > { %v592_v61 = vadd.f32 %v952_v60, %v864_v57  ;;  %v467_v62 = vpop.f32.mrf.mxu0 }
  0xe2   : > { %v896_v63 = vpack.c.bf16 %v476_v59, %v476_v59  ;;  %v468_v0 = vadd.f32 %v859_v56, %v467_v62  ;;  %v583_v1 = vpop.f32.mrf.mxu1 }
  0xe3   : > { %v904_v2 = vpack.c.bf16 %v592_v61, %v592_v61  ;;  %v584_v3 = vadd.f32 %v864_v57, %v583_v1  ;;  %v937_v4 = vpop.f32.mrf.mxu0 }
  0xe4   : > { %649 = vst.msk [vmem:[%s1174_s28 + $0x8] sm:$0xf] %vm646_vm1, %v896_v63  ;;  %v894_v5 = vpack.c.bf16 %v468_v0, %v468_v0  ;;  %v479_v6 = vadd.f32 %v937_v4, %v859_v56  ;;  %v953_v7 = vpop.f32.mrf.mxu1 }
  0xe5   : > { %689 = vst.msk [vmem:[%s1180_s8 + $0x8] sm:$0xf] %vm646_vm1, %v904_v2  ;;  %v902_v8 = vpack.c.bf16 %v584_v3, %v584_v3  ;;  %v595_v9 = vadd.f32 %v953_v7, %v864_v57  ;;  %v470_v10 = vpop.f32.mrf.mxu0 }
  0xe6   : > { %647 = vst.msk [vmem:[%s1174_s28] sm:$0xf] %vm646_vm1, %v894_v5  ;;  %v897_v11 = vpack.c.bf16 %v479_v6, %v479_v6  ;;  %v471_v12 = vadd.f32 %v859_v56, %v470_v10  ;;  %v586_v13 = vpop.f32.mrf.mxu1 }
  0xe7   : > { %687 = vst.msk [vmem:[%s1180_s8] sm:$0xf] %vm646_vm1, %v902_v8  ;;  %v905_v14 = vpack.c.bf16 %v595_v9, %v595_v9  ;;  %v587_v15 = vadd.f32 %v864_v57, %v586_v13  ;;  %v940_v16 = vpop.f32.mrf.mxu0 }
  0xe8   : > { %650 = vst.msk [vmem:[%s1174_s28 + $0xc] sm:$0xf] %vm646_vm1, %v897_v11  ;;  %v895_v17 = vpack.c.bf16 %v471_v12, %v471_v12  ;;  %v492_v18 = vadd.f32 %v940_v16, %v859_v56  ;;  %v956_v19 = vpop.f32.mrf.mxu1 }
  0xe9   : > { %690 = vst.msk [vmem:[%s1180_s8 + $0xc] sm:$0xf] %vm646_vm1, %v905_v14  ;;  %v903_v20 = vpack.c.bf16 %v587_v15, %v587_v15  ;;  %v608_v21 = vadd.f32 %v956_v19, %v864_v57  ;;  %v483_v22 = vpop.f32.mrf.mxu0 }
  0xea   : > { %648 = vst.msk [vmem:[%s1174_s28 + $0x4] sm:$0xf] %vm646_vm1, %v895_v17  ;;  %v900_v23 = vpack.c.bf16 %v492_v18, %v492_v18  ;;  %v484_v24 = vadd.f32 %v859_v56, %v483_v22  ;;  %v599_v25 = vpop.f32.mrf.mxu1 }
  0xeb   : > { %688 = vst.msk [vmem:[%s1180_s8 + $0x4] sm:$0xf] %vm646_vm1, %v903_v20  ;;  %v908_v26 = vpack.c.bf16 %v608_v21, %v608_v21  ;;  %v600_v27 = vadd.f32 %v864_v57, %v599_v25  ;;  %v941_v28 = vpop.f32.mrf.mxu0 }
  0xec   : > { %653 = vst.msk [vmem:[%s1174_s28 + $0x18] sm:$0xf] %vm646_vm1, %v900_v23  ;;  %v898_v29 = vpack.c.bf16 %v484_v24, %v484_v24  ;;  %v495_v30 = vadd.f32 %v941_v28, %v859_v56  ;;  %v957_v31 = vpop.f32.mrf.mxu1 }
  0xed   : > { %693 = vst.msk [vmem:[%s1180_s8 + $0x18] sm:$0xf] %vm646_vm1, %v908_v26  ;;  %v906_v32 = vpack.c.bf16 %v600_v27, %v600_v27  ;;  %v611_v33 = vadd.f32 %v957_v31, %v864_v57  ;;  %v486_v34 = vpop.f32.mrf.mxu0 }
  0xee   : > { %651 = vst.msk [vmem:[%s1174_s28 + $0x10] sm:$0xf] %vm646_vm1, %v898_v29  ;;  %v901_v35 = vpack.c.bf16 %v495_v30, %v495_v30  ;;  %v487_v36 = vadd.f32 %v859_v56, %v486_v34  ;;  %v602_v37 = vpop.f32.mrf.mxu1 }
  0xef   : > { %691 = vst.msk [vmem:[%s1180_s8 + $0x10] sm:$0xf] %vm646_vm1, %v906_v32  ;;  %v909_v38 = vpack.c.bf16 %v611_v33, %v611_v33  ;;  %v603_v39 = vadd.f32 %v864_v57, %v602_v37 }
  0xf0   : > { %654 = vst.msk [vmem:[%s1174_s28 + $0x1c] sm:$0xf] %vm646_vm1, %v901_v35  ;;  %v899_v40 = vpack.c.bf16 %v487_v36, %v487_v36 }
  0xf1   : > { %694 = vst.msk [vmem:[%s1180_s8 + $0x1c] sm:$0xf] %vm646_vm1, %v909_v38  ;;  %v907_v41 = vpack.c.bf16 %v603_v39, %v603_v39 }
  0xf2   : > { %652 = vst.msk [vmem:[%s1174_s28 + $0x14] sm:$0xf] %vm646_vm1, %v899_v40 }
  0xf3   : > { %692 = vst.msk [vmem:[%s1180_s8 + $0x14] sm:$0xf] %vm646_vm1, %v907_v41 }
  0xf4 PF: > { %s18_s26 = sadd.s32 1, %s1012_s26   ;;  %s1231_s24 = smov %s1008_s25 }
  0xf5   : > { %p15_p5 = scmp.ge.s32.totalorder %s18_s26, 4   ;;  %s1232_s25 = smov %s1234_s27 }
  0xf7   :  { %17 = sbr.rel (!%p15_p5) target bundleno = 2 (0x2), region = 89 }

// kernel: fwd.7
= control target key start
LH: loop header
LB: loop body
LE: loop exit
PB: predicated region body
PF: predicated region fallthrough
CT: control target
= control target key end

     0   :  { %s3635_s18 = smov 0   ;;  %s3637_s19 = smov 0   ;;  %s4700_s0 = inlined_call_operand.vmem [shape: bf16[2,256,64], index: 0, kind: input, shape index: {}]   ;;  %s4701_s1 = inlined_call_operand.vmem [shape: bf16[2,64,64], index: 1, kind: input, shape index: {}]   ;;  %s4702_s2 = inlined_call_operand.vmem [shape: bf16[2,64,64], index: 2, kind: input, shape index: {}]   ;;  %s4703_s3 = inlined_call_operand.vmem [shape: f32[64,64], index: 3, kind: input, shape index: {}]   ;;  %s4704_s4 = inlined_call_operand.vmem [shape: f32[1,64], index: 4, kind: input, shape index: {}]   ;;  %s4705_s5 = inlined_call_operand.vmem [shape: f32[2,256,64], index: 5, kind: output, shape index: {}]  }
   0x1   :  { %s3639_s20 = smov 0  }
   0x2 LB: > { %s27_s21 = sadd.s32 1, %s3598_s19  ;;  %p2775_p0 = scmp.ge.s32.totalorder %s3602_s20, 1  ;;  %s3602_s20 = sphi %s3639_s20, %s15_s20   ;;  %s3598_s19 = sphi %s3637_s19, %s4789_s19   ;;  %s3594_s18 = sphi %s3635_s18, %s4788_s18  }
   0x3   : > { %p29_p1 = scmp.ge.s32.totalorder %s27_s21, 2  ;;  %p228_p2 = scmp.lt.s32.totalorder %s3602_s20, 3 }
   0x5   : > { %s4791_s21 = smov (%p29_p1, %s27_s21), 0  ;;  %p229_p3 = pnand %p2775_p0, %p228_p2 }
   0x7   : > { %232 = sbr.rel (%p229_p3) target bundleno = 1402 (0x57a), region = 40 }
   0xc   : > { %p275_p4 = scmp.lt.s32.totalorder %s3594_s18, 1  ;;  %vm453_vm0 = vcmask 261120   ;;  %vm675_vm1 = vcmask 523264   ;;  %s3604_s8 = smov 96  }
   0xe   : > { %s4793_s18 = smov (!%p275_p4, %s3594_s18), 1 }
   0xf   : > { %s2907_s22 = sshll.u32 %s4793_s18, 7  ;;  %s2908_s23 = sshll.u32 %s4793_s18, 5 }
  0x10   : > { %s288_s26 = scalar_lea.vmem %s4701_s1, %s2908_s23  ;;  %s3667_s29 = scalar_lea.vmem %s4700_s0, %s2907_s22 }
  0x11   : > { %v3662_v0 = vld [vmem:[%s288_s26 + $0x18] sm:$0xff]   ;;  %v3669_v1 = vld [vmem:[%s288_s26 + $0x10] sm:$0xff]   ;;  %v3678_v3 = vld [vmem:[%s3667_s29] sm:$0xff]   ;;  %s293_s7 = scalar_lea.vmem %s4702_s2, %s2908_s23 }
  0x12   : > { %3267 = vmatprep.subr.msk.bf16.mxu0 %vm453_vm0, %v3662_v0  ;;  %v512_v2 = vsel %vm453_vm0, %v3662_v0, 0  ;;  %3035 = vmatprep.mubr.msk.bf16.mxu0 %vm453_vm0, %v3678_v3  ;;  %v509_v4 = vsel %vm453_vm0, %v3669_v1, 0  ;;  %v3684_v5 = vld [vmem:[%s288_s26 + $0x8] sm:$0xff]   ;;  %v3690_v7 = vld [vmem:[%s288_s26] sm:$0xff]   ;;  %v3700_v10 = vld [vmem:[%s3667_s29 + $0x10] sm:$0xff]  }
  0x13   : > { %3028 = vmatpush3.bf16.xpose.msra.mxu0 %v512_v2  ;;  %v506_v6 = vsel %vm453_vm0, %v3684_v5, 0  ;;  %v503_v8 = vsel %vm453_vm0, %v3690_v7, 0  ;;  %v3697_v9 = vld [vmem:[%s3667_s29 + $0x8] sm:$0xff]   ;;  %v3707_v11 = vld [vmem:[%s3667_s29 + $0x18] sm:$0xff]   ;;  %v3710_v12 = vld [vmem:[%s3667_s29 + $0x20] sm:$0xff]  }
  0x14   : > { %3268 = vmatprep.subr.msk.bf16.mxu0 %vm453_vm0, %v3669_v1  ;;  %v3717_v13 = vld [vmem:[%s3667_s29 + $0x28] sm:$0xff]   ;;  %v3720_v14 = vld [vmem:[%s3667_s29 + $0x30] sm:$0xff]   ;;  %v3727_v15 = vld [vmem:[%s3667_s29 + $0x38] sm:$0xff]  }
  0x15   : > { %v3730_v16 = vld [vmem:[%s3667_s29 + $0x40] sm:$0xff]   ;;  %v3737_v17 = vld [vmem:[%s3667_s29 + $0x48] sm:$0xff]   ;;  %v3740_v18 = vld [vmem:[%s3667_s29 + $0x50] sm:$0xff]  }
  0x16   : > { %v3747_v19 = vld [vmem:[%s3667_s29 + $0x58] sm:$0xff]   ;;  %v3750_v20 = vld [vmem:[%s3667_s29 + $0x60] sm:$0xff]   ;;  %v3757_v21 = vld [vmem:[%s3667_s29 + $0x68] sm:$0xff]  }
  0x17   : > { %v3760_v22 = vld [vmem:[%s3667_s29 + $0x70] sm:$0xff]   ;;  %v3767_v23 = vld [vmem:[%s3667_s29 + $0x78] sm:$0xff]   ;;  %v3842_v55 = vld [vmem:[%s293_s7 + $0x8] sm:$0xff]   ;;  %s2910_s29 = sshll.u32 %s4793_s18, 8 }
  0x18   : > { %v3818_v45 = vld [vmem:[%s293_s7 + $0x18] sm:$0xff]   ;;  %v3830_v50 = vld [vmem:[%s293_s7 + $0x10] sm:$0xff]   ;;  %v3854_v60 = vld [vmem:[%s293_s7] sm:$0xff]   ;;  %s4593_s9 = scalar_lea.vmem %s4705_s5, %s2910_s29 }
  0x19   : > { %3067 = vmatprep.subr.bf16.mxu1 %v3818_v45 }
  0x1a   : > { %3068 = vmatpush3.bf16.msra.mxu1 %v3818_v45 }
  0x1b   : > { %3030 = vmatpush3.bf16.xpose.msra.mxu0 %v509_v4  ;;  %3069 = vmatprep.subr.bf16.mxu1 %v3830_v50 }
  0x1c   : > { %3269 = vmatprep.subr.msk.bf16.mxu0 %vm453_vm0, %v3684_v5 }
  0x1e   : > { %3070 = vmatpush3.bf16.msra.mxu1 %v3830_v50 }
  0x1f   : > { %3071 = vmatprep.subr.bf16.mxu1 %v3842_v55 }
  0x22   : > { %3072 = vmatpush3.bf16.msra.mxu1 %v3842_v55 }
  0x23   : > { %3032 = vmatpush3.bf16.xpose.msra.mxu0 %v506_v6  ;;  %3073 = vmatprep.subr.bf16.mxu1 %v3854_v60 }
  0x24   : > { %3270 = vmatprep.subr.msk.bf16.mxu0 %vm453_vm0, %v3690_v7 }
  0x26   : > { %3074 = vmatpush3.bf16.msra.mxu1 %v3854_v60 }
  0x2b   : > { %3034 = vmatpush3.bf16.xpose.msra.mxu0 %v503_v8 }
  0x32   : > { %3036 = vmatmul.mubr.msk.bf16.vlgmr.msra.gmra.mxu0 %vm453_vm0, %v3697_v9 }
  0x33   : > { %3039 = vmatprep.mubr.msk.bf16.mxu0 %vm453_vm0, %v3700_v10 }
  0x3a   : > { %3040 = vmatmul.mubr.msk.bf16.gmra.mxu0 %vm453_vm0, %v3707_v11 }
  0x3b   : > { %3043 = vmatprep.mubr.msk.bf16.mxu0 %vm453_vm0, %v3710_v12 }
  0x42   : > { %3044 = vmatmul.mubr.msk.bf16.gmra.mxu0 %vm453_vm0, %v3717_v13 }
  0x43   : > { %3047 = vmatprep.mubr.msk.bf16.mxu0 %vm453_vm0, %v3720_v14 }
  0x4a   : > { %3048 = vmatmul.mubr.msk.bf16.gmra.mxu0 %vm453_vm0, %v3727_v15 }
  0x4b   : > { %3051 = vmatprep.mubr.msk.bf16.mxu0 %vm453_vm0, %v3730_v16 }
  0x52   : > { %3052 = vmatmul.mubr.msk.bf16.gmra.mxu0 %vm453_vm0, %v3737_v17 }
  0x53   : > { %3055 = vmatprep.mubr.msk.bf16.mxu0 %vm453_vm0, %v3740_v18 }
  0x5a   : > { %3056 = vmatmul.mubr.msk.bf16.gmra.mxu0 %vm453_vm0, %v3747_v19 }
  0x5b   : > { %3059 = vmatprep.mubr.msk.bf16.mxu0 %vm453_vm0, %v3750_v20 }
  0x62   : > { %3060 = vmatmul.mubr.msk.bf16.gmra.mxu0 %vm453_vm0, %v3757_v21 }
  0x63   : > { %3063 = vmatprep.mubr.msk.bf16.mxu0 %vm453_vm0, %v3760_v22 }
  0x6a   : > { %3064 = vmatmul.mubr.msk.bf16.gmra.mxu0 %vm453_vm0, %v3767_v23 }
  0xf2   : > { %v3771_v24 = vpop.f32.mrf.mxu0 }
  0xf3   : > { %v682_v25 = vsel %vm675_vm1, %v3771_v24, -inf }
  0xf4   : > { %683 = vmax.xlane.f32.xlu1 %v682_v25  ;;  %v3775_v26 = vpop.f32.mrf.mxu0 }
  0xf5   : > { %v676_v27 = vsel %vm675_vm1, %v3775_v26, -inf }
  0xf6   : > { %677 = vmax.xlane.f32.xlu0 %v676_v27  ;;  %v3779_v28 = vpop.f32.mrf.mxu0 }
  0xf7   : > { %v685_v29 = vsel %vm675_vm1, %v3779_v28, -inf }
  0xf8   : > { %686 = vmax.xlane.f32.xlu1 %v685_v29  ;;  %v3783_v30 = vpop.f32.mrf.mxu0 }
  0xf9   : > { %v679_v31 = vsel %vm675_vm1, %v3783_v30, -inf }
  0xfa   : > { %680 = vmax.xlane.f32.xlu0 %v679_v31  ;;  %v3787_v32 = vpop.f32.mrf.mxu0 }
  0xfb   : > { %v694_v34 = vsel %vm675_vm1, %v3787_v32, -inf }
  0xfc   : > { %v3789_v33 = vpop.f32.mrf.mxu0 }
  0xfd   : > { %v688_v38 = vsel %vm675_vm1, %v3789_v33, -inf }
  0xfe   : > { %695 = vmax.xlane.f32.xlu0 %v694_v34  ;;  %v3793_v35 = vpop.f32.mrf.mxu0 }
  0xff   : > { %v697_v36 = vsel %vm675_vm1, %v3793_v35, -inf }
 0x100   : > { %698 = vmax.xlane.f32.xlu1 %v697_v36  ;;  %v3797_v37 = vpop.f32.mrf.mxu0 }
 0x101   : > { %v691_v40 = vsel %vm675_vm1, %v3797_v37, -inf }
 0x102   : > { %689 = vmax.xlane.f32.xlu0 %v688_v38  ;;  %v3801_v39 = vpop.f32.mrf.mxu0 }
 0x103   : > { %v706_v42 = vsel %vm675_vm1, %v3801_v39, -inf }
 0x104   : > { %692 = vmax.xlane.f32.xlu1 %v691_v40  ;;  %v3805_v41 = vpop.f32.mrf.mxu0 }
 0x105   : > { %v700_v47 = vsel %vm675_vm1, %v3805_v41, -inf }
 0x106   : > { %707 = vmax.xlane.f32.xlu0 %v706_v42  ;;  %v3809_v43 = vpop.f32.mrf.mxu0 }
 0x107   : > { %v709_v44 = vsel %vm675_vm1, %v3809_v43, -inf }
 0x108   : > { %710 = vmax.xlane.f32.xlu1 %v709_v44  ;;  %v3820_v46 = vpop.f32.mrf.mxu0 }
 0x109   : > { %v703_v49 = vsel %vm675_vm1, %v3820_v46, -inf }
 0x10a   : > { %701 = vmax.xlane.f32.xlu0 %v700_v47  ;;  %v3825_v48 = vpop.f32.mrf.mxu0 }
 0x10b   : > { %v718_v52 = vsel %vm675_vm1, %v3825_v48, -inf }
 0x10c   : > { %704 = vmax.xlane.f32.xlu1 %v703_v49  ;;  %v3832_v51 = vpop.f32.mrf.mxu0 }
 0x10d   : > { %v712_v57 = vsel %vm675_vm1, %v3832_v51, -inf }
 0x10e   : > { %719 = vmax.xlane.f32.xlu0 %v718_v52  ;;  %v3837_v53 = vpop.f32.mrf.mxu0 }
 0x10f   : > { %v721_v54 = vsel %vm675_vm1, %v3837_v53, -inf }
 0x110   : > { %722 = vmax.xlane.f32.xlu1 %v721_v54  ;;  %v3844_v56 = vpop.f32.mrf.mxu0 }
 0x111   : > { %v715_v59 = vsel %vm675_vm1, %v3844_v56, -inf }
 0x112   : > { %713 = vmax.xlane.f32.xlu0 %v712_v57  ;;  %v3849_v58 = vpop.f32.mrf.mxu0 }
 0x113   : > { %v730_v62 = vsel %vm675_vm1, %v3849_v58, -inf }
 0x114   : > { %716 = vmax.xlane.f32.xlu1 %v715_v59  ;;  %v3856_v61 = vpop.f32.mrf.mxu0 }
 0x115   : > { %v724_v6 = vsel %vm675_vm1, %v3856_v61, -inf }
 0x116   : > { %731 = vmax.xlane.f32.xlu0 %v730_v62  ;;  %v3861_v63 = vpop.f32.mrf.mxu0 }
 0x117   : > { %v733_v2 = vsel %vm675_vm1, %v3861_v63, -inf }
 0x118   : > { %734 = vmax.xlane.f32.xlu1 %v733_v2  ;;  %v3866_v4 = vpop.f32.mrf.mxu0 }
 0x119   : > { %v727_v25 = vsel %vm675_vm1, %v3866_v4, -inf }
 0x11a   : > { %725 = vmax.xlane.f32.xlu0 %v724_v6  ;;  %v3870_v8 = vpop.f32.mrf.mxu0 }
 0x11b   : > { %v742_v29 = vsel %vm675_vm1, %v3870_v8, -inf }
 0x11c   : > { %728 = vmax.xlane.f32.xlu1 %v727_v25  ;;  %v3874_v27 = vpop.f32.mrf.mxu0 }
 0x11d   : > { %v736_v38 = vsel %vm675_vm1, %v3874_v27, -inf }
 0x11e   : > { %743 = vmax.xlane.f32.xlu0 %v742_v29  ;;  %v3878_v31 = vpop.f32.mrf.mxu0 }
 0x11f   : > { %v745_v34 = vsel %vm675_vm1, %v3878_v31, -inf }
 0x120   : > { %746 = vmax.xlane.f32.xlu1 %v745_v34  ;;  %v3882_v36 = vpop.f32.mrf.mxu0 }
 0x121   : > { %v739_v42 = vsel %vm675_vm1, %v3882_v36, -inf }
 0x122   : > { %737 = vmax.xlane.f32.xlu0 %v736_v38  ;;  %v3886_v40 = vpop.f32.mrf.mxu0 }
 0x123   : > { %v754_v47 = vsel %vm675_vm1, %v3886_v40, -inf }
 0x124   : > { %740 = vmax.xlane.f32.xlu1 %v739_v42  ;;  %v3890_v44 = vpop.f32.mrf.mxu0 }
 0x125   : > { %v748_v57 = vsel %vm675_vm1, %v3890_v44, -inf }
 0x126   : > { %755 = vmax.xlane.f32.xlu0 %v754_v47  ;;  %v3894_v49 = vpop.f32.mrf.mxu0 }
 0x127   : > { %v757_v52 = vsel %vm675_vm1, %v3894_v49, -inf }
 0x128   : > { %758 = vmax.xlane.f32.xlu1 %v757_v52  ;;  %v3898_v54 = vpop.f32.mrf.mxu0 }
 0x129   : > { %v751_v62 = vsel %vm675_vm1, %v3898_v54, -inf }
 0x12a   : > { %749 = vmax.xlane.f32.xlu0 %v748_v57  ;;  %v3902_v59 = vpop.f32.mrf.mxu0 }
 0x12b   : > { %v766_v2 = vsel %vm675_vm1, %v3902_v59, -inf }
 0x12c   : > { %752 = vmax.xlane.f32.xlu1 %v751_v62  ;;  %v3908_v6 = vpop.f32.mrf.mxu0 }
 0x12d   : > { %v760_v25 = vsel %vm675_vm1, %v3908_v6, -inf }
 0x12e   : > { %767 = vmax.xlane.f32.xlu0 %v766_v2 }
 0x132   : > { %761 = vmax.xlane.f32.xlu0 %v760_v25 }
 0x13d   : > { %1335 = vrot.lane.b32.xlu1 %v3669_v1, %s3604_s8  ;;  %v3930_v1 = vpop.f32.mrf.mxu0 }
 0x141   : > { %1333 = vrot.lane.b32.xlu1 %v3684_v5, %s3604_s8 }
 0x148   : > { %1337 = vrot.lane.b32.xlu0 %v3662_v0, %s3604_s8  ;;  %v769_v0 = vsel %vm675_vm1, %v3930_v1, -inf }
 0x14c   : > { %1299 = vrot.lane.b32.xlu0 %v3678_v3, %s3604_s8  ;;  %v3936_v3 = vpop.f32.mrf.mxu0 }
 0x14d   : > { %v763_v5 = vsel %vm675_vm1, %v3936_v3, -inf }
 0x150   : > { %1303 = vrot.lane.b32.xlu0 %v3700_v10, %s3604_s8 }
 0x154   : > { %1307 = vrot.lane.b32.xlu0 %v3710_v12, %s3604_s8 }
 0x158   : > { %1311 = vrot.lane.b32.xlu0 %v3720_v14, %s3604_s8 }
 0x15c   : > { %1315 = vrot.lane.b32.xlu0 %v3730_v16, %s3604_s8 }
 0x160   : > { %1319 = vrot.lane.b32.xlu0 %v3740_v18, %s3604_s8 }
 0x164   : > { %1323 = vrot.lane.b32.xlu0 %v3750_v20, %s3604_s8 }
 0x165   : > { %770 = vmax.xlane.f32.xlu1 %v769_v0 }
 0x168   : > { %1327 = vrot.lane.b32.xlu0 %v3760_v22, %s3604_s8 }
 0x169   : > { %764 = vmax.xlane.f32.xlu1 %v763_v5 }
 0x16c   : > { %1870 = vrot.lane.b32.xlu0 %v3818_v45, %s3604_s8 }
 0x17a   : > { %1331 = vrot.lane.b32.xlu1 %v3690_v7, %s3604_s8 }
 0x17d   : > { %v684_v10 = vpop.xlane.xlu1 %683 }
 0x17e   : > { %1301 = vrot.lane.b32.xlu1 %v3697_v9, %s3604_s8  ;;  %v774_v16 = vsub.f32 %v3771_v24, %v684_v10 }
 0x17f   : > { %v678_v12 = vpop.xlane.xlu0 %677 }
 0x180   : > { %v772_v14 = vsub.f32 %v3775_v26, %v678_v12  ;;  %v808_v34 = vmul.f32 1.442695, %v774_v16 }
 0x181   : > { %v687_v18 = vpop.xlane.xlu1 %686 }
 0x182   : > { %v804_v20 = vmul.f32 1.442695, %v772_v14  ;;  %v775_v22 = vsub.f32 %v3779_v28, %v687_v18  ;;  %1305 = vrot.lane.b32.xlu1 %v3707_v11, %s3604_s8 }
 0x183   : > { %v681_v45 = vpop.xlane.xlu0 %680 }
 0x184   : > { %v810_v29 = vmul.f32 1.442695, %v775_v22  ;;  %v773_v7 = vsub.f32 %v3783_v30, %v681_v45  ;;  %3324 = vpow2.f32 %v804_v20 }
 0x186   : > { %v806_v38 = vmul.f32 1.442695, %v773_v7  ;;  %1309 = vrot.lane.b32.xlu1 %v3717_v13, %s3604_s8  ;;  %3326 = vpow2.f32 %v810_v29 }
 0x187   : > { %v696_v9 = vpop.xlane.xlu0 %695 }
 0x188   : > { %3328 = vpow2.f32 %v806_v38  ;;  %v778_v11 = vsub.f32 %v3787_v32, %v696_v9 }
 0x189   : > { %3330 = vpow2.f32 %v808_v34  ;;  %v699_v24 = vpop.xlane.xlu1 %698 }
 0x18a   : > { %v779_v26 = vsub.f32 %v3793_v35, %v699_v24  ;;  %1313 = vrot.lane.b32.xlu1 %v3727_v15, %s3604_s8  ;;  %v816_v57 = vmul.f32 1.442695, %v778_v11 }
 0x18b   : > { %v690_v28 = vpop.xlane.xlu0 %689 }
 0x18c   : > { %v818_v30 = vmul.f32 1.442695, %v779_v26  ;;  %v776_v42 = vsub.f32 %v3789_v33, %v690_v28 }
 0x18d   : > { %v693_v47 = vpop.xlane.xlu1 %692 }
 0x18e   : > { %v812_v52 = vmul.f32 1.442695, %v776_v42  ;;  %v777_v13 = vsub.f32 %v3797_v37, %v693_v47  ;;  %1317 = vrot.lane.b32.xlu1 %v3737_v17, %s3604_s8  ;;  %3332 = vpow2.f32 %v818_v30 }
 0x18f   : > { %v708_v62 = vpop.xlane.xlu0 %707 }
 0x190   : > { %v814_v35 = vmul.f32 1.442695, %v777_v13  ;;  %3334 = vpow2.f32 %v812_v52  ;;  %v782_v33 = vsub.f32 %v3801_v39, %v708_v62 }
 0x191   : > { %v711_v2 = vpop.xlane.xlu1 %710  ;;  %v3967_v32 = vpop.eup %3324 }
 0x192   : > { %3336 = vpow2.f32 %v814_v35  ;;  %v783_v15 = vsub.f32 %v3809_v43, %v711_v2  ;;  %1321 = vrot.lane.b32.xlu1 %v3747_v19, %s3604_s8  ;;  %v824_v39 = vmul.f32 1.442695, %v782_v33 }
 0x193   : > { %3338 = vpow2.f32 %v816_v57  ;;  %v702_v37 = vpop.xlane.xlu0 %701  ;;  %v3970_v25 = vpop.eup %3326 }
 0x194   : > { %v826_v17 = vmul.f32 1.442695, %v783_v15  ;;  %v780_v0 = vsub.f32 %v3805_v41, %v702_v37 }
 0x195   : > { %v3973_v5 = vpop.eup %3328  ;;  %v705_v10 = vpop.xlane.xlu1 %704 }
 0x196   : > { %v3975_v12 = vpop.eup %3330  ;;  %v820_v43 = vmul.f32 1.442695, %v780_v0  ;;  %v781_v14 = vsub.f32 %v3820_v46, %v705_v10  ;;  %v964_v19 = vpack.c.bf16 %v3973_v5, %v3967_v32  ;;  %1325 = vrot.lane.b32.xlu1 %v3757_v21, %s3604_s8  ;;  %3340 = vpow2.f32 %v826_v17 }
 0x197   : > { %v720_v16 = vpop.xlane.xlu0 %719  ;;  %v965_v18 = vpack.c.bf16 %v3970_v25, %v3975_v12 }
 0x198   : > { %v822_v41 = vmul.f32 1.442695, %v781_v14  ;;  %3075 = vmatprep.mubr.msk.bf16.mxu1 %vm675_vm1, %v964_v19  ;;  %3342 = vpow2.f32 %v820_v43  ;;  %v786_v21 = vsub.f32 %v3825_v48, %v720_v16 }
 0x199   : > { %3076 = vmatmul.mubr.msk.bf16.vlgmr.msra.gmra.mxu1 %vm675_vm1, %v965_v18  ;;  %v723_v20 = vpop.xlane.xlu1 %722 }
 0x19a   : > { %3344 = vpow2.f32 %v822_v41  ;;  %v787_v46 = vsub.f32 %v3837_v53, %v723_v20  ;;  %1329 = vrot.lane.b32.xlu1 %v3767_v23, %s3604_s8  ;;  %v832_v23 = vmul.f32 1.442695, %v786_v21 }
 0x19b   : > { %3346 = vpow2.f32 %v824_v39  ;;  %v714_v22 = vpop.xlane.xlu0 %713  ;;  %v3991_v7 = vpop.eup %3332 }
 0x19c   : > { %v834_v45 = vmul.f32 1.442695, %v787_v46  ;;  %v784_v29 = vsub.f32 %v3832_v51, %v714_v22 }
 0x19d   : > { %v717_v34 = vpop.xlane.xlu1 %716  ;;  %v3993_v38 = vpop.eup %3334 }
 0x19e   : > { %v828_v9 = vmul.f32 1.442695, %v784_v29  ;;  %v785_v24 = vsub.f32 %v3844_v56, %v717_v34  ;;  %1868 = vrot.lane.b32.xlu1 %v3830_v50, %s3604_s8  ;;  %3348 = vpow2.f32 %v834_v45 }
 0x19f   : > { %v3998_v53 = vpop.eup %3336  ;;  %v732_v26 = vpop.xlane.xlu0 %731 }
 0x1a0   : > { %v4000_v48 = vpop.eup %3338  ;;  %v830_v11 = vmul.f32 1.442695, %v785_v24  ;;  %v966_v51 = vpack.c.bf16 %v3998_v53, %v3993_v38  ;;  %3350 = vpow2.f32 %v828_v9  ;;  %v790_v50 = vsub.f32 %v3849_v58, %v732_v26 }
 0x1a1   : > { %v735_v28 = vpop.xlane.xlu1 %734  ;;  %v967_v30 = vpack.c.bf16 %v3991_v7, %v4000_v48 }
 0x1a2   : > { %3352 = vpow2.f32 %v830_v11  ;;  %v791_v56 = vsub.f32 %v3861_v63, %v735_v28  ;;  %3079 = vmatprep.mubr.msk.bf16.mxu1 %vm675_vm1, %v966_v51  ;;  %v840_v15 = vmul.f32 1.442695, %v790_v50 }
 0x1a3   : > { %3354 = vpow2.f32 %v832_v23  ;;  %3080 = vmatmul.mubr.msk.bf16.gmra.mxu1 %vm675_vm1, %v967_v30  ;;  %v726_v42 = vpop.xlane.xlu0 %725  ;;  %v4011_v13 = vpop.eup %3340 }
 0x1a4   : > { %v842_v47 = vmul.f32 1.442695, %v791_v56  ;;  %v788_v52 = vsub.f32 %v3856_v61, %v726_v42 }
 0x1a5   : > { %v729_v57 = vpop.xlane.xlu1 %728  ;;  %v4013_v62 = vpop.eup %3342 }
 0x1a6   : > { %v836_v35 = vmul.f32 1.442695, %v788_v52  ;;  %v789_v2 = vsub.f32 %v3866_v4, %v729_v57  ;;  %3356 = vpow2.f32 %v842_v47 }
 0x1a7   : > { %v4016_v63 = vpop.eup %3344  ;;  %v744_v33 = vpop.xlane.xlu0 %743 }
 0x1a8   : > { %v4018_v37 = vpop.eup %3346  ;;  %v838_v58 = vmul.f32 1.442695, %v789_v2  ;;  %v968_v17 = vpack.c.bf16 %v4016_v63, %v4013_v62  ;;  %3358 = vpow2.f32 %v836_v35  ;;  %v794_v4 = vsub.f32 %v3870_v8, %v744_v33 }
 0x1a9   : > { %v747_v61 = vpop.xlane.xlu1 %746  ;;  %v969_v0 = vpack.c.bf16 %v4011_v13, %v4018_v37 }
 0x1aa   : > { %3360 = vpow2.f32 %v838_v58  ;;  %v795_v10 = vsub.f32 %v3878_v31, %v747_v61  ;;  %3083 = vmatprep.mubr.msk.bf16.mxu1 %vm675_vm1, %v968_v17  ;;  %v848_v46 = vmul.f32 1.442695, %v794_v4 }
 0x1ab   : > { %3362 = vpow2.f32 %v840_v15  ;;  %3084 = vmatmul.mubr.msk.bf16.gmra.mxu1 %vm675_vm1, %v969_v0  ;;  %v738_v43 = vpop.xlane.xlu0 %737  ;;  %v4029_v39 = vpop.eup %3348 }
 0x1ac   : > { %v850_v14 = vmul.f32 1.442695, %v795_v10  ;;  %v792_v19 = vsub.f32 %v3874_v27, %v738_v43 }
 0x1ad   : > { %v741_v16 = vpop.xlane.xlu1 %740  ;;  %v4031_v18 = vpop.eup %3350 }
 0x1ae   : > { %v844_v41 = vmul.f32 1.442695, %v792_v19  ;;  %v793_v20 = vsub.f32 %v3882_v36, %v741_v16  ;;  %3364 = vpow2.f32 %v850_v14 }
 0x1af   : > { %v4034_v31 = vpop.eup %3352  ;;  %v756_v21 = vpop.xlane.xlu0 %755 }
 0x1b0   : > { %v4036_v22 = vpop.eup %3354  ;;  %v846_v8 = vmul.f32 1.442695, %v793_v20  ;;  %v970_v45 = vpack.c.bf16 %v4034_v31, %v4031_v18  ;;  %3366 = vpow2.f32 %v844_v41  ;;  %v798_v36 = vsub.f32 %v3886_v40, %v756_v21 }
 0x1b1   : > { %v759_v27 = vpop.xlane.xlu1 %758  ;;  %v971_v29 = vpack.c.bf16 %v4029_v39, %v4036_v22 }
 0x1b2   : > { %3368 = vpow2.f32 %v846_v8  ;;  %v799_v34 = vsub.f32 %v3894_v49, %v759_v27  ;;  %3087 = vmatprep.mubr.msk.bf16.mxu1 %vm675_vm1, %v970_v45  ;;  %v856_v56 = vmul.f32 1.442695, %v798_v36 }
 0x1b3   : > { %3370 = vpow2.f32 %v848_v46  ;;  %3088 = vmatmul.mubr.msk.bf16.gmra.mxu1 %vm675_vm1, %v971_v29  ;;  %v750_v9 = vpop.xlane.xlu0 %749  ;;  %v4047_v26 = vpop.eup %3356 }
 0x1b4   : > { %v858_v24 = vmul.f32 1.442695, %v799_v34  ;;  %v796_v23 = vsub.f32 %v3890_v44, %v750_v9 }
 0x1b5   : > { %v753_v11 = vpop.xlane.xlu1 %752  ;;  %v4049_v51 = vpop.eup %3358 }
 0x1b6   : > { %v852_v28 = vmul.f32 1.442695, %v796_v23  ;;  %v797_v30 = vsub.f32 %v3898_v54, %v753_v11  ;;  %3372 = vpow2.f32 %v858_v24 }
 0x1b7   : > { %v4052_v49 = vpop.eup %3360  ;;  %v768_v50 = vpop.xlane.xlu0 %767 }
 0x1b8   : > { %v4054_v42 = vpop.eup %3362  ;;  %v854_v40 = vmul.f32 1.442695, %v797_v30  ;;  %v972_v47 = vpack.c.bf16 %v4052_v49, %v4049_v51  ;;  %3374 = vpow2.f32 %v852_v28  ;;  %v802_v45 = vsub.f32 %v3902_v59, %v768_v50 }
 0x1b9   : > { %v973_v44 = vpack.c.bf16 %v4047_v26, %v4054_v42  ;;  %v1336_v17 = vpop.permute.xlu1 %1335 }
 0x1ba   : > { %3376 = vpow2.f32 %v854_v40  ;;  %3091 = vmatprep.mubr.msk.bf16.mxu1 %vm675_vm1, %v972_v47  ;;  %v1394_v14 = vsel %vm453_vm0, %v1336_v17, 0  ;;  %v864_v9 = vmul.f32 1.442695, %v802_v45 }
 0x1bb   : > { %3378 = vpow2.f32 %v856_v56  ;;  %3092 = vmatmul.mubr.msk.bf16.gmra.mxu1 %vm675_vm1, %v973_v44  ;;  %v762_v54 = vpop.xlane.xlu0 %761  ;;  %v4062_v52 = vpop.eup %3364 }
 0x1bc   : > { %v800_v46 = vsub.f32 %v3908_v6, %v762_v54 }
 0x1bd   : > { %v4064_v57 = vpop.eup %3366  ;;  %v1334_v16 = vpop.permute.xlu1 %1333 }
 0x1be   : > { %v1391_v20 = vsel %vm453_vm0, %v1334_v16, 0  ;;  %v860_v27 = vmul.f32 1.442695, %v800_v46 }
 0x1bf   : > { %v4066_v35 = vpop.eup %3368  ;;  %v1338_v2 = vpop.permute.xlu0 %1337 }
 0x1c0   : > { %v4068_v15 = vpop.eup %3370  ;;  %3271 = vmatprep.subr.msk.bf16.mxu1 %vm453_vm0, %v1338_v2  ;;  %v1397_v33 = vsel %vm453_vm0, %v1338_v2, 0  ;;  %v974_v58 = vpack.c.bf16 %v4066_v35, %v4064_v57  ;;  %3380 = vpow2.f32 %v860_v27 }
 0x1c1   : > { %3108 = vmatpush3.bf16.xpose.msra.mxu1 %v1397_v33  ;;  %v975_v61 = vpack.c.bf16 %v4062_v52, %v4068_v15 }
 0x1c2   : > { %3095 = vmatprep.mubr.msk.bf16.mxu1 %vm675_vm1, %v974_v58  ;;  %3272 = vmatprep.subr.msk.bf16.mxu1 %vm453_vm0, %v1336_v17 }
 0x1c3   : > { %3096 = vmatmul.mubr.msk.bf16.gmra.mxu1 %vm675_vm1, %v975_v61  ;;  %v4079_v0 = vpop.eup %3372  ;;  %v1300_v56 = vpop.permute.xlu0 %1299 }
 0x1c5   : > { %v4081_v10 = vpop.eup %3374 }
 0x1c7   : > { %v4083_v4 = vpop.eup %3376  ;;  %v1304_v40 = vpop.permute.xlu0 %1303 }
 0x1c8   : > { %v4085_v43 = vpop.eup %3378  ;;  %v976_v19 = vpack.c.bf16 %v4083_v4, %v4081_v10 }
 0x1c9   : > { %3110 = vmatpush3.bf16.xpose.msra.mxu1 %v1394_v14  ;;  %v977_v41 = vpack.c.bf16 %v4079_v0, %v4085_v43 }
 0x1ca   : > { %3099 = vmatprep.mubr.msk.bf16.mxu1 %vm675_vm1, %v976_v19  ;;  %3273 = vmatprep.subr.msk.bf16.mxu1 %vm453_vm0, %v1334_v16 }
 0x1cb   : > { %3100 = vmatmul.mubr.msk.bf16.gmra.mxu1 %vm675_vm1, %v977_v41  ;;  %v1308_v44 = vpop.permute.xlu0 %1307 }
 0x1cf   : > { %v1312_v2 = vpop.permute.xlu0 %1311 }
 0x1d1   : > { %3112 = vmatpush3.bf16.xpose.msra.mxu1 %v1391_v20 }
 0x1d3   : > { %v1316_v58 = vpop.permute.xlu0 %1315 }
 0x1d7   : > { %v1320_v61 = vpop.permute.xlu0 %1319 }
 0x1db   : > { %v1324_v19 = vpop.permute.xlu0 %1323 }
 0x1df   : > { %v1328_v41 = vpop.permute.xlu0 %1327 }
 0x1ee   : > { %v771_v21 = vpop.xlane.xlu1 %770 }
 0x1ef   : > { %v803_v8 = vsub.f32 %v3930_v1, %v771_v21  ;;  %v4102_v1 = vpop.eup %3380 }
 0x1f1   : > { %v866_v29 = vmul.f32 1.442695, %v803_v8 }
 0x1f2   : > { %v765_v34 = vpop.xlane.xlu1 %764 }
 0x1f3   : > { %v801_v36 = vsub.f32 %v3936_v3, %v765_v34  ;;  %3382 = vpow2.f32 %v866_v29 }
 0x1f5   : > { %v862_v24 = vmul.f32 1.442695, %v801_v36 }
 0x1f6   : > { %v1332_v23 = vpop.permute.xlu1 %1331 }
 0x1f7   : > { %3384 = vpow2.f32 %v862_v24  ;;  %3274 = vmatprep.subr.msk.bf16.mxu1 %vm453_vm0, %v1332_v23  ;;  %v1388_v6 = vsel %vm453_vm0, %v1332_v23, 0 }
 0x1f8   : > { %3386 = vpow2.f32 %v864_v9  ;;  %3114 = vmatpush3.bf16.xpose.msra.mxu1 %v1388_v6 }
 0x1fa   : > { %v1302_v50 = vpop.permute.xlu1 %1301 }
 0x1fe   : > { %v1306_v47 = vpop.permute.xlu1 %1305 }
 0x200   : > { %v4104_v59 = vpop.eup %3382 }
 0x201   : > { %4712 = vst [vmem:[#allocation2_spill] sm:$0xff] %v4104_v59 }
 0x202   : > { %v1310_v54 = vpop.permute.xlu1 %1309 }
 0x204   : > { %v4106_v11 = vpop.eup %3384 }
 0x205   : > { %v4108_v28 = vpop.eup %3386  ;;  %v978_v3 = vpack.c.bf16 %v4106_v11, %v4102_v1 }
 0x206   : > { %4713 = vst [vmem:[#allocation3_spill] sm:$0xff] %v4108_v28  ;;  %v979_v30 = vpack.c.bf16 %v4104_v59, %v4108_v28  ;;  %v1314_v33 = vpop.permute.xlu1 %1313 }
 0x207   : > { %3103 = vmatprep.mubr.msk.bf16.mxu1 %vm675_vm1, %v978_v3  ;;  %v1871_v3 = vpop.permute.xlu0 %1870 }
 0x208   : > { %3104 = vmatmul.mubr.msk.bf16.gmra.mxu1 %vm675_vm1, %v979_v30  ;;  %3147 = vmatprep.subr.bf16.mxu0 %v1871_v3 }
 0x209   : > { %3115 = vmatprep.mubr.msk.bf16.mxu1 %vm453_vm0, %v1300_v56  ;;  %3259 = vmatprep.subr.bf16.mxu1 %v1871_v3 }
 0x20a   : > { %v1318_v17 = vpop.permute.xlu1 %1317  ;;  %3148 = vmatpush3.bf16.msra.mxu0 %v1871_v3 }
 0x20e   : > { %v1322_v14 = vpop.permute.xlu1 %1321 }
 0x210   : > { %3116 = vmatmul.mubr.msk.bf16.vlgmr.msra.gmra.mxu1 %vm453_vm0, %v1302_v50 }
 0x211   : > { %3119 = vmatprep.mubr.msk.bf16.mxu1 %vm453_vm0, %v1304_v40  ;;  %3263 = vmatpush3.bf16.msra.mxu1 %v1871_v3 }
 0x212   : > { %v1326_v16 = vpop.permute.xlu1 %1325 }
 0x216   : > { %v1330_v20 = vpop.permute.xlu1 %1329 }
 0x218   : > { %3120 = vmatmul.mubr.msk.bf16.gmra.mxu1 %vm453_vm0, %v1306_v47 }
 0x219   : > { %3123 = vmatprep.mubr.msk.bf16.mxu1 %vm453_vm0, %v1308_v44 }
 0x220   : > { %3124 = vmatmul.mubr.msk.bf16.gmra.mxu1 %vm453_vm0, %v1310_v54 }
 0x221   : > { %3127 = vmatprep.mubr.msk.bf16.mxu1 %vm453_vm0, %v1312_v2 }
 0x228   : > { %3128 = vmatmul.mubr.msk.bf16.gmra.mxu1 %vm453_vm0, %v1314_v33  ;;  %v1869_v33 = vpop.permute.xlu1 %1868 }
 0x229   : > { %3131 = vmatprep.mubr.msk.bf16.mxu1 %vm453_vm0, %v1316_v58  ;;  %3149 = vmatprep.subr.bf16.mxu0 %v1869_v33 }
 0x22a   : > { %3260 = vmatprep.subr.bf16.mxu1 %v1869_v33  ;;  %3150 = vmatpush3.bf16.msra.mxu0 %v1869_v33 }
 0x22b   : > { %3264 = vmatpush3.bf16.msra.mxu1 %v1869_v33 }
 0x230   : > { %3132 = vmatmul.mubr.msk.bf16.gmra.mxu1 %vm453_vm0, %v1318_v17 }
 0x231   : > { %3135 = vmatprep.mubr.msk.bf16.mxu1 %vm453_vm0, %v1320_v61 }
 0x238   : > { %3136 = vmatmul.mubr.msk.bf16.gmra.mxu1 %vm453_vm0, %v1322_v14 }
 0x239   : > { %3139 = vmatprep.mubr.msk.bf16.mxu1 %vm453_vm0, %v1324_v19 }
 0x240   : > { %3140 = vmatmul.mubr.msk.bf16.gmra.mxu1 %vm453_vm0, %v1326_v16 }
 0x241   : > { %3143 = vmatprep.mubr.msk.bf16.mxu1 %vm453_vm0, %v1328_v41 }
 0x248   : > { %3144 = vmatmul.mubr.msk.bf16.gmra.mxu1 %vm453_vm0, %v1330_v20 }
 0x259   : > { %v4132_v46 = vpop.f32.mrf.mxu1 }
 0x25a   : > { %4714 = vst [vmem:[#allocation4_spill] sm:$0xff] %v4132_v46 }
 0x25b   : > { %v4134_v21 = vpop.f32.mrf.mxu1 }
 0x25c   : > { %4715 = vst [vmem:[#allocation5_spill] sm:$0xff] %v4134_v21 }
 0x25d   : > { %v4136_v8 = vpop.f32.mrf.mxu1 }
 0x25e   : > { %4716 = vst [vmem:[#allocation6_spill] sm:$0xff] %v4136_v8 }
 0x25f   : > { %v4138_v45 = vpop.f32.mrf.mxu1 }
 0x260   : > { %4717 = vst [vmem:[#allocation7_spill] sm:$0xff] %v4138_v45 }
 0x263   : > { %v4140_v27 = vpop.f32.mrf.mxu1 }
 0x264   : > { %4718 = vst [vmem:[#allocation8_spill] sm:$0xff] %v4140_v27 }
 0x265   : > { %v4142_v29 = vpop.f32.mrf.mxu1 }
 0x266   : > { %4719 = vst [vmem:[#allocation9_spill] sm:$0xff] %v4142_v29 }
 0x267   : > { %v4144_v34 = vpop.f32.mrf.mxu1 }
 0x268   : > { %4720 = vst [vmem:[#allocation10_spill] sm:$0xff] %v4144_v34 }
 0x269   : > { %v4146_v36 = vpop.f32.mrf.mxu1 }
 0x26a   : > { %4721 = vst [vmem:[#allocation11_spill] sm:$0xff] %v4146_v36 }
 0x26b   : > { %v4148_v9 = vpop.f32.mrf.mxu1 }
 0x26c   : > { %4722 = vst [vmem:[#allocation12_spill] sm:$0xff] %v4148_v9 }
 0x26d   : > { %v4150_v24 = vpop.f32.mrf.mxu1 }
 0x26e   : > { %4723 = vst [vmem:[#allocation13_spill] sm:$0xff] %v4150_v24 }
 0x26f   : > { %v4152_v23 = vpop.f32.mrf.mxu1 }
 0x270   : > { %4724 = vst [vmem:[#allocation14_spill] sm:$0xff] %v4152_v23 }
 0x271   : > { %v4154_v6 = vpop.f32.mrf.mxu1 }
 0x272   : > { %4725 = vst [vmem:[#allocation15_spill] sm:$0xff] %v4154_v6 }
 0x273   : > { %v4156_v30 = vpop.f32.mrf.mxu1 }
 0x274   : > { %4726 = vst [vmem:[#allocation16_spill] sm:$0xff] %v4156_v30 }
 0x275   : > { %v4158_v56 = vpop.f32.mrf.mxu1 }
 0x276   : > { %4727 = vst [vmem:[#allocation17_spill] sm:$0xff] %v4158_v56 }
 0x277   : > { %v4160_v50 = vpop.f32.mrf.mxu1 }
 0x278   : > { %4728 = vst [vmem:[#allocation18_spill] sm:$0xff] %v4160_v50 }
 0x279   : > { %v4162_v40 = vpop.f32.mrf.mxu1 }
 0x27a   : > { %4729 = vst [vmem:[#allocation19_spill] sm:$0xff] %v4162_v40 }
 0x27b   : > { %v4164_v47 = vpop.f32.mrf.mxu1 }
 0x27c   : > { %4730 = vst [vmem:[#allocation20_spill] sm:$0xff] %v4164_v47 }
 0x27d   : > { %v4166_v44 = vpop.f32.mrf.mxu1 }
 0x27e   : > { %4731 = vst [vmem:[#allocation21_spill] sm:$0xff] %v4166_v44 }
 0x27f   : > { %v4168_v54 = vpop.f32.mrf.mxu1 }
 0x280   : > { %4732 = vst [vmem:[#allocation22_spill] sm:$0xff] %v4168_v54 }
 0x281   : > { %v4170_v2 = vpop.f32.mrf.mxu1 }
 0x282   : > { %4733 = vst [vmem:[#allocation23_spill] sm:$0xff] %v4170_v2 }
 0x283   : > { %v4172_v58 = vpop.f32.mrf.mxu1 }
 0x284   : > { %4734 = vst [vmem:[#allocation24_spill] sm:$0xff] %v4172_v58 }
 0x285   : > { %v4174_v17 = vpop.f32.mrf.mxu1 }
 0x286   : > { %4735 = vst [vmem:[#allocation25_spill] sm:$0xff] %v4174_v17 }
 0x287   : > { %v4176_v61 = vpop.f32.mrf.mxu1 }
 0x288   : > { %4736 = vst [vmem:[#allocation26_spill] sm:$0xff] %v4176_v61 }
 0x289   : > { %v4178_v14 = vpop.f32.mrf.mxu1 }
 0x28a   : > { %4737 = vst [vmem:[#allocation27_spill] sm:$0xff] %v4178_v14 }
 0x28b   : > { %v4180_v19 = vpop.f32.mrf.mxu1 }
 0x28c   : > { %4738 = vst [vmem:[#allocation28_spill] sm:$0xff] %v4180_v19 }
 0x28d   : > { %v4182_v16 = vpop.f32.mrf.mxu1 }
 0x28e   : > { %4739 = vst [vmem:[#allocation29_spill] sm:$0xff] %v4182_v16 }
 0x28f   : > { %v4184_v41 = vpop.f32.mrf.mxu1 }
 0x290   : > { %4740 = vst [vmem:[#allocation30_spill] sm:$0xff] %v4184_v41 }
 0x291   : > { %v4186_v20 = vpop.f32.mrf.mxu1 }
 0x292   : > { %4741 = vst [vmem:[#allocation31_spill] sm:$0xff] %v4186_v20 }
 0x2c8   : > { %v4188_v3 = vpop.f32.mrf.mxu1 }
 0x2c9   : > { %4742 = vst [vmem:[#allocation32_spill] sm:$0xff] %v4188_v3 }
 0x2ca   : > { %v4190_v54 = vpop.f32.mrf.mxu1 }
 0x2cb   : > { %4743 = vst [vmem:[#allocation33_spill] sm:$0xff] %v4190_v54 }
 0x2cc   : > { %v4192_v33 = vpop.f32.mrf.mxu1 }
 0x2cd   : > { %4744 = vst [vmem:[#allocation34_spill] sm:$0xff] %v4192_v33 }
 0x2ce   : > { %v4194_v58 = vpop.f32.mrf.mxu1 }
 0x2cf   : > { %4745 = vst [vmem:[#allocation35_spill] sm:$0xff] %v4194_v58 }
 0x2d0   : > { %v4196_v17 = vpop.f32.mrf.mxu1 }
 0x2d1   : > { %v1566_v61 = vsel %vm675_vm1, %v4196_v17, -inf }
 0x2d2   : > { %1567 = vmax.xlane.f32.xlu0 %v1566_v61  ;;  %v4200_v19 = vpop.f32.mrf.mxu1 }
 0x2d3   : > { %v1560_v41 = vsel %vm675_vm1, %v4200_v19, -inf }
 0x2d4   : > { %v4202_v16 = vpop.f32.mrf.mxu1 }
 0x2d5   : > { %v1569_v54 = vsel %vm675_vm1, %v4202_v16, -inf }
 0x2d6   : > { %1561 = vmax.xlane.f32.xlu0 %v1560_v41  ;;  %v4206_v3 = vpop.f32.mrf.mxu1 }
 0x2d7   : > { %v1563_v33 = vsel %vm675_vm1, %v4206_v3, -inf }
 0x2d8   : > { %1564 = vmax.xlane.f32.xlu1 %v1563_v33  ;;  %v4210_v58 = vpop.f32.mrf.mxu1 }
 0x2d9   : > { %v1578_v14 = vsel %vm675_vm1, %v4210_v58, -inf }
 0x2da   : > { %1570 = vmax.xlane.f32.xlu0 %v1569_v54  ;;  %v4214_v61 = vpop.f32.mrf.mxu1 }
 0x2db   : > { %v1572_v2 = vsel %vm675_vm1, %v4214_v61, -inf }
 0x2dc   : > { %v4216_v20 = vpop.f32.mrf.mxu1 }
 0x2dd   : > { %v1581_v41 = vsel %vm675_vm1, %v4216_v20, -inf }
 0x2de   : > { %1579 = vmax.xlane.f32.xlu0 %v1578_v14  ;;  %1582 = vmax.xlane.f32.xlu1 %v1581_v41  ;;  %v4222_v47 = vpop.f32.mrf.mxu1 }
 0x2df   : > { %v1575_v54 = vsel %vm675_vm1, %v4222_v47, -inf }
 0x2e0   : > { %v4224_v33 = vpop.f32.mrf.mxu1 }
 0x2e1   : > { %v1590_v14 = vsel %vm675_vm1, %v4224_v33, -inf }
 0x2e2   : > { %1573 = vmax.xlane.f32.xlu0 %v1572_v2  ;;  %1576 = vmax.xlane.f32.xlu1 %v1575_v54  ;;  %v4230_v44 = vpop.f32.mrf.mxu1 }
 0x2e3   : > { %v1584_v2 = vsel %vm675_vm1, %v4230_v44, -inf }
 0x2e4   : > { %v4232_v50 = vpop.f32.mrf.mxu1 }
 0x2e5   : > { %v1593_v41 = vsel %vm675_vm1, %v4232_v50, -inf }
 0x2e6   : > { %1591 = vmax.xlane.f32.xlu0 %v1590_v14  ;;  %1594 = vmax.xlane.f32.xlu1 %v1593_v41  ;;  %v4238_v30 = vpop.f32.mrf.mxu1 }
 0x2e7   : > { %v1587_v54 = vsel %vm675_vm1, %v4238_v30, -inf }
 0x2e8   : > { %v4240_v40 = vpop.f32.mrf.mxu1 }
 0x2e9   : > { %v1602_v14 = vsel %vm675_vm1, %v4240_v40, -inf }
 0x2ea   : > { %1585 = vmax.xlane.f32.xlu0 %v1584_v2  ;;  %1588 = vmax.xlane.f32.xlu1 %v1587_v54  ;;  %v4246_v56 = vpop.f32.mrf.mxu1 }
 0x2eb   : > { %v1596_v41 = vsel %vm675_vm1, %v4246_v56, -inf }
 0x2ec   : > { %v4248_v23 = vpop.f32.mrf.mxu1 }
 0x2ed   : > { %v1605_v6 = vsel %vm675_vm1, %v4248_v23, -inf }
 0x2ee   : > { %1603 = vmax.xlane.f32.xlu0 %v1602_v14  ;;  %1597 = vmax.xlane.f32.xlu1 %v1596_v41  ;;  %v4254_v9 = vpop.f32.mrf.mxu1 }
 0x2ef   : > { %v1599_v2 = vsel %vm675_vm1, %v4254_v9, -inf }
 0x2f0   : > { %v4260_v54 = vpop.f32.mrf.mxu1 }
 0x2f1   : > { %v1614_v45 = vsel %vm675_vm1, %v4260_v54, -inf }
 0x2f2   : > { %1606 = vmax.xlane.f32.xlu1 %v1605_v6  ;;  %1600 = vmax.xlane.f32.xlu0 %v1599_v2  ;;  %v4264_v24 = vpop.f32.mrf.mxu1 }
 0x2f3   : > { %v1608_v29 = vsel %vm675_vm1, %v4264_v24, -inf }
 0x2f4   : > { %v4266_v34 = vpop.f32.mrf.mxu1 }
 0x2f5   : > { %4746 = vst [vmem:[#allocation36_spill] sm:$0xff] %v4266_v34  ;;  %v1617_v46 = vsel %vm675_vm1, %v4266_v34, -inf }
 0x2f6   : > { %v4270_v14 = vpop.f32.mrf.mxu1 }
 0x2f8   : > { %v4272_v41 = vpop.f32.mrf.mxu1 }
 0x2fa   : > { %v4274_v27 = vpop.f32.mrf.mxu1 }
 0x2fb   : > { %v1620_v59 = vsel %vm675_vm1, %v4274_v27, -inf }
 0x2fc   : > { %v4276_v6 = vpop.f32.mrf.mxu1 }
 0x2fd   : > { %4747 = vst [vmem:[#allocation37_spill] sm:$0xff] %v4276_v6  ;;  %v1629_v34 = vsel %vm675_vm1, %v4276_v6, -inf }
 0x2fe   : > { %v4278_v2 = vpop.f32.mrf.mxu1 }
 0x2ff   : > { %4748 = vst [vmem:[#allocation38_spill] sm:$0xff] %v4278_v2  ;;  %v1623_v28 = vsel %vm675_vm1, %v4278_v2, -inf }
 0x300   : > { %v4280_v36 = vpop.f32.mrf.mxu1 }
 0x303   : > { %1864 = vrot.lane.b32.xlu1 %v3854_v60, %s3604_s8  ;;  %v4282_v60 = vpop.f32.mrf.mxu1 }
 0x305   : > { %v4288_v8 = vpop.f32.mrf.mxu1 }
 0x306   : > { %v1641_v6 = vsel %vm675_vm1, %v4288_v8, -inf }
 0x307   : > { %v4294_v21 = vpop.f32.mrf.mxu1 }
 0x308   : > { %1866 = vrot.lane.b32.xlu0 %v3842_v55, %s3604_s8  ;;  %v1611_v55 = vsel %vm675_vm1, %v4270_v14, -inf  ;;  %4749 = vst [vmem:[#allocation39_spill] sm:$0xff] %v4294_v21  ;;  %v1635_v2 = vsel %vm675_vm1, %v4294_v21, -inf }
 0x327   : > { %1609 = vmax.xlane.f32.xlu1 %v1608_v29  ;;  %1612 = vmax.xlane.f32.xlu0 %v1611_v55  ;;  %v4300_v29 = vpop.f32.mrf.mxu1  ;;  %v1626_v55 = vsel %vm675_vm1, %v4272_v41, -inf }
 0x32b   : > { %1618 = vmax.xlane.f32.xlu1 %v1617_v46  ;;  %1615 = vmax.xlane.f32.xlu0 %v1614_v45  ;;  %v4306_v46 = vpop.f32.mrf.mxu1  ;;  %v1632_v45 = vsel %vm675_vm1, %v4282_v60, -inf }
 0x32f   : > { %1621 = vmax.xlane.f32.xlu0 %v1620_v59  ;;  %1624 = vmax.xlane.f32.xlu1 %v1623_v28  ;;  %v4312_v59 = vpop.f32.mrf.mxu1  ;;  %v1638_v28 = vsel %vm675_vm1, %v4280_v36, -inf }
 0x333   : > { %1627 = vmax.xlane.f32.xlu0 %v1626_v55  ;;  %1630 = vmax.xlane.f32.xlu1 %v1629_v34  ;;  %v4318_v55 = vpop.f32.mrf.mxu1  ;;  %v1644_v34 = vsel %vm675_vm1, %v4306_v46, -inf }
 0x334   : > { %v1647_v21 = vsel %vm675_vm1, %v4318_v55, -inf }
 0x337   : > { %1633 = vmax.xlane.f32.xlu0 %v1632_v45  ;;  %1636 = vmax.xlane.f32.xlu1 %v1635_v2  ;;  %v1650_v2 = vsel %vm675_vm1, %v4300_v29, -inf  ;;  %v1653_v45 = vsel %vm675_vm1, %v4312_v59, -inf }
 0x33b   : > { %1639 = vmax.xlane.f32.xlu0 %v1638_v28  ;;  %1642 = vmax.xlane.f32.xlu1 %v1641_v6  ;;  %v868_v28 = vsel %vm675_vm1, %v3967_v32, 0.0  ;;  %v871_v6 = vsel %vm675_vm1, %v3973_v5, 0.0  ;;  %v886_v32 = vsel %vm675_vm1, %v4000_v48, 0.0  ;;  %v889_v5 = vsel %vm675_vm1, %v3991_v7, 0.0 }
 0x33c   : > { %v904_v7 = vsel %vm675_vm1, %v4031_v18, 0.0 }
 0x33f   : > { %1645 = vmax.xlane.f32.xlu0 %v1644_v34  ;;  %1648 = vmax.xlane.f32.xlu1 %v1647_v21  ;;  %v874_v34 = vsel %vm675_vm1, %v3975_v12, 0.0  ;;  %v877_v21 = vsel %vm675_vm1, %v3970_v25, 0.0  ;;  %v892_v25 = vsel %vm675_vm1, %v4013_v62, 0.0  ;;  %v895_v12 = vsel %vm675_vm1, %v4016_v63, 0.0 }
 0x340   : > { %v907_v62 = vsel %vm675_vm1, %v4034_v31, 0.0  ;;  %v916_v31 = vsel %vm675_vm1, %v4049_v51, 0.0 }
 0x343   : > { %1651 = vmax.xlane.f32.xlu0 %v1650_v2  ;;  %1654 = vmax.xlane.f32.xlu1 %v1653_v45  ;;  %v880_v2 = vsel %vm675_vm1, %v3993_v38, 0.0  ;;  %v883_v45 = vsel %vm675_vm1, %v3998_v53, 0.0  ;;  %v898_v38 = vsel %vm675_vm1, %v4018_v37, 0.0  ;;  %v901_v53 = vsel %vm675_vm1, %v4011_v13, 0.0 }
 0x344   : > { %v910_v13 = vsel %vm675_vm1, %v4036_v22, 0.0 }
 0x347   : > { %869 = vadd.xlane.f32.xlu0 %v868_v28  ;;  %872 = vadd.xlane.f32.xlu1 %v871_v6 }
 0x34b   : > { %875 = vadd.xlane.f32.xlu0 %v874_v34  ;;  %878 = vadd.xlane.f32.xlu1 %v877_v21  ;;  %v913_v21 = vsel %vm675_vm1, %v4029_v39, 0.0 }
 0x34f   : > { %881 = vadd.xlane.f32.xlu0 %v880_v2  ;;  %884 = vadd.xlane.f32.xlu1 %v883_v45 }
 0x353   : > { %887 = vadd.xlane.f32.xlu0 %v886_v32  ;;  %890 = vadd.xlane.f32.xlu1 %v889_v5  ;;  %v922_v32 = vsel %vm675_vm1, %v4054_v42, 0.0  ;;  %v925_v5 = vsel %vm675_vm1, %v4047_v26, 0.0 }
 0x357   : > { %893 = vadd.xlane.f32.xlu0 %v892_v25  ;;  %896 = vadd.xlane.f32.xlu1 %v895_v12 }
 0x35b   : > { %v1568_v48 = vpop.xlane.xlu0 %1567  ;;  %899 = vadd.xlane.f32.xlu0 %v898_v38  ;;  %902 = vadd.xlane.f32.xlu1 %v901_v53  ;;  %v928_v53 = vsel %vm675_vm1, %v4064_v57, 0.0 }
 0x35c   : > { %v1658_v22 = vsub.f32 %v4196_v17, %v1568_v48  ;;  %v931_v17 = vsel %vm675_vm1, %v4066_v35, 0.0  ;;  %v937_v35 = vsel %vm675_vm1, %v4062_v52, 0.0  ;;  %v943_v52 = vsel %vm675_vm1, %v4083_v4, 0.0 }
 0x35d   : > { %v949_v4 = vsel %vm675_vm1, %v4079_v0, 0.0  ;;  %v1296_v0 = vld [vmem:[%s4703_s3 + $0x18] sm:$0xff] }
 0x35e   : > { %v1692_v12 = vmul.f32 1.442695, %v1658_v22 }
 0x35f   : > { %v1562_v28 = vpop.xlane.xlu0 %1561  ;;  %905 = vadd.xlane.f32.xlu0 %v904_v7  ;;  %908 = vadd.xlane.f32.xlu1 %v907_v62  ;;  %v934_v7 = vsel %vm675_vm1, %v4068_v15, 0.0 }
 0x360   : > { %v1656_v63 = vsub.f32 %v4200_v19, %v1562_v28  ;;  %v919_v19 = vsel %vm675_vm1, %v4052_v49, 0.0 }
 0x361   : > { %v1565_v6 = vpop.xlane.xlu1 %1564 }
 0x362   : > { %v1688_v34 = vmul.f32 1.442695, %v1656_v63  ;;  %v1657_v37 = vsub.f32 %v4206_v3, %v1565_v6 }
 0x363   : > { %v1571_v2 = vpop.xlane.xlu0 %1570  ;;  %911 = vadd.xlane.f32.xlu0 %v910_v13  ;;  %914 = vadd.xlane.f32.xlu1 %v913_v21 }
 0x364   : > { %v1690_v18 = vmul.f32 1.442695, %v1657_v37  ;;  %3388 = vpow2.f32 %v1688_v34  ;;  %v1659_v39 = vsub.f32 %v4202_v16, %v1571_v2  ;;  %v940_v34 = vsel %vm675_vm1, %v4081_v10, 0.0 }
 0x365   : > { %v946_v10 = vsel %vm675_vm1, %v4085_v43, 0.0  ;;  %v955_v43 = vsel %vm675_vm1, %v4106_v11, 0.0 }
 0x366   : > { %3390 = vpow2.f32 %v1690_v18  ;;  %v1694_v49 = vmul.f32 1.442695, %v1659_v39 }
 0x367   : > { %v1580_v45 = vpop.xlane.xlu0 %1579  ;;  %917 = vadd.xlane.f32.xlu0 %v916_v31  ;;  %920 = vadd.xlane.f32.xlu1 %v919_v19  ;;  %v1583_v3 = vpop.xlane.xlu1 %1582  ;;  %3392 = vpow2.f32 %v1692_v12 }
 0x368   : > { %v1662_v48 = vsub.f32 %v4210_v58, %v1580_v45  ;;  %3394 = vpow2.f32 %v1694_v49  ;;  %v1663_v57 = vsub.f32 %v4216_v20, %v1583_v3 }
 0x36a   : > { %v1700_v15 = vmul.f32 1.442695, %v1662_v48  ;;  %v1702_v37 = vmul.f32 1.442695, %v1663_v57 }
 0x36b   : > { %v1574_v25 = vpop.xlane.xlu0 %1573  ;;  %923 = vadd.xlane.f32.xlu0 %v922_v32  ;;  %926 = vadd.xlane.f32.xlu1 %v925_v5  ;;  %v1577_v51 = vpop.xlane.xlu1 %1576 }
 0x36c   : > { %v1660_v38 = vsub.f32 %v4214_v61, %v1574_v25  ;;  %v1661_v16 = vsub.f32 %v4222_v47, %v1577_v51 }
 0x36e   : > { %v1696_v61 = vmul.f32 1.442695, %v1660_v38  ;;  %v1698_v28 = vmul.f32 1.442695, %v1661_v16 }
 0x36f   : > { %v1592_v42 = vpop.xlane.xlu0 %1591  ;;  %929 = vadd.xlane.f32.xlu0 %v928_v53  ;;  %932 = vadd.xlane.f32.xlu1 %v931_v17  ;;  %v1595_v26 = vpop.xlane.xlu1 %1594 }
 0x370   : > { %3396 = vpow2.f32 %v1696_v61  ;;  %v1666_v18 = vsub.f32 %v4224_v33, %v1592_v42  ;;  %v952_v33 = vsel %vm675_vm1, %v4102_v1, 0.0 }
 0x371   : > { %v4381_v62 = vpop.eup %3388  ;;  %3398 = vpow2.f32 %v1698_v28 }
 0x372   : > { %3400 = vpow2.f32 %v1700_v15  ;;  %v1708_v3 = vmul.f32 1.442695, %v1666_v18  ;;  %v1752_v61 = vsel %vm675_vm1, %v4381_v62, 0.0 }
 0x373   : > { %v4386_v47 = vpop.eup %3390  ;;  %v1586_v63 = vpop.xlane.xlu0 %1585  ;;  %935 = vadd.xlane.f32.xlu0 %v934_v7  ;;  %938 = vadd.xlane.f32.xlu1 %v937_v35  ;;  %3402 = vpow2.f32 %v1702_v37 }
 0x374   : > { %v1589_v6 = vpop.xlane.xlu1 %1588  ;;  %v1848_v58 = vpack.c.bf16 %v4386_v47, %v4381_v62  ;;  %v1664_v20 = vsub.f32 %v4230_v44, %v1586_v63  ;;  %v1667_v44 = vsub.f32 %v4232_v50, %v1595_v26  ;;  %v3393_v22 = vpop.eup %3392  ;;  %v1295_v50 = vld [vmem:[%s4703_s3 + $0x10] sm:$0xff]  ;;  %v1755_v35 = vsel %vm675_vm1, %v4386_v47, 0.0 }
 0x375   : > { %v1665_v13 = vsub.f32 %v4238_v30, %v1589_v6  ;;  %v3395_v32 = vpop.eup %3394  ;;  %v1298_v12 = vpack.c.bf16 %v1296_v0, %v1295_v50 }
 0x376   : > { %3155 = vmatprep.mubr.msk.bf16.mxu0 %vm675_vm1, %v1848_v58  ;;  %v1704_v31 = vmul.f32 1.442695, %v1664_v20  ;;  %v1710_v39 = vmul.f32 1.442695, %v1667_v44  ;;  %v1761_v38 = vsel %vm675_vm1, %v3395_v32, 0.0  ;;  %v1849_v7 = vpack.c.bf16 %v3395_v32, %v3393_v22 }
 0x377   : > { %v1604_v21 = vpop.xlane.xlu0 %1603  ;;  %941 = vadd.xlane.f32.xlu0 %v940_v34  ;;  %944 = vadd.xlane.f32.xlu1 %v943_v52  ;;  %v1706_v19 = vmul.f32 1.442695, %v1665_v13 }
 0x378   : > { %v1598_v2 = vpop.xlane.xlu1 %1597  ;;  %3404 = vpow2.f32 %v1704_v31  ;;  %v1670_v1 = vsub.f32 %v4240_v40, %v1604_v21  ;;  %v1293_v40 = vld [vmem:[%s4703_s3] sm:$0xff] }
 0x379   : > { %3406 = vpow2.f32 %v1706_v19  ;;  %v1668_v11 = vsub.f32 %v4246_v56, %v1598_v2  ;;  %v1294_v56 = vld [vmem:[%s4703_s3 + $0x8] sm:$0xff] }
 0x37a   : > { %3408 = vpow2.f32 %v1708_v3  ;;  %v1297_v26 = vpack.c.bf16 %v1294_v56, %v1293_v40 }
 0x37b   : > { %v1601_v45 = vpop.xlane.xlu0 %1600  ;;  %947 = vadd.xlane.f32.xlu0 %v946_v10  ;;  %950 = vadd.xlane.f32.xlu1 %v949_v4  ;;  %3410 = vpow2.f32 %v1710_v39  ;;  %v1712_v42 = vmul.f32 1.442695, %v1668_v11 }
 0x37c   : > { %v1607_v30 = vpop.xlane.xlu1 %1606  ;;  %v1669_v5 = vsub.f32 %v4254_v9, %v1601_v45  ;;  %v1758_v9 = vsel %vm675_vm1, %v3393_v22, 0.0 }
 0x37d   : > { %v1671_v49 = vsub.f32 %v4248_v23, %v1607_v30  ;;  %v3397_v53 = vpop.eup %3396  ;;  %v1716_v23 = vmul.f32 1.442695, %v1670_v1 }
 0x37e   : > { %v1714_v17 = vmul.f32 1.442695, %v1669_v5  ;;  %v3399_v16 = vpop.eup %3398  ;;  %v1764_v34 = vsel %vm675_vm1, %v3397_v53, 0.0 }
 0x37f   : > { %v1867_v25 = vpop.permute.xlu0 %1866  ;;  %953 = vadd.xlane.f32.xlu0 %v952_v33  ;;  %956 = vadd.xlane.f32.xlu1 %v955_v43  ;;  %v3401_v48 = vpop.eup %3400  ;;  %v1718_v57 = vmul.f32 1.442695, %v1671_v49  ;;  %v1850_v63 = vpack.c.bf16 %v3399_v16, %v3397_v53  ;;  %v1767_v37 = vsel %vm675_vm1, %v3399_v16, 0.0  ;;  %v4750_v49 = vld [vmem:[#allocation36_spill] sm:$0xff] }
 0x380   : > { %3151 = vmatprep.subr.bf16.mxu0 %v1867_v25  ;;  %3261 = vmatprep.subr.bf16.mxu1 %v1867_v25  ;;  %v1865_v51 = vpop.permute.xlu1 %1864  ;;  %v3403_v28 = vpop.eup %3402  ;;  %3412 = vpow2.f32 %v1714_v17  ;;  %v1770_v6 = vsel %vm675_vm1, %v3401_v48, 0.0 }
 0x381   : > { %3152 = vmatpush3.bf16.msra.mxu0 %v1867_v25  ;;  %3265 = vmatpush3.bf16.msra.mxu1 %v1867_v25  ;;  %3414 = vpow2.f32 %v1716_v23  ;;  %v1773_v62 = vsel %vm675_vm1, %v3403_v28, 0.0  ;;  %v1851_v20 = vpack.c.bf16 %v3403_v28, %v3401_v48  ;;  %v4752_v48 = vld [vmem:[#allocation37_spill] sm:$0xff] }
 0x382   : > { %3153 = vmatprep.subr.bf16.mxu0 %v1865_v51  ;;  %3262 = vmatprep.subr.bf16.mxu1 %v1865_v51  ;;  %3416 = vpow2.f32 %v1712_v42 }
 0x383   : > { %1759 = vadd.xlane.f32.xlu0 %v1758_v9  ;;  %1762 = vadd.xlane.f32.xlu1 %v1761_v38  ;;  %3418 = vpow2.f32 %v1718_v57 }
 0x385   : > { %3154 = vmatpush3.bf16.msra.mxu0 %v1865_v51  ;;  %3266 = vmatpush3.bf16.msra.mxu1 %v1865_v51  ;;  %v3405_v47 = vpop.eup %3404 }
 0x386   : > { %3223 = vmatprep.subr.bf16.mxu0 %v1298_v12  ;;  %v3407_v58 = vpop.eup %3406  ;;  %v1776_v31 = vsel %vm675_vm1, %v3405_v47, 0.0 }
 0x387   : > { %1753 = vadd.xlane.f32.xlu0 %v1752_v61  ;;  %1756 = vadd.xlane.f32.xlu1 %v1755_v35  ;;  %v3409_v15 = vpop.eup %3408  ;;  %v1852_v13 = vpack.c.bf16 %v3407_v58, %v3405_v47  ;;  %v1779_v4 = vsel %vm675_vm1, %v3407_v58, 0.0 }
 0x388   : > { %3156 = vmatmul.mubr.msk.bf16.vlgmr.msra.gmra.mxu0 %vm675_vm1, %v1849_v7  ;;  %v3411_v52 = vpop.eup %3410  ;;  %v1782_v21 = vsel %vm675_vm1, %v3409_v15, 0.0 }
 0x389   : > { %3159 = vmatprep.mubr.msk.bf16.mxu0 %vm675_vm1, %v1850_v63  ;;  %3224 = vmatpush3.bf16.msra.mxu0 %v1298_v12  ;;  %v1785_v2 = vsel %vm675_vm1, %v3411_v52, 0.0  ;;  %v1853_v19 = vpack.c.bf16 %v3411_v52, %v3409_v15  ;;  %v4753_v63 = vld [vmem:[#allocation39_spill] sm:$0xff] }
 0x38a   : > { %3225 = vmatprep.subr.bf16.mxu0 %v1297_v26 }
 0x38b   : > { %1771 = vadd.xlane.f32.xlu0 %v1770_v6  ;;  %1774 = vadd.xlane.f32.xlu1 %v1773_v62 }
 0x38d   : > { %3226 = vmatpush3.bf16.msra.mxu0 %v1297_v26  ;;  %v3413_v18 = vpop.eup %3412 }
 0x38e   : > { %v3415_v10 = vpop.eup %3414  ;;  %v1791_v33 = vsel %vm675_vm1, %v3413_v18, 0.0 }
 0x38f   : > { %1765 = vadd.xlane.f32.xlu0 %v1764_v34  ;;  %1768 = vadd.xlane.f32.xlu1 %v1767_v37  ;;  %v3417_v44 = vpop.eup %3416  ;;  %v1794_v3 = vsel %vm675_vm1, %v3415_v10, 0.0 }
 0x390   : > { %3160 = vmatmul.mubr.msk.bf16.gmra.mxu0 %vm675_vm1, %v1851_v20  ;;  %v3419_v45 = vpop.eup %3418  ;;  %v1854_v30 = vpack.c.bf16 %v3413_v18, %v3417_v44  ;;  %v1788_v39 = vsel %vm675_vm1, %v3417_v44, 0.0 }
 0x391   : > { %3163 = vmatprep.mubr.msk.bf16.mxu0 %vm675_vm1, %v1852_v13  ;;  %v1797_v22 = vsel %vm675_vm1, %v3419_v45, 0.0  ;;  %v1855_v43 = vpack.c.bf16 %v3419_v45, %v3415_v10 }
 0x393   : > { %1783 = vadd.xlane.f32.xlu0 %v1782_v21  ;;  %1786 = vadd.xlane.f32.xlu1 %v1785_v2 }
 0x397   : > { %1777 = vadd.xlane.f32.xlu0 %v1776_v31  ;;  %1780 = vadd.xlane.f32.xlu1 %v1779_v4 }
 0x398   : > { %3164 = vmatmul.mubr.msk.bf16.gmra.mxu0 %vm675_vm1, %v1853_v19 }
 0x399   : > { %3167 = vmatprep.mubr.msk.bf16.mxu0 %vm675_vm1, %v1854_v30 }
 0x39b   : > { %1795 = vadd.xlane.f32.xlu0 %v1794_v3  ;;  %1798 = vadd.xlane.f32.xlu1 %v1797_v22 }
 0x39f   : > { %1789 = vadd.xlane.f32.xlu0 %v1788_v39  ;;  %1792 = vadd.xlane.f32.xlu1 %v1791_v33 }
 0x3a0   : > { %3168 = vmatmul.mubr.msk.bf16.gmra.mxu0 %vm675_vm1, %v1855_v43 }
 0x3b0   : > { %v1613_v50 = vpop.xlane.xlu0 %1612  ;;  %v1610_v0 = vpop.xlane.xlu1 %1609 }
 0x3b1   : > { %v1673_v32 = vsub.f32 %v4270_v14, %v1613_v50  ;;  %v1672_v5 = vsub.f32 %v4264_v24, %v1610_v0  ;;  %v4751_v14 = vld [vmem:[#allocation38_spill] sm:$0xff] }
 0x3b3   : > { %v1722_v25 = vmul.f32 1.442695, %v1673_v32  ;;  %v1720_v1 = vmul.f32 1.442695, %v1672_v5 }
 0x3b4   : > { %v1616_v11 = vpop.xlane.xlu0 %1615  ;;  %v1619_v51 = vpop.xlane.xlu1 %1618 }
 0x3b5   : > { %3420 = vpow2.f32 %v1722_v25  ;;  %v1674_v12 = vsub.f32 %v4260_v54, %v1616_v11  ;;  %v1675_v9 = vsub.f32 %v4750_v49, %v1619_v51 }
 0x3b6   : > { %3422 = vpow2.f32 %v1720_v1 }
 0x3b7   : > { %v1724_v38 = vmul.f32 1.442695, %v1674_v12  ;;  %v1726_v40 = vmul.f32 1.442695, %v1675_v9 }
 0x3b8   : > { %v1622_v56 = vpop.xlane.xlu0 %1621  ;;  %v1625_v53 = vpop.xlane.xlu1 %1624 }
 0x3b9   : > { %3424 = vpow2.f32 %v1724_v38  ;;  %v1676_v17 = vsub.f32 %v4274_v27, %v1622_v56  ;;  %v1677_v16 = vsub.f32 %v4751_v14, %v1625_v53 }
 0x3ba   : > { %3426 = vpow2.f32 %v1726_v40 }
 0x3bb   : > { %v1728_v24 = vmul.f32 1.442695, %v1676_v17  ;;  %v1730_v23 = vmul.f32 1.442695, %v1677_v16 }
 0x3bc   : > { %v1628_v42 = vpop.xlane.xlu0 %1627  ;;  %v1631_v26 = vpop.xlane.xlu1 %1630 }
 0x3bd   : > { %3428 = vpow2.f32 %v1728_v24  ;;  %v1678_v54 = vsub.f32 %v4272_v41, %v1628_v42  ;;  %v1679_v7 = vsub.f32 %v4752_v48, %v1631_v26 }
 0x3be   : > { %3430 = vpow2.f32 %v1730_v23 }
 0x3bf   : > { %v1732_v57 = vmul.f32 1.442695, %v1678_v54  ;;  %v1734_v61 = vmul.f32 1.442695, %v1679_v7 }
 0x3c0   : > { %v1634_v35 = vpop.xlane.xlu0 %1633  ;;  %v1637_v28 = vpop.xlane.xlu1 %1636 }
 0x3c1   : > { %3432 = vpow2.f32 %v1732_v57  ;;  %v1680_v27 = vsub.f32 %v4282_v60, %v1634_v35  ;;  %v1681_v6 = vsub.f32 %v4753_v63, %v1637_v28 }
 0x3c2   : > { %v3421_v62 = vpop.eup %3420  ;;  %3434 = vpow2.f32 %v1734_v61 }
 0x3c3   : > { %v3423_v47 = vpop.eup %3422  ;;  %v1736_v58 = vmul.f32 1.442695, %v1680_v27  ;;  %v1738_v15 = vmul.f32 1.442695, %v1681_v6  ;;  %v1803_v33 = vsel %vm675_vm1, %v3421_v62, 0.0 }
 0x3c4   : > { %v1640_v34 = vpop.xlane.xlu0 %1639  ;;  %v1643_v37 = vpop.xlane.xlu1 %1642  ;;  %v1856_v41 = vpack.c.bf16 %v3421_v62, %v3423_v47  ;;  %v1800_v22 = vsel %vm675_vm1, %v3423_v47, 0.0  ;;  %v2165_v62 = vld [vmem:[%s4703_s3 + $0x20] sm:$0xff]  ;;  %v2166_v47 = vld [vmem:[%s4703_s3 + $0x28] sm:$0xff] }
 0x3c5   : > { %3436 = vpow2.f32 %v1736_v58  ;;  %v1682_v20 = vsub.f32 %v4280_v36, %v1640_v34  ;;  %v1683_v52 = vsub.f32 %v4288_v8, %v1643_v37  ;;  %v4754_v34 = vld [vmem:[#allocation3_spill] sm:$0xff] }
 0x3c6   : > { %v3425_v13 = vpop.eup %3424  ;;  %3438 = vpow2.f32 %v1738_v15  ;;  %3171 = vmatprep.mubr.msk.bf16.mxu0 %vm675_vm1, %v1856_v41  ;;  %v958_v37 = vsel %vm675_vm1, %v4754_v34, 0.0 }
 0x3c7   : > { %v3427_v60 = vpop.eup %3426  ;;  %v1740_v21 = vmul.f32 1.442695, %v1682_v20  ;;  %v1742_v2 = vmul.f32 1.442695, %v1683_v52  ;;  %v1806_v18 = vsel %vm675_vm1, %v3425_v13, 0.0 }
 0x3c8   : > { %v1646_v10 = vpop.xlane.xlu0 %1645  ;;  %1807 = vadd.xlane.f32.xlu0 %v1806_v18  ;;  %v1809_v44 = vsel %vm675_vm1, %v3427_v60, 0.0  ;;  %v1649_v31 = vpop.xlane.xlu1 %1648  ;;  %v1857_v4 = vpack.c.bf16 %v3427_v60, %v3425_v13  ;;  %v4755_v13 = vld [vmem:[#allocation2_spill] sm:$0xff] }
 0x3c9   : > { %3440 = vpow2.f32 %v1740_v21  ;;  %v1684_v36 = vsub.f32 %v4306_v46, %v1646_v10  ;;  %1810 = vadd.xlane.f32.xlu1 %v1809_v44  ;;  %v1685_v8 = vsub.f32 %v4318_v55, %v1649_v31  ;;  %v2167_v46 = vld [vmem:[%s4703_s3 + $0x30] sm:$0xff]  ;;  %v2168_v55 = vld [vmem:[%s4703_s3 + $0x38] sm:$0xff]  ;;  %v961_v60 = vsel %vm675_vm1, %v4755_v13, 0.0 }
 0x3ca   : > { %v3429_v19 = vpop.eup %3428  ;;  %3442 = vpow2.f32 %v1742_v2  ;;  %3172 = vmatmul.mubr.msk.bf16.gmra.mxu0 %vm675_vm1, %v1857_v4  ;;  %v4476_v5 = vpack.c.bf16 %v2168_v55, %v2167_v46  ;;  %v2169_v2 = vpack.c.bf16 %v2166_v47, %v2165_v62  ;;  %v4756_v10 = vld [vmem:[#allocation5_spill] sm:$0xff]  ;;  %v4757_v4 = vld [vmem:[#allocation7_spill] sm:$0xff]  ;;  %v4767_v47 = vld [vmem:[#allocation14_spill] sm:$0xff] }
 0x3cb   : > { %v3431_v45 = vpop.eup %3430  ;;  %v1744_v30 = vmul.f32 1.442695, %v1684_v36  ;;  %v1746_v3 = vmul.f32 1.442695, %v1685_v8  ;;  %v1812_v56 = vsel %vm675_vm1, %v3429_v19, 0.0 }
 0x3cc   : > { %v1652_v39 = vpop.xlane.xlu0 %1651  ;;  %1801 = vadd.xlane.f32.xlu0 %v1800_v22  ;;  %v1655_v43 = vpop.xlane.xlu1 %1654  ;;  %v1858_v50 = vpack.c.bf16 %v3431_v45, %v3429_v19  ;;  %3187 = vmatprep.subr.bf16.mxu1 %v4476_v5  ;;  %v1815_v17 = vsel %vm675_vm1, %v3431_v45, 0.0  ;;  %v4758_v19 = vld [vmem:[#allocation4_spill] sm:$0xff] }
 0x3cd   : > { %3444 = vpow2.f32 %v1744_v30  ;;  %v1686_v0 = vsub.f32 %v4300_v29, %v1652_v39  ;;  %1804 = vadd.xlane.f32.xlu1 %v1803_v33  ;;  %v1687_v32 = vsub.f32 %v4312_v59, %v1655_v43 }
 0x3ce   : > { %v3433_v25 = vpop.eup %3432  ;;  %3446 = vpow2.f32 %v1746_v3  ;;  %3175 = vmatprep.mubr.msk.bf16.mxu0 %vm675_vm1, %v1858_v50  ;;  %v4759_v3 = vld [vmem:[#allocation6_spill] sm:$0xff] }
 0x3cf   : > { %v3435_v1 = vpop.eup %3434  ;;  %v1748_v11 = vmul.f32 1.442695, %v1686_v0  ;;  %v1750_v51 = vmul.f32 1.442695, %v1687_v32  ;;  %v1818_v12 = vsel %vm675_vm1, %v3433_v25, 0.0 }
 0x3d0   : > { %v870_v49 = vpop.xlane.xlu0 %869  ;;  %1819 = vadd.xlane.f32.xlu0 %v1818_v12  ;;  %v1821_v29 = vsel %vm675_vm1, %v3435_v1, 0.0  ;;  %v873_v9 = vpop.xlane.xlu1 %872  ;;  %v1859_v38 = vpack.c.bf16 %v3435_v1, %v3433_v25  ;;  %v4761_v12 = vld [vmem:[#allocation11_spill] sm:$0xff] }
 0x3d1   : > { %3448 = vpow2.f32 %v1748_v11  ;;  %1822 = vadd.xlane.f32.xlu1 %v1821_v29 }
 0x3d2   : > { %v3437_v59 = vpop.eup %3436  ;;  %3450 = vpow2.f32 %v1750_v51  ;;  %3176 = vmatmul.mubr.msk.bf16.gmra.mxu0 %vm675_vm1, %v1859_v38 }
 0x3d3   : > { %v3439_v40 = vpop.eup %3438  ;;  %3452 = vrcp.f32 %v870_v49  ;;  %v1824_v35 = vsel %vm675_vm1, %v3437_v59, 0.0 }
 0x3d4   : > { %3454 = vrcp.f32 %v873_v9  ;;  %v876_v53 = vpop.xlane.xlu0 %875  ;;  %1813 = vadd.xlane.f32.xlu0 %v1812_v56  ;;  %v879_v14 = vpop.xlane.xlu1 %878  ;;  %v1860_v16 = vpack.c.bf16 %v3439_v40, %v3437_v59  ;;  %v1827_v27 = vsel %vm675_vm1, %v3439_v40, 0.0  ;;  %v4762_v59 = vld [vmem:[#allocation8_spill] sm:$0xff] }
 0x3d5   : > { %3456 = vrcp.f32 %v876_v53  ;;  %1816 = vadd.xlane.f32.xlu1 %v1815_v17  ;;  %v4763_v17 = vld [vmem:[#allocation10_spill] sm:$0xff] }
 0x3d6   : > { %v3441_v24 = vpop.eup %3440  ;;  %3458 = vrcp.f32 %v879_v14  ;;  %3179 = vmatprep.mubr.msk.bf16.mxu0 %vm675_vm1, %v1860_v16 }
 0x3d7   : > { %v3443_v23 = vpop.eup %3442  ;;  %v1830_v42 = vsel %vm675_vm1, %v3441_v24, 0.0 }
 0x3d8   : > { %v882_v26 = vpop.xlane.xlu0 %881  ;;  %1831 = vadd.xlane.f32.xlu0 %v1830_v42  ;;  %v1833_v54 = vsel %vm675_vm1, %v3443_v23, 0.0  ;;  %v885_v48 = vpop.xlane.xlu1 %884  ;;  %v1861_v7 = vpack.c.bf16 %v3443_v23, %v3441_v24  ;;  %v4764_v42 = vld [vmem:[#allocation13_spill] sm:$0xff] }
 0x3d9   : > { %3460 = vrcp.f32 %v882_v26  ;;  %1834 = vadd.xlane.f32.xlu1 %v1833_v54 }
 0x3da   : > { %v3445_v57 = vpop.eup %3444  ;;  %3462 = vrcp.f32 %v885_v48  ;;  %3180 = vmatmul.mubr.msk.bf16.gmra.mxu0 %vm675_vm1, %v1861_v7  ;;  %v4765_v7 = vld [vmem:[#allocation15_spill] sm:$0xff] }
 0x3db   : > { %v3447_v61 = vpop.eup %3446  ;;  %v1836_v30 = vsel %vm675_vm1, %v3445_v57, 0.0 }
 0x3dc   : > { %v888_v28 = vpop.xlane.xlu0 %887  ;;  %1825 = vadd.xlane.f32.xlu0 %v1824_v35  ;;  %v891_v63 = vpop.xlane.xlu1 %890  ;;  %v1862_v6 = vpack.c.bf16 %v3447_v61, %v3445_v57  ;;  %v1839_v43 = vsel %vm675_vm1, %v3447_v61, 0.0 }
 0x3dd   : > { %3464 = vrcp.f32 %v888_v28  ;;  %1828 = vadd.xlane.f32.xlu1 %v1827_v27  ;;  %v4766_v27 = vld [vmem:[#allocation12_spill] sm:$0xff] }
 0x3de   : > { %v3449_v58 = vpop.eup %3448  ;;  %3466 = vrcp.f32 %v891_v63  ;;  %3183 = vmatprep.mubr.msk.bf16.mxu1 %vm675_vm1, %v1862_v6 }
 0x3df   : > { %v3451_v15 = vpop.eup %3450  ;;  %v1842_v32 = vsel %vm675_vm1, %v3449_v58, 0.0 }
 0x3e0   : > { %v3453_v41 = vpop.eup %3452  ;;  %v1863_v20 = vpack.c.bf16 %v3451_v15, %v3449_v58  ;;  %v894_v52 = vpop.xlane.xlu0 %893  ;;  %959 = vadd.xlane.f32.xlu0 %v958_v37  ;;  %v1845_v11 = vsel %vm675_vm1, %v3451_v15, 0.0 }
 0x3e1   : > { %v897_v21 = vpop.xlane.xlu1 %896  ;;  %v3455_v18 = vpop.eup %3454  ;;  %3468 = vrcp.f32 %v894_v52  ;;  %962 = vadd.xlane.f32.xlu1 %v961_v60  ;;  %v1245_v44 = vmul.f32 %v3453_v41, %v4756_v10  ;;  %v4768_v41 = vld [vmem:[#allocation17_spill] sm:$0xff]  ;;  %v4769_v60 = vld [vmem:[#allocation19_spill] sm:$0xff] }
 0x3e2   : > { %v3457_v31 = vpop.eup %3456  ;;  %3470 = vrcp.f32 %v897_v21  ;;  %3184 = vmatmul.mubr.msk.bf16.vlgmr.msra.gmra.mxu1 %vm675_vm1, %v1863_v20  ;;  %v1246_v36 = vmul.f32 %v3455_v18, %v4757_v4 }
 0x3e3   : > { %v3459_v8 = vpop.eup %3458  ;;  %v1247_v45 = vmul.f32 %v3457_v31, %v4758_v19  ;;  %3188 = vmatpush3.bf16.msra.mxu1 %v4476_v5  ;;  %v4760_v5 = vld [vmem:[#allocation9_spill] sm:$0xff] }
 0x3e4   : > { %v1248_v22 = vmul.f32 %v3459_v8, %v4759_v3  ;;  %v1277_v39 = vpack.c.bf16 %v1246_v36, %v1245_v44  ;;  %v900_v33 = vpop.xlane.xlu0 %899  ;;  %1837 = vadd.xlane.f32.xlu0 %v1836_v30  ;;  %3189 = vmatprep.subr.bf16.mxu1 %v2169_v2  ;;  %v4770_v44 = vld [vmem:[#allocation16_spill] sm:$0xff]  ;;  %v4771_v8 = vld [vmem:[#allocation18_spill] sm:$0xff] }
 0x3e5   : > { %v903_v50 = vpop.xlane.xlu1 %902  ;;  %3472 = vrcp.f32 %v900_v33  ;;  %1840 = vadd.xlane.f32.xlu1 %v1839_v43 }
 0x3e6   : > { %v3461_v46 = vpop.eup %3460  ;;  %v1278_v55 = vpack.c.bf16 %v1248_v22, %v1247_v45  ;;  %3227 = vmatprep.mubr.msk.bf16.mxu0 %vm453_vm0, %v1277_v39  ;;  %3474 = vrcp.f32 %v903_v50  ;;  %v4772_v22 = vld [vmem:[#allocation21_spill] sm:$0xff]  ;;  %v4773_v50 = vld [vmem:[#allocation23_spill] sm:$0xff] }
 0x3e7   : > { %v3463_v0 = vpop.eup %3462  ;;  %v1249_v25 = vmul.f32 %v3461_v46, %v4760_v5  ;;  %3190 = vmatpush3.bf16.msra.mxu1 %v2169_v2  ;;  %v4774_v5 = vld [vmem:[#allocation20_spill] sm:$0xff] }
 0x3e8   : > { %3228 = vmatmul.mubr.msk.bf16.vlgmr.msra.gmra.mxu0 %vm453_vm0, %v1278_v55  ;;  %v906_v1 = vpop.xlane.xlu0 %905  ;;  %1843 = vadd.xlane.f32.xlu0 %v1842_v32  ;;  %v1250_v49 = vmul.f32 %v3463_v0, %v4761_v12 }
 0x3e9   : > { %v909_v51 = vpop.xlane.xlu1 %908  ;;  %3476 = vrcp.f32 %v906_v1  ;;  %1846 = vadd.xlane.f32.xlu1 %v1845_v11 }
 0x3ea   : > { %v3465_v29 = vpop.eup %3464  ;;  %3478 = vrcp.f32 %v909_v51  ;;  %v1279_v9 = vpack.c.bf16 %v1250_v49, %v1249_v25  ;;  %v4775_v51 = vld [vmem:[#allocation22_spill] sm:$0xff] }
 0x3eb   : > { %v3467_v38 = vpop.eup %3466  ;;  %v1251_v40 = vmul.f32 %v3465_v29, %v4762_v59 }
 0x3ec   : > { %3231 = vmatprep.mubr.msk.bf16.mxu0 %vm453_vm0, %v1279_v9  ;;  %v912_v56 = vpop.xlane.xlu0 %911  ;;  %v1252_v14 = vmul.f32 %v3467_v38, %v4763_v17  ;;  %v4776_v38 = vld [vmem:[#allocation25_spill] sm:$0xff] }
 0x3ed   : > { %v915_v53 = vpop.xlane.xlu1 %914  ;;  %3480 = vrcp.f32 %v912_v56 }
 0x3ee   : > { %v3469_v16 = vpop.eup %3468  ;;  %3482 = vrcp.f32 %v915_v53  ;;  %v1280_v24 = vpack.c.bf16 %v1252_v14, %v1251_v40  ;;  %v4777_v53 = vld [vmem:[#allocation27_spill] sm:$0xff] }
 0x3ef   : > { %v3471_v23 = vpop.eup %3470  ;;  %v1253_v26 = vmul.f32 %v3469_v16, %v4764_v42 }
 0x3f0   : > { %3232 = vmatmul.mubr.msk.bf16.gmra.mxu0 %vm453_vm0, %v1280_v24  ;;  %v918_v54 = vpop.xlane.xlu0 %917  ;;  %v1254_v57 = vmul.f32 %v3471_v23, %v4765_v7  ;;  %v4778_v23 = vld [vmem:[#allocation24_spill] sm:$0xff] }
 0x3f1   : > { %v921_v48 = vpop.xlane.xlu1 %920  ;;  %3484 = vrcp.f32 %v918_v54 }
 0x3f2   : > { %v3473_v61 = vpop.eup %3472  ;;  %3486 = vrcp.f32 %v921_v48  ;;  %v1281_v35 = vpack.c.bf16 %v1254_v57, %v1253_v26  ;;  %v4779_v26 = vld [vmem:[#allocation26_spill] sm:$0xff] }
 0x3f3   : > { %v3475_v28 = vpop.eup %3474  ;;  %v1255_v63 = vmul.f32 %v3473_v61, %v4766_v27  ;;  %v4780_v61 = vld [vmem:[#allocation29_spill] sm:$0xff] }
 0x3f4   : > { %3235 = vmatprep.mubr.msk.bf16.mxu0 %vm453_vm0, %v1281_v35  ;;  %v924_v6 = vpop.xlane.xlu0 %923  ;;  %v1256_v58 = vmul.f32 %v3475_v28, %v4767_v47  ;;  %v4781_v28 = vld [vmem:[#allocation31_spill] sm:$0xff]  ;;  %v4782_v47 = vld [vmem:[#allocation28_spill] sm:$0xff] }
 0x3f5   : > { %v927_v62 = vpop.xlane.xlu1 %926  ;;  %3488 = vrcp.f32 %v924_v6 }
 0x3f6   : > { %v3477_v15 = vpop.eup %3476  ;;  %3490 = vrcp.f32 %v927_v62  ;;  %v1282_v34 = vpack.c.bf16 %v1256_v58, %v1255_v63 }
 0x3f7   : > { %v3479_v37 = vpop.eup %3478  ;;  %v1257_v20 = vmul.f32 %v3477_v15, %v4768_v41  ;;  %v4783_v15 = vld [vmem:[#allocation30_spill] sm:$0xff] }
 0x3f8   : > { %3236 = vmatmul.mubr.msk.bf16.gmra.mxu0 %vm453_vm0, %v1282_v34  ;;  %v930_v52 = vpop.xlane.xlu0 %929  ;;  %v1258_v21 = vmul.f32 %v3479_v37, %v4769_v60  ;;  %v4785_v60 = vld [vmem:[#allocation35_spill] sm:$0xff] }
 0x3f9   : > { %v933_v13 = vpop.xlane.xlu1 %932  ;;  %3492 = vrcp.f32 %v930_v52  ;;  %v4784_v52 = vld [vmem:[#allocation33_spill] sm:$0xff] }
 0x3fa   : > { %v3481_v2 = vpop.eup %3480  ;;  %3494 = vrcp.f32 %v933_v13  ;;  %v1283_v18 = vpack.c.bf16 %v1258_v21, %v1257_v20 }
 0x3fb   : > { %v3483_v10 = vpop.eup %3482  ;;  %v1259_v31 = vmul.f32 %v3481_v2, %v4770_v44 }
 0x3fc   : > { %3239 = vmatprep.mubr.msk.bf16.mxu0 %vm453_vm0, %v1283_v18  ;;  %v936_v4 = vpop.xlane.xlu0 %935  ;;  %v1260_v19 = vmul.f32 %v3483_v10, %v4771_v8 }
 0x3fd   : > { %v939_v36 = vpop.xlane.xlu1 %938  ;;  %3496 = vrcp.f32 %v936_v4 }
 0x3fe   : > { %v3485_v45 = vpop.eup %3484  ;;  %3498 = vrcp.f32 %v939_v36  ;;  %v1284_v30 = vpack.c.bf16 %v1260_v19, %v1259_v31 }
 0x3ff   : > { %v3487_v3 = vpop.eup %3486  ;;  %v1261_v39 = vmul.f32 %v3485_v45, %v4772_v22 }
 0x400   : > { %3240 = vmatmul.mubr.msk.bf16.gmra.mxu0 %vm453_vm0, %v1284_v30  ;;  %v942_v33 = vpop.xlane.xlu0 %941  ;;  %v1262_v46 = vmul.f32 %v3487_v3, %v4773_v50 }
 0x401   : > { %v945_v43 = vpop.xlane.xlu1 %944  ;;  %3500 = vrcp.f32 %v942_v33 }
 0x402   : > { %v3489_v55 = vpop.eup %3488  ;;  %3502 = vrcp.f32 %v945_v43  ;;  %v1285_v0 = vpack.c.bf16 %v1262_v46, %v1261_v39 }
 0x403   : > { %v3491_v32 = vpop.eup %3490  ;;  %v1263_v25 = vmul.f32 %v3489_v55, %v4774_v5 }
 0x404   : > { %3243 = vmatprep.mubr.msk.bf16.mxu0 %vm453_vm0, %v1285_v0  ;;  %v948_v1 = vpop.xlane.xlu0 %947  ;;  %v1264_v12 = vmul.f32 %v3491_v32, %v4775_v51 }
 0x405   : > { %v951_v11 = vpop.xlane.xlu1 %950  ;;  %3504 = vrcp.f32 %v948_v1 }
 0x406   : > { %v3493_v49 = vpop.eup %3492  ;;  %3506 = vrcp.f32 %v951_v11  ;;  %v1286_v29 = vpack.c.bf16 %v1264_v12, %v1263_v25 }
 0x407   : > { %v3495_v9 = vpop.eup %3494  ;;  %v1265_v59 = vmul.f32 %v3493_v49, %v4776_v38 }
 0x408   : > { %3244 = vmatmul.mubr.msk.bf16.gmra.mxu0 %vm453_vm0, %v1286_v29  ;;  %v954_v40 = vpop.xlane.xlu0 %953  ;;  %v1266_v17 = vmul.f32 %v3495_v9, %v4777_v53 }
 0x409   : > { %v957_v56 = vpop.xlane.xlu1 %956  ;;  %3508 = vrcp.f32 %v954_v40 }
 0x40a   : > { %v3497_v14 = vpop.eup %3496  ;;  %3510 = vrcp.f32 %v957_v56  ;;  %v1287_v16 = vpack.c.bf16 %v1266_v17, %v1265_v59 }
 0x40b   : > { %v3499_v24 = vpop.eup %3498  ;;  %v1267_v42 = vmul.f32 %v3497_v14, %v4778_v23 }
 0x40c   : > { %3247 = vmatprep.mubr.msk.bf16.mxu0 %vm453_vm0, %v1287_v16  ;;  %v1268_v54 = vmul.f32 %v3499_v24, %v4779_v26  ;;  %v1760_v18 = vpop.xlane.xlu0 %1759 }
 0x40d   : > { %v1763_v10 = vpop.xlane.xlu1 %1762 }
 0x40e   : > { %v3501_v48 = vpop.eup %3500  ;;  %v1288_v7 = vpack.c.bf16 %v1268_v54, %v1267_v42  ;;  %3512 = vrcp.f32 %v1763_v10 }
 0x40f   : > { %v3503_v57 = vpop.eup %3502  ;;  %v1269_v35 = vmul.f32 %v3501_v48, %v4780_v61 }
 0x410   : > { %3248 = vmatmul.mubr.msk.bf16.gmra.mxu0 %vm453_vm0, %v1288_v7  ;;  %v1270_v27 = vmul.f32 %v3503_v57, %v4781_v28  ;;  %v1754_v44 = vpop.xlane.xlu0 %1753 }
 0x411   : > { %v1757_v31 = vpop.xlane.xlu1 %1756  ;;  %3514 = vrcp.f32 %v1754_v44 }
 0x412   : > { %v3505_v63 = vpop.eup %3504  ;;  %v1289_v6 = vpack.c.bf16 %v1270_v27, %v1269_v35  ;;  %3516 = vrcp.f32 %v1757_v31 }
 0x413   : > { %v3507_v62 = vpop.eup %3506  ;;  %v1271_v58 = vmul.f32 %v3505_v63, %v4782_v47  ;;  %3518 = vrcp.f32 %v1760_v18 }
 0x414   : > { %3251 = vmatprep.mubr.msk.bf16.mxu0 %vm453_vm0, %v1289_v6  ;;  %v1272_v34 = vmul.f32 %v3507_v62, %v4783_v15  ;;  %v1772_v4 = vpop.xlane.xlu0 %1771 }
 0x415   : > { %v1775_v36 = vpop.xlane.xlu1 %1774 }
 0x416   : > { %v3509_v37 = vpop.eup %3508  ;;  %v1290_v41 = vpack.c.bf16 %v1272_v34, %v1271_v58  ;;  %3520 = vrcp.f32 %v1775_v36 }
 0x417   : > { %v3511_v20 = vpop.eup %3510  ;;  %v1273_v13 = vmul.f32 %v3509_v37, %v4784_v52 }
 0x418   : > { %3252 = vmatmul.mubr.msk.bf16.gmra.mxu0 %vm453_vm0, %v1290_v41  ;;  %v1274_v21 = vmul.f32 %v3511_v20, %v4785_v60  ;;  %v1766_v8 = vpop.xlane.xlu0 %1765 }
 0x419   : > { %v1769_v19 = vpop.xlane.xlu1 %1768  ;;  %3522 = vrcp.f32 %v1766_v8 }
 0x41a   : > { %v1291_v2 = vpack.c.bf16 %v1274_v21, %v1273_v13  ;;  %3524 = vrcp.f32 %v1769_v19 }
 0x41b   : > { %3526 = vrcp.f32 %v1772_v4  ;;  %v3513_v46 = vpop.eup %3512 }
 0x41c   : > { %3255 = vmatprep.mubr.msk.bf16.mxu0 %vm453_vm0, %v1291_v2  ;;  %v1784_v45 = vpop.xlane.xlu0 %1783 }
 0x41d   : > { %v1787_v30 = vpop.xlane.xlu1 %1786 }
 0x41e   : > { %v3515_v0 = vpop.eup %3514  ;;  %3528 = vrcp.f32 %v1787_v30 }
 0x41f   : > { %v3517_v5 = vpop.eup %3516 }
 0x420   : > { %v1778_v3 = vpop.xlane.xlu0 %1777  ;;  %v3519_v51 = vpop.eup %3518 }
 0x421   : > { %v1781_v22 = vpop.xlane.xlu1 %1780  ;;  %3530 = vrcp.f32 %v1778_v3 }
 0x422   : > { %3532 = vrcp.f32 %v1781_v22 }
 0x423   : > { %3534 = vrcp.f32 %v1784_v45  ;;  %v3521_v17 = vpop.eup %3520 }
 0x424   : > { %v1796_v39 = vpop.xlane.xlu0 %1795 }
 0x425   : > { %v1799_v33 = vpop.xlane.xlu1 %1798 }
 0x426   : > { %v3523_v16 = vpop.eup %3522  ;;  %3536 = vrcp.f32 %v1799_v33 }
 0x427   : > { %v3525_v23 = vpop.eup %3524 }
 0x428   : > { %v1790_v32 = vpop.xlane.xlu0 %1789  ;;  %v3527_v48 = vpop.eup %3526 }
 0x429   : > { %v1793_v25 = vpop.xlane.xlu1 %1792  ;;  %3538 = vrcp.f32 %v1790_v32 }
 0x42a   : > { %3540 = vrcp.f32 %v1793_v25 }
 0x42b   : > { %3542 = vrcp.f32 %v1796_v39  ;;  %v3529_v47 = vpop.eup %3528 }
 0x42e   : > { %v3531_v15 = vpop.eup %3530 }
 0x42f   : > { %v3533_v37 = vpop.eup %3532 }
 0x430   : > { %v3535_v13 = vpop.eup %3534 }
 0x433   : > { %v3537_v8 = vpop.eup %3536 }
 0x436   : > { %v3539_v45 = vpop.eup %3538 }
 0x437   : > { %v3541_v3 = vpop.eup %3540 }
 0x448   : > { %v3157_v43 = vpop.f32.mrf.mxu0 }
 0x449   : > { %v2119_v29 = vmul.f32 %v3519_v51, %v3157_v43  ;;  %v3543_v43 = vpop.eup %3542  ;;  %v4786_v51 = vld [vmem:[#allocation32_spill] sm:$0xff] }
 0x44a   : > { %v1958_v50 = vpop.f32.mrf.mxu0 }
 0x44b   : > { %v2117_v12 = vmul.f32 %v3515_v0, %v1958_v50 }
 0x44c   : > { %v3158_v55 = vpop.f32.mrf.mxu0 }
 0x44d   : > { %v2120_v1 = vmul.f32 %v3513_v46, %v3158_v55 }
 0x44e   : > { %v1961_v11 = vpop.f32.mrf.mxu0 }
 0x44f   : > { %v2118_v49 = vmul.f32 %v3517_v5, %v1961_v11  ;;  %v2150_v40 = vpack.c.bf16 %v2120_v1, %v2119_v29 }
 0x450   : > { %v3161_v9 = vpop.f32.mrf.mxu0 }
 0x451   : > { %v2149_v38 = vpack.c.bf16 %v2118_v49, %v2117_v12  ;;  %v4553_v59 = vpop.xlane.xlu0 %1807  ;;  %v2123_v61 = vmul.f32 %v3527_v48, %v3161_v9  ;;  %v4787_v49 = vld [vmem:[#allocation34_spill] sm:$0xff] }
 0x452   : > { %v4555_v56 = vpop.xlane.xlu1 %1810  ;;  %v1974_v53 = vpop.f32.mrf.mxu0 }
 0x453   : > { %3191 = vmatprep.mubr.msk.bf16.mxu1 %vm453_vm0, %v2149_v38  ;;  %v2121_v7 = vmul.f32 %v3523_v16, %v1974_v53 }
 0x454   : > { %v3162_v14 = vpop.f32.mrf.mxu0  ;;  %3192 = vmatmul.mubr.msk.bf16.vlgmr.msra.gmra.mxu1 %vm453_vm0, %v2150_v40 }
 0x455   : > { %v4559_v24 = vpop.xlane.xlu0 %1801  ;;  %v2124_v42 = vmul.f32 %v3521_v17, %v3162_v14 }
 0x456   : > { %v4561_v26 = vpop.xlane.xlu1 %1804  ;;  %v1977_v54 = vpop.f32.mrf.mxu0 }
 0x457   : > { %v2122_v57 = vmul.f32 %v3525_v23, %v1977_v54  ;;  %v2152_v63 = vpack.c.bf16 %v2124_v42, %v2123_v61 }
 0x458   : > { %v3165_v35 = vpop.f32.mrf.mxu0 }
 0x459   : > { %v2151_v28 = vpack.c.bf16 %v2122_v57, %v2121_v7  ;;  %v1820_v27 = vpop.xlane.xlu0 %1819  ;;  %v2127_v2 = vmul.f32 %v3535_v13, %v3165_v35 }
 0x45a   : > { %v1823_v6 = vpop.xlane.xlu1 %1822  ;;  %v1990_v62 = vpop.f32.mrf.mxu0 }
 0x45b   : > { %3195 = vmatprep.mubr.msk.bf16.mxu1 %vm453_vm0, %v2151_v28  ;;  %v2125_v60 = vmul.f32 %v3531_v15, %v1990_v62 }
 0x45c   : > { %v3166_v58 = vpop.f32.mrf.mxu0  ;;  %3196 = vmatmul.mubr.msk.bf16.gmra.mxu1 %vm453_vm0, %v2152_v63 }
 0x45d   : > { %v1814_v34 = vpop.xlane.xlu0 %1813  ;;  %v2128_v41 = vmul.f32 %v3529_v47, %v3166_v58 }
 0x45e   : > { %v1817_v20 = vpop.xlane.xlu1 %1816  ;;  %v1993_v52 = vpop.f32.mrf.mxu0 }
 0x45f   : > { %v2126_v21 = vmul.f32 %v3533_v37, %v1993_v52  ;;  %v2154_v31 = vpack.c.bf16 %v2128_v41, %v2127_v2 }
 0x460   : > { %v3169_v18 = vpop.f32.mrf.mxu0 }
 0x461   : > { %v2153_v10 = vpack.c.bf16 %v2126_v21, %v2125_v60  ;;  %v1832_v44 = vpop.xlane.xlu0 %1831  ;;  %v2131_v55 = vmul.f32 %v3543_v43, %v3169_v18 }
 0x462   : > { %v1835_v4 = vpop.xlane.xlu1 %1834  ;;  %v2006_v36 = vpop.f32.mrf.mxu0 }
 0x463   : > { %3199 = vmatprep.mubr.msk.bf16.mxu1 %vm453_vm0, %v2153_v10  ;;  %v2129_v50 = vmul.f32 %v3539_v45, %v2006_v36 }
 0x464   : > { %v3170_v19 = vpop.f32.mrf.mxu0  ;;  %3200 = vmatmul.mubr.msk.bf16.gmra.mxu1 %vm453_vm0, %v2154_v31 }
 0x465   : > { %v1826_v30 = vpop.xlane.xlu0 %1825  ;;  %v2132_v22 = vmul.f32 %v3537_v8, %v3170_v19 }
 0x466   : > { %v1829_v39 = vpop.xlane.xlu1 %1828  ;;  %v2009_v33 = vpop.f32.mrf.mxu0 }
 0x467   : > { %v2130_v46 = vmul.f32 %v3541_v3, %v2009_v33  ;;  %v2156_v5 = vpack.c.bf16 %v2132_v22, %v2131_v55 }
 0x469   : > { %v2155_v0 = vpack.c.bf16 %v2130_v46, %v2129_v50  ;;  %v960_v32 = vpop.xlane.xlu0 %959 }
 0x46a   : > { %3544 = vrcp.f32 %v960_v32  ;;  %v963_v25 = vpop.xlane.xlu1 %962 }
 0x46b   : > { %3546 = vrcp.f32 %v963_v25  ;;  %3203 = vmatprep.mubr.msk.bf16.mxu1 %vm453_vm0, %v2155_v0 }
 0x46c   : > { %3204 = vmatmul.mubr.msk.bf16.gmra.mxu1 %vm453_vm0, %v2156_v5  ;;  %3548 = vrcp.f32 %v4555_v56 }
 0x46d   : > { %3550 = vrcp.f32 %v4559_v24  ;;  %v1838_v7 = vpop.xlane.xlu0 %1837 }
 0x46e   : > { %3552 = vrcp.f32 %v4561_v26  ;;  %v1841_v56 = vpop.xlane.xlu1 %1840 }
 0x46f   : > { %3554 = vrcp.f32 %v4553_v59 }
 0x470   : > { %3556 = vrcp.f32 %v1823_v6 }
 0x471   : > { %3558 = vrcp.f32 %v1814_v34  ;;  %v1844_v34 = vpop.xlane.xlu0 %1843 }
 0x472   : > { %3560 = vrcp.f32 %v1817_v20  ;;  %v1847_v6 = vpop.xlane.xlu1 %1846 }
 0x473   : > { %3562 = vrcp.f32 %v1820_v27 }
 0x474   : > { %3564 = vrcp.f32 %v1835_v4 }
 0x475   : > { %3566 = vrcp.f32 %v1826_v30 }
 0x476   : > { %3568 = vrcp.f32 %v1829_v39 }
 0x477   : > { %v3545_v1 = vpop.eup %3544  ;;  %3570 = vrcp.f32 %v1832_v44 }
 0x478   : > { %v3547_v11 = vpop.eup %3546  ;;  %v1275_v12 = vmul.f32 %v3545_v1, %v4786_v51  ;;  %3572 = vrcp.f32 %v1838_v7 }
 0x479   : > { %v1276_v29 = vmul.f32 %v3547_v11, %v4787_v49  ;;  %v3549_v53 = vpop.eup %3548  ;;  %3574 = vrcp.f32 %v1847_v6 }
 0x47a   : > { %v3551_v14 = vpop.eup %3550  ;;  %3576 = vrcp.f32 %v1841_v56 }
 0x47b   : > { %v1292_v9 = vpack.c.bf16 %v1276_v29, %v1275_v12  ;;  %v3553_v16 = vpop.eup %3552  ;;  %3578 = vrcp.f32 %v1844_v34 }
 0x47c   : > { %v3555_v54 = vpop.eup %3554 }
 0x47d   : > { %3256 = vmatmul.mubr.msk.bf16.gmra.mxu0 %vm453_vm0, %v1292_v9  ;;  %v3557_v28 = vpop.eup %3556 }
 0x47e   : > { %v3559_v63 = vpop.eup %3558 }
 0x47f   : > { %v3561_v62 = vpop.eup %3560 }
 0x480   : > { %v3563_v15 = vpop.eup %3562 }
 0x481   : > { %v3565_v2 = vpop.eup %3564 }
 0x482   : > { %v3567_v10 = vpop.eup %3566 }
 0x483   : > { %v3569_v44 = vpop.eup %3568 }
 0x484   : > { %v3571_v36 = vpop.eup %3570 }
 0x485   : > { %v3573_v33 = vpop.eup %3572 }
 0x486   : > { %v3575_v50 = vpop.eup %3574 }
 0x487   : > { %v3577_v46 = vpop.eup %3576 }
 0x488   : > { %v3579_v32 = vpop.eup %3578 }
 0x48a   : > { %v3173_v38 = vpop.f32.mrf.mxu0 }
 0x48b   : > { %v2135_v26 = vmul.f32 %v3555_v54, %v3173_v38 }
 0x48c   : > { %v2022_v40 = vpop.f32.mrf.mxu0 }
 0x48d   : > { %v2133_v24 = vmul.f32 %v3551_v14, %v2022_v40 }
 0x48e   : > { %v3174_v17 = vpop.f32.mrf.mxu0 }
 0x48f   : > { %v2136_v23 = vmul.f32 %v3549_v53, %v3174_v17 }
 0x490   : > { %v2025_v42 = vpop.f32.mrf.mxu0 }
 0x491   : > { %v2134_v48 = vmul.f32 %v3553_v16, %v2025_v42  ;;  %v2158_v61 = vpack.c.bf16 %v2136_v23, %v2135_v26  ;;  %v4588_v16 = vld [vmem:[%s4704_s4] ss:$0 sm:$0xff] }
 0x492   : > { %v3177_v59 = vpop.f32.mrf.mxu0 }
 0x493   : > { %v2157_v57 = vpack.c.bf16 %v2134_v48, %v2133_v24  ;;  %v2139_v20 = vmul.f32 %v3563_v15, %v3177_v59 }
 0x494   : > { %v2038_v35 = vpop.f32.mrf.mxu0 }
 0x495   : > { %3207 = vmatprep.mubr.msk.bf16.mxu1 %vm453_vm0, %v2157_v57  ;;  %v2137_v37 = vmul.f32 %v3559_v63, %v2038_v35 }
 0x496   : > { %v3178_v27 = vpop.f32.mrf.mxu0  ;;  %3208 = vmatmul.mubr.msk.bf16.gmra.mxu1 %vm453_vm0, %v2158_v61 }
 0x497   : > { %v2140_v47 = vmul.f32 %v3557_v28, %v3178_v27 }
 0x498   : > { %v2041_v58 = vpop.f32.mrf.mxu0 }
 0x499   : > { %v2138_v41 = vmul.f32 %v3561_v62, %v2041_v58  ;;  %v2160_v60 = vpack.c.bf16 %v2140_v47, %v2139_v20 }
 0x49a   : > { %v3181_v52 = vpop.f32.mrf.mxu0 }
 0x49b   : > { %v2159_v13 = vpack.c.bf16 %v2138_v41, %v2137_v37  ;;  %v2143_v45 = vmul.f32 %v3571_v36, %v3181_v52 }
 0x49c   : > { %v2054_v21 = vpop.f32.mrf.mxu0 }
 0x49d   : > { %3211 = vmatprep.mubr.msk.bf16.mxu1 %vm453_vm0, %v2159_v13  ;;  %v2141_v8 = vmul.f32 %v3567_v10, %v2054_v21 }
 0x49e   : > { %v3182_v18 = vpop.f32.mrf.mxu0  ;;  %3212 = vmatmul.mubr.msk.bf16.gmra.mxu1 %vm453_vm0, %v2160_v60 }
 0x49f   : > { %v2144_v31 = vmul.f32 %v3565_v2, %v3182_v18 }
 0x4a0   : > { %v2057_v4 = vpop.f32.mrf.mxu0 }
 0x4a1   : > { %v2142_v19 = vmul.f32 %v3569_v44, %v2057_v4  ;;  %v2162_v22 = vpack.c.bf16 %v2144_v31, %v2143_v45 }
 0x4a2   : > { %v3185_v30 = vpop.f32.mrf.mxu1 }
 0x4a3   : > { %v2161_v3 = vpack.c.bf16 %v2142_v19, %v2141_v8  ;;  %v2147_v1 = vmul.f32 %v3579_v32, %v3185_v30 }
 0x4a4   : > { %v2070_v39 = vpop.f32.mrf.mxu1 }
 0x4a5   : > { %3215 = vmatprep.mubr.msk.bf16.mxu1 %vm453_vm0, %v2161_v3  ;;  %v2145_v5 = vmul.f32 %v3573_v33, %v2070_v39 }
 0x4a6   : > { %v3186_v43 = vpop.f32.mrf.mxu1  ;;  %3216 = vmatmul.mubr.msk.bf16.gmra.mxu1 %vm453_vm0, %v2162_v22 }
 0x4a7   : > { %v2148_v55 = vmul.f32 %v3575_v50, %v3186_v43 }
 0x4a8   : > { %v2073_v0 = vpop.f32.mrf.mxu1  ;;  %v3229_v12 = vpop.f32.mrf.mxu0 }
 0x4a9   : > { %v2146_v25 = vmul.f32 %v3577_v46, %v2073_v0  ;;  %v2164_v51 = vpack.c.bf16 %v2148_v55, %v2147_v1 }
 0x4aa   : > { %v2462_v49 = vpop.f32.mrf.mxu0 }
 0x4ab   : > { %v2163_v11 = vpack.c.bf16 %v2146_v25, %v2145_v5 }
 0x4ac   : > { %v3230_v29 = vpop.f32.mrf.mxu0 }
 0x4ad   : > { %3219 = vmatprep.mubr.msk.bf16.mxu1 %vm453_vm0, %v2163_v11 }
 0x4ae   : > { %3220 = vmatmul.mubr.msk.bf16.gmra.mxu1 %vm453_vm0, %v2164_v51  ;;  %v2465_v9 = vpop.f32.mrf.mxu0 }
 0x4b0   : > { %v3233_v38 = vpop.f32.mrf.mxu0 }
 0x4b2   : > { %v2478_v40 = vpop.f32.mrf.mxu0 }
 0x4b4   : > { %v3234_v53 = vpop.f32.mrf.mxu0 }
 0x4b6   : > { %v2481_v17 = vpop.f32.mrf.mxu0 }
 0x4b8   : > { %v3237_v42 = vpop.f32.mrf.mxu0 }
 0x4ba   : > { %v2494_v7 = vpop.f32.mrf.mxu0 }
 0x4bc   : > { %v3238_v6 = vpop.f32.mrf.mxu0 }
 0x4be   : > { %v2497_v41 = vpop.f32.mrf.mxu0 }
 0x4c0   : > { %v3241_v18 = vpop.f32.mrf.mxu0 }
 0x4c2   : > { %v2510_v19 = vpop.f32.mrf.mxu0 }
 0x4c4   : > { %v3242_v43 = vpop.f32.mrf.mxu0 }
 0x4c6   : > { %v2513_v25 = vpop.f32.mrf.mxu0 }
 0x514   : > { %v3193_v14 = vpop.f32.mrf.mxu1 }
 0x515   : > { %v2471_v23 = vadd.f32 %v3229_v12, %v3193_v14 }
 0x516   : > { %v2253_v54 = vpop.f32.mrf.mxu1 }
 0x517   : > { %v2598_v56 = vadd.f32 %v4588_v16, %v2471_v23  ;;  %v2463_v24 = vadd.f32 %v2462_v49, %v2253_v54  ;;  %v3245_v49 = vpop.f32.mrf.mxu0 }
 0x518   : > { %v3194_v48 = vpop.f32.mrf.mxu1 }
 0x519   : > { %2630 = vst.msk [vmem:[%s4593_s9 + $0x10] sm:$0xff] %vm675_vm1, %v2598_v56  ;;  %v2596_v26 = vadd.f32 %v4588_v16, %v2463_v24  ;;  %v2474_v59 = vadd.f32 %v3230_v29, %v3194_v48  ;;  %v2526_v29 = vpop.f32.mrf.mxu0 }
 0x51a   : > { %v2256_v57 = vpop.f32.mrf.mxu1 }
 0x51b   : > { %2628 = vst.msk [vmem:[%s4593_s9] sm:$0xff] %vm675_vm1, %v2596_v26  ;;  %v2599_v61 = vadd.f32 %v4588_v16, %v2474_v59  ;;  %v2466_v35 = vadd.f32 %v2465_v9, %v2256_v57  ;;  %v3246_v9 = vpop.f32.mrf.mxu0 }
 0x51c   : > { %v3197_v28 = vpop.f32.mrf.mxu1 }
 0x51d   : > { %2631 = vst.msk [vmem:[%s4593_s9 + $0x18] sm:$0xff] %vm675_vm1, %v2599_v61  ;;  %v2597_v27 = vadd.f32 %v4588_v16, %v2466_v35  ;;  %v2487_v63 = vadd.f32 %v3233_v38, %v3197_v28  ;;  %v2529_v38 = vpop.f32.mrf.mxu0 }
 0x51e   : > { %v2269_v62 = vpop.f32.mrf.mxu1 }
 0x51f   : > { %2629 = vst.msk [vmem:[%s4593_s9 + $0x8] sm:$0xff] %vm675_vm1, %v2597_v27  ;;  %v2602_v47 = vadd.f32 %v4588_v16, %v2487_v63  ;;  %v2479_v58 = vadd.f32 %v2478_v40, %v2269_v62  ;;  %v3249_v40 = vpop.f32.mrf.mxu0 }
 0x520   : > { %v3198_v15 = vpop.f32.mrf.mxu1 }
 0x521   : > { %2634 = vst.msk [vmem:[%s4593_s9 + $0x30] sm:$0xff] %vm675_vm1, %v2602_v47  ;;  %v2600_v34 = vadd.f32 %v4588_v16, %v2479_v58  ;;  %v2490_v37 = vadd.f32 %v3234_v53, %v3198_v15  ;;  %v2542_v53 = vpop.f32.mrf.mxu0 }
 0x522   : > { %v2272_v20 = vpop.f32.mrf.mxu1 }
 0x523   : > { %2632 = vst.msk [vmem:[%s4593_s9 + $0x20] sm:$0xff] %vm675_vm1, %v2600_v34  ;;  %v2603_v52 = vadd.f32 %v4588_v16, %v2490_v37  ;;  %v2482_v13 = vadd.f32 %v2481_v17, %v2272_v20  ;;  %v3250_v17 = vpop.f32.mrf.mxu0 }
 0x524   : > { %v3201_v60 = vpop.f32.mrf.mxu1 }
 0x525   : > { %2635 = vst.msk [vmem:[%s4593_s9 + $0x38] sm:$0xff] %vm675_vm1, %v2603_v52  ;;  %v2601_v21 = vadd.f32 %v4588_v16, %v2482_v13  ;;  %v2503_v2 = vadd.f32 %v3237_v42, %v3201_v60  ;;  %v2545_v14 = vpop.f32.mrf.mxu0 }
 0x526   : > { %v2285_v10 = vpop.f32.mrf.mxu1 }
 0x527   : > { %2633 = vst.msk [vmem:[%s4593_s9 + $0x28] sm:$0xff] %vm675_vm1, %v2601_v21  ;;  %v2606_v44 = vadd.f32 %v4588_v16, %v2503_v2  ;;  %v2495_v31 = vadd.f32 %v2494_v7, %v2285_v10  ;;  %v3253_v48 = vpop.f32.mrf.mxu0 }
 0x528   : > { %v3202_v4 = vpop.f32.mrf.mxu1 }
 0x529   : > { %2638 = vst.msk [vmem:[%s4593_s9 + $0x50] sm:$0xff] %vm675_vm1, %v2606_v44  ;;  %v2604_v36 = vadd.f32 %v4588_v16, %v2495_v31  ;;  %v2506_v8 = vadd.f32 %v3238_v6, %v3202_v4  ;;  %v2558_v28 = vpop.f32.mrf.mxu0 }
 0x52a   : > { %v2288_v45 = vpop.f32.mrf.mxu1 }
 0x52b   : > { %2636 = vst.msk [vmem:[%s4593_s9 + $0x40] sm:$0xff] %vm675_vm1, %v2604_v36  ;;  %v2607_v30 = vadd.f32 %v4588_v16, %v2506_v8  ;;  %v2498_v3 = vadd.f32 %v2497_v41, %v2288_v45  ;;  %v3254_v15 = vpop.f32.mrf.mxu0 }
 0x52c   : > { %v3205_v22 = vpop.f32.mrf.mxu1 }
 0x52d   : > { %2639 = vst.msk [vmem:[%s4593_s9 + $0x58] sm:$0xff] %vm675_vm1, %v2607_v30  ;;  %v2605_v39 = vadd.f32 %v4588_v16, %v2498_v3  ;;  %v2519_v33 = vadd.f32 %v3241_v18, %v3205_v22  ;;  %v2561_v60 = vpop.f32.mrf.mxu0 }
 0x52e   : > { %v2301_v50 = vpop.f32.mrf.mxu1 }
 0x52f   : > { %2637 = vst.msk [vmem:[%s4593_s9 + $0x48] sm:$0xff] %vm675_vm1, %v2605_v39  ;;  %v2610_v46 = vadd.f32 %v4588_v16, %v2519_v33  ;;  %v2511_v55 = vadd.f32 %v2510_v19, %v2301_v50 }
 0x530   : > { %v3206_v0 = vpop.f32.mrf.mxu1 }
 0x531   : > { %2642 = vst.msk [vmem:[%s4593_s9 + $0x70] sm:$0xff] %vm675_vm1, %v2610_v46  ;;  %v2608_v32 = vadd.f32 %v4588_v16, %v2511_v55  ;;  %v2522_v5 = vadd.f32 %v3242_v43, %v3206_v0 }
 0x532   : > { %v2304_v1 = vpop.f32.mrf.mxu1 }
 0x533   : > { %2640 = vst.msk [vmem:[%s4593_s9 + $0x60] sm:$0xff] %vm675_vm1, %v2608_v32  ;;  %v2611_v11 = vadd.f32 %v4588_v16, %v2522_v5  ;;  %v2514_v51 = vadd.f32 %v2513_v25, %v2304_v1 }
 0x535   : > { %2643 = vst.msk [vmem:[%s4593_s9 + $0x78] sm:$0xff] %vm675_vm1, %v2611_v11  ;;  %v2609_v12 = vadd.f32 %v4588_v16, %v2514_v51 }
 0x537   : > { %2641 = vst.msk [vmem:[%s4593_s9 + $0x68] sm:$0xff] %vm675_vm1, %v2609_v12 }
 0x53d   : > { %v3257_v10 = vpop.f32.mrf.mxu0 }
 0x53f   : > { %v2574_v45 = vpop.f32.mrf.mxu0 }
 0x541   : > { %v3258_v50 = vpop.f32.mrf.mxu0 }
 0x543   : > { %v2577_v1 = vpop.f32.mrf.mxu0 }
 0x556   : > { %v3209_v23 = vpop.f32.mrf.mxu1 }
 0x557   : > { %v2535_v42 = vadd.f32 %v3245_v49, %v3209_v23 }
 0x558   : > { %v2317_v54 = vpop.f32.mrf.mxu1 }
 0x559   : > { %v2614_v56 = vadd.f32 %v4588_v16, %v2535_v42  ;;  %v2527_v24 = vadd.f32 %v2526_v29, %v2317_v54 }
 0x55a   : > { %v3210_v26 = vpop.f32.mrf.mxu1 }
 0x55b   : > { %2646 = vst.msk [vmem:[%s4593_s9 + $0x90] sm:$0xff] %vm675_vm1, %v2614_v56  ;;  %v2612_v59 = vadd.f32 %v4588_v16, %v2527_v24  ;;  %v2538_v7 = vadd.f32 %v3246_v9, %v3210_v26 }
 0x55c   : > { %v2320_v57 = vpop.f32.mrf.mxu1 }
 0x55d   : > { %2644 = vst.msk [vmem:[%s4593_s9 + $0x80] sm:$0xff] %vm675_vm1, %v2612_v59  ;;  %v2615_v61 = vadd.f32 %v4588_v16, %v2538_v7  ;;  %v2530_v35 = vadd.f32 %v2529_v38, %v2320_v57 }
 0x55e   : > { %v3213_v27 = vpop.f32.mrf.mxu1 }
 0x55f   : > { %2647 = vst.msk [vmem:[%s4593_s9 + $0x98] sm:$0xff] %vm675_vm1, %v2615_v61  ;;  %v2613_v63 = vadd.f32 %v4588_v16, %v2530_v35  ;;  %v2551_v6 = vadd.f32 %v3249_v40, %v3213_v27 }
 0x560   : > { %v2333_v62 = vpop.f32.mrf.mxu1 }
 0x561   : > { %2645 = vst.msk [vmem:[%s4593_s9 + $0x88] sm:$0xff] %vm675_vm1, %v2613_v63  ;;  %v2618_v47 = vadd.f32 %v4588_v16, %v2551_v6  ;;  %v2543_v58 = vadd.f32 %v2542_v53, %v2333_v62 }
 0x562   : > { %v3214_v34 = vpop.f32.mrf.mxu1 }
 0x563   : > { %2650 = vst.msk [vmem:[%s4593_s9 + $0xb0] sm:$0xff] %vm675_vm1, %v2618_v47  ;;  %v2616_v37 = vadd.f32 %v4588_v16, %v2543_v58  ;;  %v2554_v41 = vadd.f32 %v3250_v17, %v3214_v34 }
 0x564   : > { %v2336_v20 = vpop.f32.mrf.mxu1 }
 0x565   : > { %2648 = vst.msk [vmem:[%s4593_s9 + $0xa0] sm:$0xff] %vm675_vm1, %v2616_v37  ;;  %v2619_v52 = vadd.f32 %v4588_v16, %v2554_v41  ;;  %v2546_v13 = vadd.f32 %v2545_v14, %v2336_v20 }
 0x566   : > { %v3217_v21 = vpop.f32.mrf.mxu1 }
 0x567   : > { %2651 = vst.msk [vmem:[%s4593_s9 + $0xb8] sm:$0xff] %vm675_vm1, %v2619_v52  ;;  %v2617_v2 = vadd.f32 %v4588_v16, %v2546_v13  ;;  %v2567_v18 = vadd.f32 %v3253_v48, %v3217_v21 }
 0x568   : > { %v2349_v44 = vpop.f32.mrf.mxu1 }
 0x569   : > { %2649 = vst.msk [vmem:[%s4593_s9 + $0xa8] sm:$0xff] %vm675_vm1, %v2617_v2  ;;  %v2622_v31 = vadd.f32 %v4588_v16, %v2567_v18  ;;  %v2559_v4 = vadd.f32 %v2558_v28, %v2349_v44 }
 0x56a   : > { %v3218_v36 = vpop.f32.mrf.mxu1 }
 0x56b   : > { %2654 = vst.msk [vmem:[%s4593_s9 + $0xd0] sm:$0xff] %vm675_vm1, %v2622_v31  ;;  %v2620_v8 = vadd.f32 %v4588_v16, %v2559_v4  ;;  %v2570_v19 = vadd.f32 %v3254_v15, %v3218_v36 }
 0x56c   : > { %v2352_v30 = vpop.f32.mrf.mxu1 }
 0x56d   : > { %2652 = vst.msk [vmem:[%s4593_s9 + $0xc0] sm:$0xff] %vm675_vm1, %v2620_v8  ;;  %v2623_v3 = vadd.f32 %v4588_v16, %v2570_v19  ;;  %v2562_v22 = vadd.f32 %v2561_v60, %v2352_v30 }
 0x56e   : > { %v3221_v39 = vpop.f32.mrf.mxu1 }
 0x56f   : > { %2655 = vst.msk [vmem:[%s4593_s9 + $0xd8] sm:$0xff] %vm675_vm1, %v2623_v3  ;;  %v2621_v33 = vadd.f32 %v4588_v16, %v2562_v22  ;;  %v2583_v43 = vadd.f32 %v3257_v10, %v3221_v39 }
 0x570   : > { %v2365_v46 = vpop.f32.mrf.mxu1 }
 0x571   : > { %2653 = vst.msk [vmem:[%s4593_s9 + $0xc8] sm:$0xff] %vm675_vm1, %v2621_v33  ;;  %v2626_v55 = vadd.f32 %v4588_v16, %v2583_v43  ;;  %v2575_v0 = vadd.f32 %v2574_v45, %v2365_v46 }
 0x572   : > { %v3222_v32 = vpop.f32.mrf.mxu1 }
 0x573   : > { %2658 = vst.msk [vmem:[%s4593_s9 + $0xf0] sm:$0xff] %vm675_vm1, %v2626_v55  ;;  %v2624_v5 = vadd.f32 %v4588_v16, %v2575_v0  ;;  %v2586_v25 = vadd.f32 %v3258_v50, %v3222_v32 }
 0x574   : > { %v2368_v11 = vpop.f32.mrf.mxu1 }
 0x575   : > { %2656 = vst.msk [vmem:[%s4593_s9 + $0xe0] sm:$0xff] %vm675_vm1, %v2624_v5  ;;  %v2627_v51 = vadd.f32 %v4588_v16, %v2586_v25  ;;  %v2578_v12 = vadd.f32 %v2577_v1, %v2368_v11 }
 0x577   : > { %2659 = vst.msk [vmem:[%s4593_s9 + $0xf8] sm:$0xff] %vm675_vm1, %v2627_v51  ;;  %v2625_v49 = vadd.f32 %v4588_v16, %v2578_v12 }
 0x579   : > { %2657 = vst.msk [vmem:[%s4593_s9 + $0xe8] sm:$0xff] %vm675_vm1, %v2625_v49 }
 0x57a PF: > { %s15_s20 = sadd.s32 1, %s3602_s20   ;;  %s4788_s18 = smov %s3598_s19 }
 0x57b   : > { %p12_p5 = scmp.ge.s32.totalorder %s15_s20, 4   ;;  %s4789_s19 = smov %s4791_s21 }
 0x57d   :  { %14 = sbr.rel (!%p12_p5) target bundleno = 2 (0x2), region = 76 }

</bundles_post_ra>
